<compile_context>
chip_gen: v6e
topology: v6e:2x2x1
jax: 0.10.0
libtpu: 0.0.40
codegen_flags: <defaults>
</compile_context>

<pallas_src>
import functools

import jax
import jax.numpy as jnp
from jax import lax
from jax.experimental import pallas as pl
from jax.experimental.pallas import tpu as pltpu


def _dssc_kernel(x_ref, w1_ref, b1m_ref, w2_ref, b2_ref, o_ref, *,
                 exp1, exp2, k, stride, Ho, Wo):
    """One grid step: NB examples, channels-last, multiplier loops unrolled."""
    x = x_ref[...].astype(jnp.float32)      # (NB, Hp, Wp, C)
    w1 = w1_ref[...]                        # (k, exp1, C)        BN1 scale folded in
    b1m = b1m_ref[...]                      # (exp1, Wp, C)       bias, zeroed on W-pad cols
    w2 = w2_ref[...]                        # (k, exp1*exp2, C)   BN2 scale folded in
    b2 = b2_ref[...]                        # (exp1*exp2, C)

    # Stage-1 taps: shift along H, which is a leading (non-vreg) dim -> cheap,
    # even when strided.  Computed once and reused for every multiplier e.
    h_span = (Ho - 1) * stride + 1
    taps1 = [x[:, kh:kh + h_span:stride] for kh in range(k)]   # each (NB, Ho, Wp, C)

    w_span = (Wo - 1) * stride + 1
    for e in range(exp1):
        # Grouped (k,1) conv, channel multiplier e (lane-vector weights).
        acc1 = taps1[0] * w1[0, e]
        for kh in range(1, k):
            acc1 = acc1 + taps1[kh] * w1[kh, e]
        # Bias is pre-masked on the W padding columns, so `y` is exactly the
        # zero-padded post-BN1 intermediate the (1,k) conv needs.
        y = acc1 + b1m[e]                                      # (NB, Ho, Wp, C)

        # Stage-2 taps: shift along W (sublane dim; contiguous slice for stride=1).
        # TODO(synk): for stride > 1 this is a strided sublane slice (relayout per tap).
        taps2 = [y[:, :, kw:kw + w_span:stride] for kw in range(k)]  # each (NB, Ho, Wo, C)

        for f in range(exp2):
            m = e * exp2 + f
            # Grouped (1,k) conv, channel multiplier f.
            acc2 = taps2[0] * w2[0, m]
            for kw in range(1, k):
                acc2 = acc2 + taps2[kw] * w2[kw, m]
            o_ref[:, m] = (acc2 + b2[m]).astype(o_ref.dtype)


def _pick_batch_block(N, per_example_bytes, budget_bytes):
    """Largest divisor of N fitting the VMEM budget, keeping >=2 grid steps."""
    cap = max(1, budget_bytes // max(per_example_bytes, 1))
    best = 1
    for nb in range(1, N + 1):
        if N % nb != 0 or nb > cap:
            continue
        if (N // nb) < min(2, N):      # keep >=2 parallel steps when possible (v7x: 2 TCs)
            continue
        best = nb
    return best


def depth_spatial_sep_conv(x, params, *, expand, kernel_size, stride, eps=1e-5,
                           vmem_block_budget=6 * 1024 * 1024):
    exp1, exp2 = expand
    N, C, H, W = x.shape
    k = kernel_size
    pad = k // 2
    Ho = (H + 2 * pad - k) // stride + 1
    Wo = (W + 2 * pad - k) // stride + 1
    Cm = C * exp1
    Cout = Cm * exp2
    E = exp1 * exp2
    Hp = H + 2 * pad
    Wp = W + 2 * pad

    # ---- Fold BatchNorm (inference) into conv weights + bias (done once in XLA). ----
    s1 = params["g1"] / jnp.sqrt(params["rv1"] + eps)
    b1 = params["be1"] - params["rm1"] * s1
    s2 = params["g2"] / jnp.sqrt(params["rv2"] + eps)
    b2 = params["be2"] - params["rm2"] * s2

    # conv1 weight (Cm,1,k,1): intermediate channel j = c*exp1 + e uses input channel c.
    w1_eff = (params["w1"].reshape(Cm, k) * s1[:, None]).reshape(C, exp1, k)
    w1_eff = jnp.transpose(w1_eff, (2, 1, 0)).astype(jnp.float32)             # (k, exp1, C)
    # Stage-1 bias, zeroed on the W padding columns (keeps the padded
    # intermediate exactly zero there -> stage 2 boundary taps are correct).
    b1_ec = jnp.transpose(b1.reshape(C, exp1), (1, 0))                        # (exp1, C)
    wmask = ((jnp.arange(Wp) >= pad) & (jnp.arange(Wp) < pad + W)).astype(jnp.float32)
    b1m = (b1_ec[:, None, :] * wmask[None, :, None]).astype(jnp.float32)      # (exp1, Wp, C)

    # conv2 weight (Cout,1,1,k): output channel q = (c*exp1+e)*exp2 + f uses channel c*exp1+e.
    w2_eff = (params["w2"].reshape(Cout, k) * s2[:, None]).reshape(C, exp1, exp2, k)
    w2_eff = jnp.transpose(w2_eff, (3, 1, 2, 0)).reshape(k, E, C).astype(jnp.float32)
    b2_eff = jnp.transpose(b2.reshape(C, exp1, exp2), (1, 2, 0)).reshape(E, C)
    b2_eff = b2_eff.astype(jnp.float32)

    # ---- Channels-last input, zero-padded along H and W (wrapper glue). ----
    x_pad = jnp.pad(jnp.transpose(x, (0, 2, 3, 1)),
                    ((0, 0), (pad, pad), (pad, pad), (0, 0)))                 # (N, Hp, Wp, C)

    # ---- Batch blocking: NB examples per grid step, sized to a VMEM budget. ----
    esz = x.dtype.itemsize
    per_example = (2 * Hp * Wp * C * esz                 # double-buffered input block
                   + 2 * E * Ho * Wo * C * esz           # double-buffered output block
                   + (k + 2) * Ho * Wp * C * 4           # stage-1 taps + intermediate (f32)
                   + (k + 1) * Ho * Wo * C * 4)          # stage-2 taps + accumulator (f32)
    NB = _pick_batch_block(N, per_example, vmem_block_budget)

    kernel = functools.partial(_dssc_kernel, exp1=exp1, exp2=exp2, k=k,
                               stride=stride, Ho=Ho, Wo=Wo)

    grid_spec = pltpu.PrefetchScalarGridSpec(
        num_scalar_prefetch=0,
        grid=(N // NB,),
        in_specs=[
            pl.BlockSpec((NB, Hp, Wp, C), lambda n: (n, 0, 0, 0)),
            pl.BlockSpec((k, exp1, C), lambda n: (0, 0, 0)),
            pl.BlockSpec((exp1, Wp, C), lambda n: (0, 0, 0)),
            pl.BlockSpec((k, E, C), lambda n: (0, 0, 0)),
            pl.BlockSpec((E, C), lambda n: (0, 0)),
        ],
        out_specs=pl.BlockSpec((NB, E, Ho, Wo, C), lambda n: (n, 0, 0, 0, 0)),
    )

    out_k = pl.pallas_call(
        kernel,
        out_shape=jax.ShapeDtypeStruct((N, E, Ho, Wo, C), x.dtype),
        grid_spec=grid_spec,
        compiler_params=pltpu.CompilerParams(
            dimension_semantics=("parallel",),
            vmem_limit_bytes=32 * 1024 * 1024,
        ),
    )(x_pad, w1_eff, b1m, w2_eff, b2_eff)

    # Fold (c, e, f) back to the PyTorch channel order q = (c*exp1+e)*exp2 + f
    # together with the NHWC -> NCHW transpose (single XLA copy).
    out = jnp.transpose(out_k, (0, 4, 1, 2, 3)).reshape(N, Cout, Ho, Wo)
    return out


def make_params(key, in_channels, expand, kernel_size):
    """Deterministic synthetic parameters matching the PyTorch module's shapes."""
    exp1, exp2 = expand
    Cm = in_channels * exp1
    Cout = Cm * exp2
    k = kernel_size
    ks = jax.random.split(key, 10)
    return dict(
        w1=0.5 * jax.random.normal(ks[0], (Cm, 1, k, 1), jnp.float32),   # Conv2d(kx1) grouped
        g1=1.0 + 0.1 * jax.random.normal(ks[1], (Cm,), jnp.float32),     # BN1 gamma
        be1=0.1 * jax.random.normal(ks[2], (Cm,), jnp.float32),          # BN1 beta
        rm1=0.1 * jax.random.normal(ks[3], (Cm,), jnp.float32),          # BN1 running_mean
        rv1=jax.random.uniform(ks[4], (Cm,), jnp.float32, 0.5, 1.5),     # BN1 running_var
        w2=0.5 * jax.random.normal(ks[5], (Cout, 1, 1, k), jnp.float32), # Conv2d(1xk) grouped
        g2=1.0 + 0.1 * jax.random.normal(ks[6], (Cout,), jnp.float32),   # BN2 gamma
        be2=0.1 * jax.random.normal(ks[7], (Cout,), jnp.float32),        # BN2 beta
        rm2=0.1 * jax.random.normal(ks[8], (Cout,), jnp.float32),        # BN2 running_mean
        rv2=jax.random.uniform(ks[9], (Cout,), jnp.float32, 0.5, 1.5),   # BN2 running_var
    )


def ref_forward(x, params, *, expand, kernel_size, stride, eps=1e-5):
    """Pure-JAX reference (lax grouped convs) for correctness checking."""
    exp1, exp2 = expand
    N, C, H, W = x.shape
    k = kernel_size
    pad = k // 2
    Cm = C * exp1
    Cout = Cm * exp2
    s1 = params["g1"] / jnp.sqrt(params["rv1"] + eps)
    b1 = params["be1"] - params["rm1"] * s1
    s2 = params["g2"] / jnp.sqrt(params["rv2"] + eps)
    b2 = params["be2"] - params["rm2"] * s2
    dn = ("NCHW", "OIHW", "NCHW")
    y = lax.conv_general_dilated(
        x, params["w1"], (stride, 1), ((pad, pad), (0, 0)),
        dimension_numbers=dn, feature_group_count=C)
    y = y * s1.reshape(1, Cm, 1, 1) + b1.reshape(1, Cm, 1, 1)
    z = lax.conv_general_dilated(
        y, params["w2"], (1, stride), ((0, 0), (pad, pad)),
        dimension_numbers=dn, feature_group_count=Cm)
    return z * s2.reshape(1, Cout, 1, 1) + b2.reshape(1, Cout, 1, 1)


if __name__ == "__main__":
    in_channels = 4
    expand = (2, 2)        # -> intermediate = 8, out = 16 channels
    kernel_size = 3
    stride = 1
    N, H, W = 2, 16, 16

    key = jax.random.PRNGKey(0)
    kx, kp = jax.random.split(key)
    x = jax.random.normal(kx, (N, in_channels, H, W), jnp.float32)
    params = make_params(kp, in_channels, expand, kernel_size)

    out = depth_spatial_sep_conv(
        x, params, expand=expand, kernel_size=kernel_size, stride=stride)
    out = jax.block_until_ready(out)

    ref = ref_forward(
        x, params, expand=expand, kernel_size=kernel_size, stride=stride)
    assert out.shape == ref.shape, (out.shape, ref.shape)
    max_err = float(jnp.max(jnp.abs(out - ref)))
    assert jnp.allclose(out, ref, atol=1e-4, rtol=1e-4), max_err

    # bf16 I/O path (memory-bound win on v6e/v7x); accumulation stays f32 in-kernel.
    out_bf = depth_spatial_sep_conv(
        x.astype(jnp.bfloat16), params,
        expand=expand, kernel_size=kernel_size, stride=stride)
    out_bf = jax.block_until_ready(out_bf)
    assert out_bf.shape == ref.shape and out_bf.dtype == jnp.bfloat16
    bf_err = float(jnp.max(jnp.abs(out_bf.astype(jnp.float32) - ref)))
    assert bf_err < 0.3, bf_err

    print("KERNEL_OK")
</pallas_src>

<mosaic_0001>
module attributes {stable_mosaic.version = 11 : i64} {
  func.func @_dssc_kernel(%arg0: i32, %arg1: memref<1x18x18x4xf32, #tpu.memory_space<vmem>>, %arg2: memref<3x2x4xf32, #tpu.memory_space<vmem>>, %arg3: memref<2x18x4xf32, #tpu.memory_space<vmem>>, %arg4: memref<3x4x4xf32, #tpu.memory_space<vmem>>, %arg5: memref<4x4xf32, #tpu.memory_space<vmem>>, %arg6: memref<1x4x16x16x4xf32, #tpu.memory_space<vmem>>) attributes {dimension_semantics = [#tpu.dimension_semantics<parallel>], iteration_bounds = array<i64: 2>, scalar_prefetch = 0 : i64, scratch_operands = 0 : i64, tpu.core_type = #tpu.core_type<tc>, window_params = [{transform_indices = @transform_0, window_bounds = array<i64: 1, 18, 18, 4>}, {pipeline_mode = #tpu.pipeline_mode<synchronous>, transform_indices = @transform_1, window_bounds = array<i64: 3, 2, 4>}, {pipeline_mode = #tpu.pipeline_mode<synchronous>, transform_indices = @transform_2, window_bounds = array<i64: 2, 18, 4>}, {pipeline_mode = #tpu.pipeline_mode<synchronous>, transform_indices = @transform_3, window_bounds = array<i64: 3, 4, 4>}, {pipeline_mode = #tpu.pipeline_mode<synchronous>, transform_indices = @transform_4, window_bounds = array<i64: 4, 4>}, {transform_indices = @transform_5, window_bounds = array<i64: 1, 4, 16, 16, 4>}]} {
    %c0 = arith.constant 0 : index
    %c0_0 = arith.constant 0 : index
    %c0_1 = arith.constant 0 : index
    %c0_2 = arith.constant 0 : index
    %0 = vector.load %arg1[%c0, %c0_0, %c0_1, %c0_2] : memref<1x18x18x4xf32, #tpu.memory_space<vmem>>, vector<1x18x18x4xf32>
    %c0_3 = arith.constant 0 : index
    %c0_4 = arith.constant 0 : index
    %c0_5 = arith.constant 0 : index
    %1 = vector.load %arg2[%c0_3, %c0_4, %c0_5] : memref<3x2x4xf32, #tpu.memory_space<vmem>>, vector<3x2x4xf32>
    %c0_6 = arith.constant 0 : index
    %c0_7 = arith.constant 0 : index
    %c0_8 = arith.constant 0 : index
    %2 = vector.load %arg3[%c0_6, %c0_7, %c0_8] : memref<2x18x4xf32, #tpu.memory_space<vmem>>, vector<2x18x4xf32>
    %c0_9 = arith.constant 0 : index
    %c0_10 = arith.constant 0 : index
    %c0_11 = arith.constant 0 : index
    %3 = vector.load %arg4[%c0_9, %c0_10, %c0_11] : memref<3x4x4xf32, #tpu.memory_space<vmem>>, vector<3x4x4xf32>
    %c0_12 = arith.constant 0 : index
    %c0_13 = arith.constant 0 : index
    %4 = vector.load %arg5[%c0_12, %c0_13] : memref<4x4xf32, #tpu.memory_space<vmem>>, vector<4x4xf32>
    %5 = vector.extract_strided_slice %0 {offsets = [0, 0, 0, 0], sizes = [1, 16, 18, 4], strides = [1, 1, 1, 1]} : vector<1x18x18x4xf32> to vector<1x16x18x4xf32>
    %6 = vector.extract_strided_slice %0 {offsets = [0, 1, 0, 0], sizes = [1, 16, 18, 4], strides = [1, 1, 1, 1]} : vector<1x18x18x4xf32> to vector<1x16x18x4xf32>
    %7 = vector.extract_strided_slice %0 {offsets = [0, 2, 0, 0], sizes = [1, 16, 18, 4], strides = [1, 1, 1, 1]} : vector<1x18x18x4xf32> to vector<1x16x18x4xf32>
    %8 = vector.extract_strided_slice %1 {offsets = [0, 0, 0], sizes = [1, 1, 4], strides = [1, 1, 1]} : vector<3x2x4xf32> to vector<1x1x4xf32>
    %9 = vector.shape_cast %8 : vector<1x1x4xf32> to vector<4xf32>
    %10 = vector.shape_cast %9 : vector<4xf32> to vector<1x1x1x4xf32>
    %11 = vector.broadcast %10 : vector<1x1x1x4xf32> to vector<1x16x18x4xf32>
    %12 = arith.mulf %5, %11 : vector<1x16x18x4xf32>
    %13 = vector.extract_strided_slice %1 {offsets = [1, 0, 0], sizes = [1, 1, 4], strides = [1, 1, 1]} : vector<3x2x4xf32> to vector<1x1x4xf32>
    %14 = vector.shape_cast %13 : vector<1x1x4xf32> to vector<4xf32>
    %15 = vector.shape_cast %14 : vector<4xf32> to vector<1x1x1x4xf32>
    %16 = vector.broadcast %15 : vector<1x1x1x4xf32> to vector<1x16x18x4xf32>
    %17 = arith.mulf %6, %16 : vector<1x16x18x4xf32>
    %18 = arith.addf %12, %17 : vector<1x16x18x4xf32>
    %19 = vector.extract_strided_slice %1 {offsets = [2, 0, 0], sizes = [1, 1, 4], strides = [1, 1, 1]} : vector<3x2x4xf32> to vector<1x1x4xf32>
    %20 = vector.shape_cast %19 : vector<1x1x4xf32> to vector<4xf32>
    %21 = vector.shape_cast %20 : vector<4xf32> to vector<1x1x1x4xf32>
    %22 = vector.broadcast %21 : vector<1x1x1x4xf32> to vector<1x16x18x4xf32>
    %23 = arith.mulf %7, %22 : vector<1x16x18x4xf32>
    %24 = arith.addf %18, %23 : vector<1x16x18x4xf32>
    %25 = vector.extract_strided_slice %2 {offsets = [0, 0, 0], sizes = [1, 18, 4], strides = [1, 1, 1]} : vector<2x18x4xf32> to vector<1x18x4xf32>
    %26 = vector.shape_cast %25 : vector<1x18x4xf32> to vector<18x4xf32>
    %27 = vector.shape_cast %26 : vector<18x4xf32> to vector<1x1x18x4xf32>
    %28 = vector.broadcast %27 : vector<1x1x18x4xf32> to vector<1x16x18x4xf32>
    %29 = arith.addf %24, %28 : vector<1x16x18x4xf32>
    %30 = vector.extract_strided_slice %29 {offsets = [0, 0, 0, 0], sizes = [1, 16, 16, 4], strides = [1, 1, 1, 1]} : vector<1x16x18x4xf32> to vector<1x16x16x4xf32>
    %31 = vector.extract_strided_slice %29 {offsets = [0, 0, 1, 0], sizes = [1, 16, 16, 4], strides = [1, 1, 1, 1]} : vector<1x16x18x4xf32> to vector<1x16x16x4xf32>
    %32 = vector.extract_strided_slice %29 {offsets = [0, 0, 2, 0], sizes = [1, 16, 16, 4], strides = [1, 1, 1, 1]} : vector<1x16x18x4xf32> to vector<1x16x16x4xf32>
    %33 = vector.extract_strided_slice %3 {offsets = [0, 0, 0], sizes = [1, 1, 4], strides = [1, 1, 1]} : vector<3x4x4xf32> to vector<1x1x4xf32>
    %34 = vector.shape_cast %33 : vector<1x1x4xf32> to vector<4xf32>
    %35 = vector.shape_cast %34 : vector<4xf32> to vector<1x1x1x4xf32>
    %36 = vector.broadcast %35 : vector<1x1x1x4xf32> to vector<1x16x16x4xf32>
    %37 = arith.mulf %30, %36 : vector<1x16x16x4xf32>
    %38 = vector.extract_strided_slice %3 {offsets = [1, 0, 0], sizes = [1, 1, 4], strides = [1, 1, 1]} : vector<3x4x4xf32> to vector<1x1x4xf32>
    %39 = vector.shape_cast %38 : vector<1x1x4xf32> to vector<4xf32>
    %40 = vector.shape_cast %39 : vector<4xf32> to vector<1x1x1x4xf32>
    %41 = vector.broadcast %40 : vector<1x1x1x4xf32> to vector<1x16x16x4xf32>
    %42 = arith.mulf %31, %41 : vector<1x16x16x4xf32>
    %43 = arith.addf %37, %42 : vector<1x16x16x4xf32>
    %44 = vector.extract_strided_slice %3 {offsets = [2, 0, 0], sizes = [1, 1, 4], strides = [1, 1, 1]} : vector<3x4x4xf32> to vector<1x1x4xf32>
    %45 = vector.shape_cast %44 : vector<1x1x4xf32> to vector<4xf32>
    %46 = vector.shape_cast %45 : vector<4xf32> to vector<1x1x1x4xf32>
    %47 = vector.broadcast %46 : vector<1x1x1x4xf32> to vector<1x16x16x4xf32>
    %48 = arith.mulf %32, %47 : vector<1x16x16x4xf32>
    %49 = arith.addf %43, %48 : vector<1x16x16x4xf32>
    %50 = vector.extract_strided_slice %4 {offsets = [0, 0], sizes = [1, 4], strides = [1, 1]} : vector<4x4xf32> to vector<1x4xf32>
    %51 = vector.shape_cast %50 : vector<1x4xf32> to vector<4xf32>
    %52 = vector.shape_cast %51 : vector<4xf32> to vector<1x1x1x4xf32>
    %53 = vector.broadcast %52 : vector<1x1x1x4xf32> to vector<1x16x16x4xf32>
    %54 = arith.addf %49, %53 : vector<1x16x16x4xf32>
    %c0_14 = arith.constant 0 : index
    %c0_15 = arith.constant 0 : index
    %c0_16 = arith.constant 0 : index
    %c0_17 = arith.constant 0 : index
    %c0_18 = arith.constant 0 : index
    %55 = vector.load %arg6[%c0_14, %c0_15, %c0_16, %c0_17, %c0_18] : memref<1x4x16x16x4xf32, #tpu.memory_space<vmem>>, vector<1x1x16x16x4xf32>
    %56 = vector.shape_cast %55 : vector<1x1x16x16x4xf32> to vector<1x16x16x4xf32>
    %57 = vector.shape_cast %54 : vector<1x16x16x4xf32> to vector<1x1x16x16x4xf32>
    tpu.vector_store %arg6[%c0_14, %c0_15, %c0_16, %c0_17, %c0_18], %57 {strides = array<i32>} : memref<1x4x16x16x4xf32, #tpu.memory_space<vmem>>, vector<1x1x16x16x4xf32>,
    %58 = vector.extract_strided_slice %3 {offsets = [0, 1, 0], sizes = [1, 1, 4], strides = [1, 1, 1]} : vector<3x4x4xf32> to vector<1x1x4xf32>
    %59 = vector.shape_cast %58 : vector<1x1x4xf32> to vector<4xf32>
    %60 = vector.shape_cast %59 : vector<4xf32> to vector<1x1x1x4xf32>
    %61 = vector.broadcast %60 : vector<1x1x1x4xf32> to vector<1x16x16x4xf32>
    %62 = arith.mulf %30, %61 : vector<1x16x16x4xf32>
    %63 = vector.extract_strided_slice %3 {offsets = [1, 1, 0], sizes = [1, 1, 4], strides = [1, 1, 1]} : vector<3x4x4xf32> to vector<1x1x4xf32>
    %64 = vector.shape_cast %63 : vector<1x1x4xf32> to vector<4xf32>
    %65 = vector.shape_cast %64 : vector<4xf32> to vector<1x1x1x4xf32>
    %66 = vector.broadcast %65 : vector<1x1x1x4xf32> to vector<1x16x16x4xf32>
    %67 = arith.mulf %31, %66 : vector<1x16x16x4xf32>
    %68 = arith.addf %62, %67 : vector<1x16x16x4xf32>
    %69 = vector.extract_strided_slice %3 {offsets = [2, 1, 0], sizes = [1, 1, 4], strides = [1, 1, 1]} : vector<3x4x4xf32> to vector<1x1x4xf32>
    %70 = vector.shape_cast %69 : vector<1x1x4xf32> to vector<4xf32>
    %71 = vector.shape_cast %70 : vector<4xf32> to vector<1x1x1x4xf32>
    %72 = vector.broadcast %71 : vector<1x1x1x4xf32> to vector<1x16x16x4xf32>
    %73 = arith.mulf %32, %72 : vector<1x16x16x4xf32>
    %74 = arith.addf %68, %73 : vector<1x16x16x4xf32>
    %75 = vector.extract_strided_slice %4 {offsets = [1, 0], sizes = [1, 4], strides = [1, 1]} : vector<4x4xf32> to vector<1x4xf32>
    %76 = vector.shape_cast %75 : vector<1x4xf32> to vector<4xf32>
    %77 = vector.shape_cast %76 : vector<4xf32> to vector<1x1x1x4xf32>
    %78 = vector.broadcast %77 : vector<1x1x1x4xf32> to vector<1x16x16x4xf32>
    %79 = arith.addf %74, %78 : vector<1x16x16x4xf32>
    %c0_19 = arith.constant 0 : index
    %c1 = arith.constant 1 : index
    %c0_20 = arith.constant 0 : index
    %c0_21 = arith.constant 0 : index
    %c0_22 = arith.constant 0 : index
    %80 = vector.load %arg6[%c0_19, %c1, %c0_20, %c0_21, %c0_22] : memref<1x4x16x16x4xf32, #tpu.memory_space<vmem>>, vector<1x1x16x16x4xf32>
    %81 = vector.shape_cast %80 : vector<1x1x16x16x4xf32> to vector<1x16x16x4xf32>
    %82 = vector.shape_cast %79 : vector<1x16x16x4xf32> to vector<1x1x16x16x4xf32>
    tpu.vector_store %arg6[%c0_19, %c1, %c0_20, %c0_21, %c0_22], %82 {strides = array<i32>} : memref<1x4x16x16x4xf32, #tpu.memory_space<vmem>>, vector<1x1x16x16x4xf32>,
    %83 = vector.extract_strided_slice %1 {offsets = [0, 1, 0], sizes = [1, 1, 4], strides = [1, 1, 1]} : vector<3x2x4xf32> to vector<1x1x4xf32>
    %84 = vector.shape_cast %83 : vector<1x1x4xf32> to vector<4xf32>
    %85 = vector.shape_cast %84 : vector<4xf32> to vector<1x1x1x4xf32>
    %86 = vector.broadcast %85 : vector<1x1x1x4xf32> to vector<1x16x18x4xf32>
    %87 = arith.mulf %5, %86 : vector<1x16x18x4xf32>
    %88 = vector.extract_strided_slice %1 {offsets = [1, 1, 0], sizes = [1, 1, 4], strides = [1, 1, 1]} : vector<3x2x4xf32> to vector<1x1x4xf32>
    %89 = vector.shape_cast %88 : vector<1x1x4xf32> to vector<4xf32>
    %90 = vector.shape_cast %89 : vector<4xf32> to vector<1x1x1x4xf32>
    %91 = vector.broadcast %90 : vector<1x1x1x4xf32> to vector<1x16x18x4xf32>
    %92 = arith.mulf %6, %91 : vector<1x16x18x4xf32>
    %93 = arith.addf %87, %92 : vector<1x16x18x4xf32>
    %94 = vector.extract_strided_slice %1 {offsets = [2, 1, 0], sizes = [1, 1, 4], strides = [1, 1, 1]} : vector<3x2x4xf32> to vector<1x1x4xf32>
    %95 = vector.shape_cast %94 : vector<1x1x4xf32> to vector<4xf32>
    %96 = vector.shape_cast %95 : vector<4xf32> to vector<1x1x1x4xf32>
    %97 = vector.broadcast %96 : vector<1x1x1x4xf32> to vector<1x16x18x4xf32>
    %98 = arith.mulf %7, %97 : vector<1x16x18x4xf32>
    %99 = arith.addf %93, %98 : vector<1x16x18x4xf32>
    %100 = vector.extract_strided_slice %2 {offsets = [1, 0, 0], sizes = [1, 18, 4], strides = [1, 1, 1]} : vector<2x18x4xf32> to vector<1x18x4xf32>
    %101 = vector.shape_cast %100 : vector<1x18x4xf32> to vector<18x4xf32>
    %102 = vector.shape_cast %101 : vector<18x4xf32> to vector<1x1x18x4xf32>
    %103 = vector.broadcast %102 : vector<1x1x18x4xf32> to vector<1x16x18x4xf32>
    %104 = arith.addf %99, %103 : vector<1x16x18x4xf32>
    %105 = vector.extract_strided_slice %104 {offsets = [0, 0, 0, 0], sizes = [1, 16, 16, 4], strides = [1, 1, 1, 1]} : vector<1x16x18x4xf32> to vector<1x16x16x4xf32>
    %106 = vector.extract_strided_slice %104 {offsets = [0, 0, 1, 0], sizes = [1, 16, 16, 4], strides = [1, 1, 1, 1]} : vector<1x16x18x4xf32> to vector<1x16x16x4xf32>
    %107 = vector.extract_strided_slice %104 {offsets = [0, 0, 2, 0], sizes = [1, 16, 16, 4], strides = [1, 1, 1, 1]} : vector<1x16x18x4xf32> to vector<1x16x16x4xf32>
    %108 = vector.extract_strided_slice %3 {offsets = [0, 2, 0], sizes = [1, 1, 4], strides = [1, 1, 1]} : vector<3x4x4xf32> to vector<1x1x4xf32>
    %109 = vector.shape_cast %108 : vector<1x1x4xf32> to vector<4xf32>
    %110 = vector.shape_cast %109 : vector<4xf32> to vector<1x1x1x4xf32>
    %111 = vector.broadcast %110 : vector<1x1x1x4xf32> to vector<1x16x16x4xf32>
    %112 = arith.mulf %105, %111 : vector<1x16x16x4xf32>
    %113 = vector.extract_strided_slice %3 {offsets = [1, 2, 0], sizes = [1, 1, 4], strides = [1, 1, 1]} : vector<3x4x4xf32> to vector<1x1x4xf32>
    %114 = vector.shape_cast %113 : vector<1x1x4xf32> to vector<4xf32>
    %115 = vector.shape_cast %114 : vector<4xf32> to vector<1x1x1x4xf32>
    %116 = vector.broadcast %115 : vector<1x1x1x4xf32> to vector<1x16x16x4xf32>
    %117 = arith.mulf %106, %116 : vector<1x16x16x4xf32>
    %118 = arith.addf %112, %117 : vector<1x16x16x4xf32>
    %119 = vector.extract_strided_slice %3 {offsets = [2, 2, 0], sizes = [1, 1, 4], strides = [1, 1, 1]} : vector<3x4x4xf32> to vector<1x1x4xf32>
    %120 = vector.shape_cast %119 : vector<1x1x4xf32> to vector<4xf32>
    %121 = vector.shape_cast %120 : vector<4xf32> to vector<1x1x1x4xf32>
    %122 = vector.broadcast %121 : vector<1x1x1x4xf32> to vector<1x16x16x4xf32>
    %123 = arith.mulf %107, %122 : vector<1x16x16x4xf32>
    %124 = arith.addf %118, %123 : vector<1x16x16x4xf32>
    %125 = vector.extract_strided_slice %4 {offsets = [2, 0], sizes = [1, 4], strides = [1, 1]} : vector<4x4xf32> to vector<1x4xf32>
    %126 = vector.shape_cast %125 : vector<1x4xf32> to vector<4xf32>
    %127 = vector.shape_cast %126 : vector<4xf32> to vector<1x1x1x4xf32>
    %128 = vector.broadcast %127 : vector<1x1x1x4xf32> to vector<1x16x16x4xf32>
    %129 = arith.addf %124, %128 : vector<1x16x16x4xf32>
    %c0_23 = arith.constant 0 : index
    %c2 = arith.constant 2 : index
    %c0_24 = arith.constant 0 : index
    %c0_25 = arith.constant 0 : index
    %c0_26 = arith.constant 0 : index
    %130 = vector.load %arg6[%c0_23, %c2, %c0_24, %c0_25, %c0_26] : memref<1x4x16x16x4xf32, #tpu.memory_space<vmem>>, vector<1x1x16x16x4xf32>
    %131 = vector.shape_cast %130 : vector<1x1x16x16x4xf32> to vector<1x16x16x4xf32>
    %132 = vector.shape_cast %129 : vector<1x16x16x4xf32> to vector<1x1x16x16x4xf32>
    tpu.vector_store %arg6[%c0_23, %c2, %c0_24, %c0_25, %c0_26], %132 {strides = array<i32>} : memref<1x4x16x16x4xf32, #tpu.memory_space<vmem>>, vector<1x1x16x16x4xf32>,
    %133 = vector.extract_strided_slice %3 {offsets = [0, 3, 0], sizes = [1, 1, 4], strides = [1, 1, 1]} : vector<3x4x4xf32> to vector<1x1x4xf32>
    %134 = vector.shape_cast %133 : vector<1x1x4xf32> to vector<4xf32>
    %135 = vector.shape_cast %134 : vector<4xf32> to vector<1x1x1x4xf32>
    %136 = vector.broadcast %135 : vector<1x1x1x4xf32> to vector<1x16x16x4xf32>
    %137 = arith.mulf %105, %136 : vector<1x16x16x4xf32>
    %138 = vector.extract_strided_slice %3 {offsets = [1, 3, 0], sizes = [1, 1, 4], strides = [1, 1, 1]} : vector<3x4x4xf32> to vector<1x1x4xf32>
    %139 = vector.shape_cast %138 : vector<1x1x4xf32> to vector<4xf32>
    %140 = vector.shape_cast %139 : vector<4xf32> to vector<1x1x1x4xf32>
    %141 = vector.broadcast %140 : vector<1x1x1x4xf32> to vector<1x16x16x4xf32>
    %142 = arith.mulf %106, %141 : vector<1x16x16x4xf32>
    %143 = arith.addf %137, %142 : vector<1x16x16x4xf32>
    %144 = vector.extract_strided_slice %3 {offsets = [2, 3, 0], sizes = [1, 1, 4], strides = [1, 1, 1]} : vector<3x4x4xf32> to vector<1x1x4xf32>
    %145 = vector.shape_cast %144 : vector<1x1x4xf32> to vector<4xf32>
    %146 = vector.shape_cast %145 : vector<4xf32> to vector<1x1x1x4xf32>
    %147 = vector.broadcast %146 : vector<1x1x1x4xf32> to vector<1x16x16x4xf32>
    %148 = arith.mulf %107, %147 : vector<1x16x16x4xf32>
    %149 = arith.addf %143, %148 : vector<1x16x16x4xf32>
    %150 = vector.extract_strided_slice %4 {offsets = [3, 0], sizes = [1, 4], strides = [1, 1]} : vector<4x4xf32> to vector<1x4xf32>
    %151 = vector.shape_cast %150 : vector<1x4xf32> to vector<4xf32>
    %152 = vector.shape_cast %151 : vector<4xf32> to vector<1x1x1x4xf32>
    %153 = vector.broadcast %152 : vector<1x1x1x4xf32> to vector<1x16x16x4xf32>
    %154 = arith.addf %149, %153 : vector<1x16x16x4xf32>
    %c0_27 = arith.constant 0 : index
    %c3 = arith.constant 3 : index
    %c0_28 = arith.constant 0 : index
    %c0_29 = arith.constant 0 : index
    %c0_30 = arith.constant 0 : index
    %155 = vector.load %arg6[%c0_27, %c3, %c0_28, %c0_29, %c0_30] : memref<1x4x16x16x4xf32, #tpu.memory_space<vmem>>, vector<1x1x16x16x4xf32>
    %156 = vector.shape_cast %155 : vector<1x1x16x16x4xf32> to vector<1x16x16x4xf32>
    %157 = vector.shape_cast %154 : vector<1x16x16x4xf32> to vector<1x1x16x16x4xf32>
    tpu.vector_store %arg6[%c0_27, %c3, %c0_28, %c0_29, %c0_30], %157 {strides = array<i32>} : memref<1x4x16x16x4xf32, #tpu.memory_space<vmem>>, vector<1x1x16x16x4xf32>,
    return
  }
  func.func @transform_0(%arg0: i32) -> (i32, i32, i32, i32) {
    %c0_i32 = arith.constant 0 : i32
    %c0_i32_0 = arith.constant 0 : i32
    %c0_i32_1 = arith.constant 0 : i32
    %c0_i32_2 = arith.constant 0 : i32
    return %arg0, %c0_i32, %c0_i32_0, %c0_i32_1 : i32, i32, i32, i32
  }
  func.func @transform_1(%arg0: i32) -> (i32, i32, i32) {
    %c0_i32 = arith.constant 0 : i32
    %c0_i32_0 = arith.constant 0 : i32
    %c0_i32_1 = arith.constant 0 : i32
    %c0_i32_2 = arith.constant 0 : i32
    return %c0_i32, %c0_i32_0, %c0_i32_1 : i32, i32, i32
  }
  func.func @transform_2(%arg0: i32) -> (i32, i32, i32) {
    %c0_i32 = arith.constant 0 : i32
    %c0_i32_0 = arith.constant 0 : i32
    %c0_i32_1 = arith.constant 0 : i32
    %c0_i32_2 = arith.constant 0 : i32
    return %c0_i32, %c0_i32_0, %c0_i32_1 : i32, i32, i32
  }
  func.func @transform_3(%arg0: i32) -> (i32, i32, i32) {
    %c0_i32 = arith.constant 0 : i32
    %c0_i32_0 = arith.constant 0 : i32
    %c0_i32_1 = arith.constant 0 : i32
    %c0_i32_2 = arith.constant 0 : i32
    return %c0_i32, %c0_i32_0, %c0_i32_1 : i32, i32, i32
  }
  func.func @transform_4(%arg0: i32) -> (i32, i32) {
    %c0_i32 = arith.constant 0 : i32
    %c0_i32_0 = arith.constant 0 : i32
    %c0_i32_1 = arith.constant 0 : i32
    return %c0_i32, %c0_i32_0 : i32, i32
  }
  func.func @transform_5(%arg0: i32) -> (i32, i32, i32, i32, i32) {
    %c0_i32 = arith.constant 0 : i32
    %c0_i32_0 = arith.constant 0 : i32
    %c0_i32_1 = arith.constant 0 : i32
    %c0_i32_2 = arith.constant 0 : i32
    %c0_i32_3 = arith.constant 0 : i32
    return %arg0, %c0_i32, %c0_i32_0, %c0_i32_1, %c0_i32_2 : i32, i32, i32, i32, i32
  }
}

</mosaic_0001>

<bundles_post_ra>
// kernel: tpu_custom_call.1
= control target key start
LH: loop header
LB: loop body
LE: loop exit
PB: predicated region body
PF: predicated region fallthrough
CT: control target
= control target key end

     0   :  { %s3546_s18 = smov 0   ;;  %s6520_s0 = inlined_call_operand.vmem [shape: f32[2,18,18,4], index: 0, kind: input, shape index: {}]   ;;  %s6521_s1 = inlined_call_operand.vmem [shape: f32[3,2,4], index: 1, kind: input, shape index: {}]   ;;  %s6522_s2 = inlined_call_operand.vmem [shape: f32[2,18,4], index: 2, kind: input, shape index: {}]   ;;  %s6523_s3 = inlined_call_operand.vmem [shape: f32[3,4,4], index: 3, kind: input, shape index: {}]   ;;  %s6524_s4 = inlined_call_operand.vmem [shape: f32[4,4], index: 4, kind: input, shape index: {}]   ;;  %s6525_s5 = inlined_call_operand.vmem [shape: f32[2,4,16,16,4], index: 5, kind: output, shape index: {}]  }
   0x1 LB: > { %s3321_s19 = sadd.s32 4294967295, %s3514_s18   ;;  %p3325_p0 = scmp.ge.s32.totalorder %s3514_s18, 1  ;;  %s3514_s18 = sphi %s3546_s18, %s15_s18  }
   0x2   : > { %p187_p1 = scmp.lt.s32.totalorder %s3514_s18, 3 }
   0x4   : > { %p188_p2 = pnand %p3325_p0, %p187_p1 }
   0x6   : > { %191 = sbr.rel (%p188_p2) target bundleno = 561 (0x231), region = 40 }
   0xb   : > { %p215_p3 = scmp.lt.s32.totalorder %s3321_s19, 1  ;;  %v292_v0 = vlaneseq  ;;  %v279_v1 = vld [vmem:[%s6521_s1] sm:$0x3]  ;;  %v280_v2 = vld [vmem:[%s6521_s1 + $0x2] sm:$0x3]  ;;  %vm728_vm0 = vcmask 1046528  }
   0xc   : > { %v281_v4 = vld [vmem:[%s6521_s1 + $0x4] sm:$0x3]  ;;  %v288_v5 = vld [vmem:[%s6523_s3] sm:$0xf]  ;;  %v290_v7 = vld [vmem:[%s6523_s3 + $0x8] sm:$0xf] }
   0xd   : > { %s6687_s19 = smov (!%p215_p3, %s3321_s19), 1  ;;  %v3562_v3 = vshrl.u32 %v292_v0, 7  ;;  %v289_v6 = vld [vmem:[%s6523_s3 + $0x4] sm:$0xf]  ;;  %v291_v8 = vld [vmem:[%s6524_s4] sm:$0xf] }
   0xe   : > { %s3428_s30 = smul.u32 432, %s6687_s19  ;;  %vm973_vm1 = vcmask 1045504   ;;  %v3632_v39 = vld [vmem:[%s6522_s2] sm:$0xff]  ;;  %v3645_v45 = vld [vmem:[%s6522_s2 + $0x8] sm:$0xff]  ;;  %v3653_v51 = vld [vmem:[%s6522_s2 + $0x10] sm:$0x3] }
   0xf   : > { %v294_v9 = vsub.s32 0, %v3562_v3  ;;  %vm1154_vm2 = vcmask 31744   ;;  %s3427_s21 = sshll.u32 %s6687_s19, 10 }
  0x10   : > { %s3584_s12 = scalar_lea.vmem %s6520_s0, %s3428_s30  ;;  %s3716_s23 = scalar_lea.vmem %s6525_s5, %s3427_s21 }
  0x11   : > { %v3586_v10 = vrot.slane %v279_v1, %v294_v9  ;;  %v3588_v11 = vrot.slane %v280_v2, %v294_v9  ;;  %v3590_v12 = vrot.slane %v281_v4, %v294_v9  ;;  %v225_v13 = vld [vmem:[%s3584_s12] sm:$0xff]  ;;  %v226_v14 = vld [vmem:[%s3584_s12 + $0x8] sm:$0xff]  ;;  %v228_v15 = vld [vmem:[%s3584_s12 + $0x18] sm:$0xff]  ;;  %v3595_v16 = vrot.slane %v288_v5, %v294_v9 }
  0x12   : > { %v3597_v17 = vrot.slane %v289_v6, %v294_v9  ;;  %v3599_v18 = vrot.slane %v290_v7, %v294_v9  ;;  %v3601_v19 = vrot.slane %v291_v8, %v294_v9  ;;  %v229_v20 = vld [vmem:[%s3584_s12 + $0x20] sm:$0xff]  ;;  %v231_v21 = vld [vmem:[%s3584_s12 + $0x30] sm:$0xff]  ;;  %v3606_v22 = vld [vmem:[%s3584_s12 + $0x38] sm:$0xff] }
  0x13   : > { %v296_v23 = vmul.f32 %v3586_v10, %v225_v13  ;;  %v297_v24 = vmul.f32 %v3586_v10, %v226_v14  ;;  %v348_v25 = vmul.f32 %v3588_v11, %v228_v15  ;;  %v299_v26 = vmul.f32 %v3586_v10, %v228_v15  ;;  %v227_v30 = vld [vmem:[%s3584_s12 + $0x10] sm:$0x3]  ;;  %v230_v31 = vld [vmem:[%s3584_s12 + $0x28] sm:$0x3]  ;;  %v3619_v32 = vld [vmem:[%s3584_s12 + $0x40] sm:$0x3] }
  0x14   : > { %v349_v27 = vmul.f32 %v3588_v11, %v229_v20  ;;  %v448_v28 = vmul.f32 %v3590_v12, %v231_v21  ;;  %v449_v29 = vmul.f32 %v3590_v12, %v3606_v22  ;;  %v300_v33 = vmul.f32 %v3586_v10, %v229_v20  ;;  %v3627_v38 = vld [vmem:[%s3584_s12 + $0x48] sm:$0xff]  ;;  %v3635_v41 = vld [vmem:[%s3584_s12 + $0x50] sm:$0xff]  ;;  %v3656_v54 = vld [vmem:[%s3584_s12 + $0x58] sm:$0x3] }
  0x15   : > { %v396_v34 = vadd.f32 %v348_v25, %v296_v23  ;;  %v298_v35 = vmul.f32 %v3586_v10, %v227_v30  ;;  %v350_v36 = vmul.f32 %v3588_v11, %v230_v31  ;;  %v450_v37 = vmul.f32 %v3590_v12, %v3619_v32 }
  0x16   : > { %v397_v40 = vadd.f32 %v349_v27, %v297_v24  ;;  %v351_v42 = vmul.f32 %v3588_v11, %v231_v21  ;;  %v352_v43 = vmul.f32 %v3588_v11, %v3606_v22  ;;  %v451_v44 = vmul.f32 %v3590_v12, %v3627_v38 }
  0x17   : > { %v496_v46 = vadd.f32 %v448_v28, %v396_v34  ;;  %v398_v47 = vadd.f32 %v350_v36, %v298_v35  ;;  %v452_v48 = vmul.f32 %v3590_v12, %v3635_v41  ;;  %v301_v49 = vmul.f32 %v3586_v10, %v230_v31 }
  0x18   : > { %v497_v50 = vadd.f32 %v449_v29, %v397_v40  ;;  %v399_v52 = vadd.f32 %v351_v42, %v299_v26  ;;  %v400_v53 = vadd.f32 %v352_v43, %v300_v33  ;;  %v353_v55 = vmul.f32 %v3588_v11, %v3619_v32 }
  0x19   : > { %v3661_v56 = vadd.f32 %v496_v46, %v3632_v39  ;;  %v498_v57 = vadd.f32 %v450_v37, %v398_v47  ;;  %v453_v58 = vmul.f32 %v3590_v12, %v3656_v54  ;;  %v302_v59 = vmul.f32 %v3586_v10, %v231_v21 }
  0x1a   : > { %v3667_v60 = vadd.f32 %v497_v50, %v3645_v45  ;;  %v499_v61 = vadd.f32 %v451_v44, %v399_v52  ;;  %v500_v62 = vadd.f32 %v452_v48, %v400_v53  ;;  %v401_v63 = vadd.f32 %v353_v55, %v301_v49 }
  0x1b   : > { %v596_v0 = vmul.f32 %v3595_v16, %v3661_v56  ;;  %v632_v1 = vmul.f32 %v3597_v17, %v3661_v56  ;;  %v877_v2 = vmul.f32 %v3599_v18, %v3661_v56  ;;  %v3676_v4 = vadd.f32 %v498_v57, %v3653_v51 }
  0x1c   : > { %v633_v5 = vmul.f32 %v3597_v17, %v3667_v60  ;;  %v878_v6 = vmul.f32 %v3599_v18, %v3667_v60  ;;  %v597_v7 = vmul.f32 %v3595_v16, %v3667_v60  ;;  %v3685_v8 = vadd.f32 %v499_v61, %v3632_v39  ;;  %v3727_v61 = vld [vmem:[%s3584_s12 + $0x60] sm:$0xff] }
  0x1d   : > { %v729_v9 = vrot.slane %v632_v1, 1  ;;  %v974_v13 = vrot.slane %v877_v2, 2  ;;  %v634_v14 = vmul.f32 %v3597_v17, %v3676_v4  ;;  %v879_v15 = vmul.f32 %v3599_v18, %v3676_v4 }
  0x1e   : > { %v730_v20 = vrot.slane %v633_v5, 1  ;;  %v975_v21 = vrot.slane %v878_v6, 2  ;;  %v3692_v23 = vadd.f32 %v500_v62, %v3645_v45  ;;  %v598_v24 = vmul.f32 %v3595_v16, %v3685_v8  ;;  %v3730_v62 = vld [vmem:[%s3584_s12 + $0x68] sm:$0xff] }
  0x1f   : > { %v732_v25 = vrot.slane %v634_v14, 1  ;;  %v977_v26 = vrot.slane %v879_v15, 2  ;;  %v635_v27 = vmul.f32 %v3597_v17, %v3685_v8  ;;  %v880_v28 = vmul.f32 %v3599_v18, %v3685_v8  ;;  %v3746_v14 = vld [vmem:[%s3584_s12 + $0x70] sm:$0x3] }
  0x20   : > { %v731_v29 = vsel %vm728_vm0, %v729_v9, %v730_v20  ;;  %v976_v30 = vsel %vm973_vm1, %v974_v13, %v975_v21  ;;  %v636_v31 = vmul.f32 %v3597_v17, %v3692_v23  ;;  %v881_v33 = vmul.f32 %v3599_v18, %v3692_v23 }
  0x21   : > { %v841_v34 = vadd.f32 %v731_v29, %v596_v0  ;;  %v733_v35 = vsel %vm728_vm0, %v730_v20, %v732_v25  ;;  %v978_v36 = vsel %vm973_vm1, %v975_v21, %v977_v26  ;;  %v734_v37 = vrot.slane %v635_v27, 1 }
  0x22   : > { %v842_v40 = vadd.f32 %v733_v35, %v597_v7  ;;  %v735_v42 = vrot.slane %v636_v31, 1  ;;  %v979_v43 = vrot.slane %v880_v28, 2  ;;  %v980_v44 = vrot.slane %v881_v33, 2 }
  0x23   : > { %v1086_v46 = vadd.f32 %v976_v30, %v841_v34  ;;  %v501_v47 = vadd.f32 %v453_v58, %v401_v63  ;;  %v599_v48 = vmul.f32 %v3595_v16, %v3692_v23  ;;  %v303_v49 = vmul.f32 %v3586_v10, %v3606_v22 }
  0x24   : > { %v1087_v50 = vadd.f32 %v978_v36, %v842_v40  ;;  %v736_v52 = vsel %vm728_vm0, %v734_v37, %v735_v42  ;;  %v981_v53 = vsel %vm973_vm1, %v979_v43, %v980_v44  ;;  %v354_v55 = vmul.f32 %v3588_v11, %v3627_v38 }
  0x25   : > { %v1122_v57 = vadd.f32 %v3601_v19, %v1086_v46  ;;  %v843_v58 = vadd.f32 %v736_v52, %v598_v24  ;;  %v3724_v22 = vadd.f32 %v501_v47, %v3653_v51  ;;  %v355_v63 = vmul.f32 %v3588_v11, %v3635_v41 }
  0x26   : > { %v1123_v0 = vadd.f32 %v3601_v19, %v1087_v50  ;;  %v402_v1 = vadd.f32 %v354_v55, %v302_v59  ;;  %v454_v2 = vmul.f32 %v3590_v12, %v3727_v61  ;;  %v455_v5 = vmul.f32 %v3590_v12, %v3730_v62  ;;  %v3791_v55 = vld [vmem:[%s3584_s12 + $0x78] sm:$0xff] }
  0x27   : > { %1155 = vst.msk [vmem:[%s3716_s23] sm:$0xff] %vm1154_vm2, %v1122_v57  ;;  %v1088_v6 = vadd.f32 %v981_v53, %v843_v58  ;;  %v637_v7 = vmul.f32 %v3597_v17, %v3724_v22  ;;  %v882_v9 = vmul.f32 %v3599_v18, %v3724_v22  ;;  %v403_v13 = vadd.f32 %v355_v63, %v303_v49  ;;  %v3794_v57 = vld [vmem:[%s3584_s12 + $0x80] sm:$0xff] }
  0x28   : > { %1156 = vst.msk [vmem:[%s3716_s23 + $0x8] sm:$0xff] %vm1154_vm2, %v1123_v0  ;;  %v502_v59 = vadd.f32 %v454_v2, %v402_v1  ;;  %v304_v15 = vmul.f32 %v3586_v10, %v3619_v32  ;;  %v356_v20 = vmul.f32 %v3588_v11, %v3656_v54  ;;  %v456_v21 = vmul.f32 %v3590_v12, %v3746_v14 }
  0x29   : > { %v1124_v24 = vadd.f32 %v3601_v19, %v1088_v6  ;;  %v737_v25 = vrot.slane %v637_v7, 1  ;;  %v982_v26 = vrot.slane %v882_v9, 2  ;;  %v503_v27 = vadd.f32 %v455_v5, %v403_v13 }
  0x2a   : > { %v3758_v28 = vadd.f32 %v502_v59, %v3632_v39  ;;  %v404_v29 = vadd.f32 %v356_v20, %v304_v15  ;;  %v305_v30 = vmul.f32 %v3586_v10, %v3627_v38  ;;  %v306_v32 = vmul.f32 %v3586_v10, %v3635_v41  ;;  %v3810_v20 = vld [vmem:[%s3584_s12 + $0x88] sm:$0x3] }
  0x2b   : > { %1157 = vst.msk [vmem:[%s3716_s23 + $0x10] sm:$0xff] %vm1154_vm2, %v1124_v24  ;;  %v738_v31 = vsel %vm728_vm0, %v735_v42, %v737_v25  ;;  %v983_v33 = vsel %vm973_vm1, %v980_v44, %v982_v26  ;;  %v3769_v34 = vadd.f32 %v503_v27, %v3645_v45  ;;  %v357_v35 = vmul.f32 %v3588_v11, %v3727_v61 }
  0x2c   : > { %v844_v36 = vadd.f32 %v738_v31, %v599_v48  ;;  %v600_v38 = vmul.f32 %v3595_v16, %v3758_v28  ;;  %v638_v41 = vmul.f32 %v3597_v17, %v3758_v28  ;;  %v883_v37 = vmul.f32 %v3599_v18, %v3758_v28 }
  0x2d   : > { %v639_v40 = vmul.f32 %v3597_v17, %v3769_v34  ;;  %v884_v42 = vmul.f32 %v3599_v18, %v3769_v34  ;;  %v504_v43 = vadd.f32 %v456_v21, %v404_v29  ;;  %v601_v44 = vmul.f32 %v3595_v16, %v3769_v34 }
  0x2e   : > { %v1089_v46 = vadd.f32 %v983_v33, %v844_v36  ;;  %v739_v47 = vrot.slane %v638_v41, 1  ;;  %v984_v48 = vrot.slane %v883_v37, 2  ;;  %v358_v49 = vmul.f32 %v3588_v11, %v3730_v62 }
  0x2f   : > { %v740_v50 = vrot.slane %v639_v40, 1  ;;  %v985_v52 = vrot.slane %v884_v42, 2  ;;  %v3788_v53 = vadd.f32 %v504_v43, %v3653_v51  ;;  %v405_v58 = vadd.f32 %v357_v35, %v305_v30 }
  0x30   : > { %v1125_v63 = vadd.f32 %v3601_v19, %v1089_v46  ;;  %v406_v0 = vadd.f32 %v358_v49, %v306_v32  ;;  %v457_v1 = vmul.f32 %v3590_v12, %v3791_v55  ;;  %v458_v2 = vmul.f32 %v3590_v12, %v3794_v57 }
  0x31   : > { %v741_v5 = vsel %vm728_vm0, %v739_v47, %v740_v50  ;;  %v986_v6 = vsel %vm973_vm1, %v984_v48, %v985_v52  ;;  %v640_v7 = vmul.f32 %v3597_v17, %v3788_v53  ;;  %v885_v9 = vmul.f32 %v3599_v18, %v3788_v53 }
  0x32   : > { %1158 = vst.msk [vmem:[%s3716_s23 + $0x18] sm:$0xff] %vm1154_vm2, %v1125_v63  ;;  %v845_v13 = vadd.f32 %v741_v5, %v600_v38  ;;  %v505_v59 = vadd.f32 %v457_v1, %v405_v58  ;;  %v506_v15 = vadd.f32 %v458_v2, %v406_v0  ;;  %v307_v21 = vmul.f32 %v3586_v10, %v3656_v54  ;;  %v3851_v63 = vld [vmem:[%s3584_s12 + $0x90] sm:$0xff] }
  0x33   : > { %v742_v24 = vrot.slane %v640_v7, 1  ;;  %v987_v25 = vrot.slane %v885_v9, 2  ;;  %v359_v26 = vmul.f32 %v3588_v11, %v3746_v14  ;;  %v459_v27 = vmul.f32 %v3590_v12, %v3810_v20 }
  0x34   : > { %v1090_v29 = vadd.f32 %v986_v6, %v845_v13  ;;  %v3819_v30 = vadd.f32 %v505_v59, %v3632_v39  ;;  %v3822_v32 = vadd.f32 %v506_v15, %v3645_v45  ;;  %v308_v31 = vmul.f32 %v3586_v10, %v3727_v61  ;;  %v3865_v59 = vld [vmem:[%s3584_s12 + $0x98] sm:$0xff] }
  0x35   : > { %v743_v54 = vsel %vm728_vm0, %v740_v50, %v742_v24  ;;  %v988_v33 = vsel %vm973_vm1, %v985_v52, %v987_v25  ;;  %v407_v35 = vadd.f32 %v359_v26, %v307_v21  ;;  %v309_v36 = vmul.f32 %v3586_v10, %v3730_v62 }
  0x36   : > { %v1126_v38 = vadd.f32 %v3601_v19, %v1090_v29  ;;  %v846_v41 = vadd.f32 %v743_v54, %v601_v44  ;;  %v602_v37 = vmul.f32 %v3595_v16, %v3819_v30  ;;  %v641_v40 = vmul.f32 %v3597_v17, %v3819_v30  ;;  %v3872_v29 = vld [vmem:[%s3584_s12 + $0xa0] sm:$0x3] }
  0x37   : > { %v642_v61 = vmul.f32 %v3597_v17, %v3822_v32  ;;  %v886_v42 = vmul.f32 %v3599_v18, %v3819_v30  ;;  %v887_v43 = vmul.f32 %v3599_v18, %v3822_v32  ;;  %v507_v62 = vadd.f32 %v459_v27, %v407_v35 }
  0x38   : > { %1159 = vst.msk [vmem:[%s3716_s23 + $0x20] sm:$0xff] %vm1154_vm2, %v1126_v38  ;;  %v1091_v44 = vadd.f32 %v988_v33, %v846_v41  ;;  %v744_v46 = vrot.slane %v641_v40, 1  ;;  %v603_v47 = vmul.f32 %v3595_v16, %v3822_v32  ;;  %v360_v48 = vmul.f32 %v3588_v11, %v3791_v55 }
  0x39   : > { %v745_v49 = vrot.slane %v642_v61, 1  ;;  %v989_v50 = vrot.slane %v886_v42, 2  ;;  %v990_v52 = vrot.slane %v887_v43, 2  ;;  %v3848_v58 = vadd.f32 %v507_v62, %v3653_v51 }
  0x3a   : > { %v1127_v0 = vadd.f32 %v3601_v19, %v1091_v44  ;;  %v361_v1 = vmul.f32 %v3588_v11, %v3794_v57  ;;  %v408_v2 = vadd.f32 %v360_v48, %v308_v31  ;;  %v460_v5 = vmul.f32 %v3590_v12, %v3851_v63 }
  0x3b   : > { %v746_v6 = vsel %vm728_vm0, %v744_v46, %v745_v49  ;;  %v991_v7 = vsel %vm973_vm1, %v989_v50, %v990_v52  ;;  %v643_v9 = vmul.f32 %v3597_v17, %v3848_v58  ;;  %v888_v13 = vmul.f32 %v3599_v18, %v3848_v58 }
  0x3c   : > { %1160 = vst.msk [vmem:[%s3716_s23 + $0x28] sm:$0xff] %vm1154_vm2, %v1127_v0  ;;  %v847_v15 = vadd.f32 %v746_v6, %v602_v37  ;;  %v409_v21 = vadd.f32 %v361_v1, %v309_v36  ;;  %v461_v24 = vmul.f32 %v3590_v12, %v3865_v59  ;;  %v508_v25 = vadd.f32 %v460_v5, %v408_v2 }
  0x3d   : > { %v747_v26 = vrot.slane %v643_v9, 1  ;;  %v992_v27 = vrot.slane %v888_v13, 2  ;;  %v310_v31 = vmul.f32 %v3586_v10, %v3746_v14  ;;  %v362_v54 = vmul.f32 %v3588_v11, %v3810_v20  ;;  %v3914_v9 = vld [vmem:[%s3584_s12 + $0xa8] sm:$0xff] }
  0x3e   : > { %v1092_v33 = vadd.f32 %v991_v7, %v847_v15  ;;  %v509_v35 = vadd.f32 %v461_v24, %v409_v21  ;;  %v3879_v38 = vadd.f32 %v508_v25, %v3632_v39  ;;  %v462_v36 = vmul.f32 %v3590_v12, %v3872_v29  ;;  %v3923_v24 = vld [vmem:[%s3584_s12 + $0xb0] sm:$0xff] }
  0x3f   : > { %v748_v41 = vsel %vm728_vm0, %v745_v49, %v747_v26  ;;  %v993_v37 = vsel %vm973_vm1, %v990_v52, %v992_v27  ;;  %v410_v40 = vadd.f32 %v362_v54, %v310_v31  ;;  %v311_v14 = vmul.f32 %v3586_v10, %v3791_v55 }
  0x40   : > { %v1128_v61 = vadd.f32 %v3601_v19, %v1092_v33  ;;  %v848_v42 = vadd.f32 %v748_v41, %v603_v47  ;;  %v3889_v43 = vadd.f32 %v509_v35, %v3645_v45  ;;  %v604_v62 = vmul.f32 %v3595_v16, %v3879_v38 }
  0x41   : > { %v644_v44 = vmul.f32 %v3597_v17, %v3879_v38  ;;  %v889_v46 = vmul.f32 %v3599_v18, %v3879_v38  ;;  %v510_v48 = vadd.f32 %v462_v36, %v410_v40  ;;  %v312_v55 = vmul.f32 %v3586_v10, %v3794_v57  ;;  %v3934_v40 = vld [vmem:[%s3584_s12 + $0xb8] sm:$0x3] }
  0x42   : > { %1161 = vst.msk [vmem:[%s3716_s23 + $0x30] sm:$0xff] %vm1154_vm2, %v1128_v61  ;;  %v1093_v47 = vadd.f32 %v993_v37, %v848_v42  ;;  %v645_v49 = vmul.f32 %v3597_v17, %v3889_v43  ;;  %v890_v50 = vmul.f32 %v3599_v18, %v3889_v43  ;;  %v605_v52 = vmul.f32 %v3595_v16, %v3889_v43 }
  0x43   : > { %v749_v0 = vrot.slane %v644_v44, 1  ;;  %v994_v1 = vrot.slane %v889_v46, 2  ;;  %v3908_v2 = vadd.f32 %v510_v48, %v3653_v51  ;;  %v363_v57 = vmul.f32 %v3588_v11, %v3851_v63 }
  0x44   : > { %v1129_v5 = vadd.f32 %v3601_v19, %v1093_v47  ;;  %v750_v6 = vrot.slane %v645_v49, 1  ;;  %v995_v7 = vrot.slane %v890_v50, 2  ;;  %v364_v13 = vmul.f32 %v3588_v11, %v3865_v59 }
  0x45   : > { %v646_v15 = vmul.f32 %v3597_v17, %v3908_v2  ;;  %v891_v21 = vmul.f32 %v3599_v18, %v3908_v2  ;;  %v411_v25 = vadd.f32 %v363_v57, %v311_v14  ;;  %v463_v26 = vmul.f32 %v3590_v12, %v3914_v9 }
  0x46   : > { %1162 = vst.msk [vmem:[%s3716_s23 + $0x38] sm:$0xff] %vm1154_vm2, %v1129_v5  ;;  %v751_v27 = vsel %vm728_vm0, %v749_v0, %v750_v6  ;;  %v996_v31 = vsel %vm973_vm1, %v994_v1, %v995_v7  ;;  %v412_v54 = vadd.f32 %v364_v13, %v312_v55  ;;  %v464_v33 = vmul.f32 %v3590_v12, %v3923_v24 }
  0x47   : > { %v849_v35 = vadd.f32 %v751_v27, %v604_v62  ;;  %v752_v36 = vrot.slane %v646_v15, 1  ;;  %v997_v41 = vrot.slane %v891_v21, 2  ;;  %v511_v37 = vadd.f32 %v463_v26, %v411_v25 }
  0x48   : > { %v512_v14 = vadd.f32 %v464_v33, %v412_v54  ;;  %v313_v61 = vmul.f32 %v3586_v10, %v3810_v20  ;;  %v365_v42 = vmul.f32 %v3588_v11, %v3872_v29  ;;  %v465_v44 = vmul.f32 %v3590_v12, %v3934_v40  ;;  %v3974_v33 = vld [vmem:[%s3584_s12 + $0xc0] sm:$0xff] }
  0x49   : > { %v1094_v46 = vadd.f32 %v996_v31, %v849_v35  ;;  %v753_v48 = vsel %vm728_vm0, %v750_v6, %v752_v36  ;;  %v998_v62 = vsel %vm973_vm1, %v995_v7, %v997_v41  ;;  %v3945_v55 = vadd.f32 %v511_v37, %v3632_v39  ;;  %v3977_v35 = vld [vmem:[%s3584_s12 + $0xc8] sm:$0xff] }
  0x4a   : > { %v850_v47 = vadd.f32 %v753_v48, %v605_v52  ;;  %v3948_v49 = vadd.f32 %v512_v14, %v3645_v45  ;;  %v413_v20 = vadd.f32 %v365_v42, %v313_v61  ;;  %v314_v50 = vmul.f32 %v3586_v10, %v3851_v63 }
  0x4b   : > { %v1130_v0 = vadd.f32 %v3601_v19, %v1094_v46  ;;  %v606_v1 = vmul.f32 %v3595_v16, %v3945_v55  ;;  %v647_v57 = vmul.f32 %v3597_v17, %v3945_v55  ;;  %v892_v52 = vmul.f32 %v3599_v18, %v3945_v55 }
  0x4c   : > { %v1095_v5 = vadd.f32 %v998_v62, %v850_v47  ;;  %v648_v6 = vmul.f32 %v3597_v17, %v3948_v49  ;;  %v893_v63 = vmul.f32 %v3599_v18, %v3948_v49  ;;  %v513_v7 = vadd.f32 %v465_v44, %v413_v20  ;;  %v3996_v47 = vld [vmem:[%s3584_s12 + $0xd0] sm:$0x3] }
  0x4d   : > { %1163 = vst.msk [vmem:[%s3716_s23 + $0x40] sm:$0xff] %vm1154_vm2, %v1130_v0  ;;  %v754_v13 = vrot.slane %v647_v57, 1  ;;  %v999_v15 = vrot.slane %v892_v52, 2  ;;  %v607_v21 = vmul.f32 %v3595_v16, %v3948_v49  ;;  %v315_v25 = vmul.f32 %v3586_v10, %v3865_v59 }
  0x4e   : > { %v1131_v26 = vadd.f32 %v3601_v19, %v1095_v5  ;;  %v755_v27 = vrot.slane %v648_v6, 1  ;;  %v1000_v31 = vrot.slane %v893_v63, 2  ;;  %v3971_v54 = vadd.f32 %v513_v7, %v3653_v51 }
  0x4f   : > { %v366_v36 = vmul.f32 %v3588_v11, %v3914_v9  ;;  %v367_v41 = vmul.f32 %v3588_v11, %v3923_v24  ;;  %v466_v59 = vmul.f32 %v3590_v12, %v3974_v33  ;;  %v467_v37 = vmul.f32 %v3590_v12, %v3977_v35 }
  0x50   : > { %1164 = vst.msk [vmem:[%s3716_s23 + $0x48] sm:$0xff] %vm1154_vm2, %v1131_v26  ;;  %v756_v14 = vsel %vm728_vm0, %v754_v13, %v755_v27  ;;  %v1001_v61 = vsel %vm973_vm1, %v999_v15, %v1000_v31  ;;  %v649_v42 = vmul.f32 %v3597_v17, %v3971_v54  ;;  %v894_v44 = vmul.f32 %v3599_v18, %v3971_v54 }
  0x51   : > { %v851_v46 = vadd.f32 %v756_v14, %v606_v1  ;;  %v414_v48 = vadd.f32 %v366_v36, %v314_v50  ;;  %v415_v62 = vadd.f32 %v367_v41, %v315_v25  ;;  %v316_v20 = vmul.f32 %v3586_v10, %v3872_v29 }
  0x52   : > { %v757_v0 = vrot.slane %v649_v42, 1  ;;  %v1002_v57 = vrot.slane %v894_v44, 2  ;;  %v368_v52 = vmul.f32 %v3588_v11, %v3934_v40  ;;  %v468_v5 = vmul.f32 %v3590_v12, %v3996_v47 }
  0x53   : > { %v1096_v6 = vadd.f32 %v1001_v61, %v851_v46  ;;  %v514_v63 = vadd.f32 %v466_v59, %v414_v48  ;;  %v515_v1 = vadd.f32 %v467_v37, %v415_v62  ;;  %v317_v50 = vmul.f32 %v3586_v10, %v3914_v9  ;;  %v4018_v59 = vld [vmem:[%s3584_s12 + $0xd8] sm:$0xff] }
  0x54   : > { %v758_v7 = vsel %vm728_vm0, %v755_v27, %v757_v0  ;;  %v1003_v29 = vsel %vm973_vm1, %v1000_v31, %v1002_v57  ;;  %v416_v13 = vadd.f32 %v368_v52, %v316_v20  ;;  %v318_v15 = vmul.f32 %v3586_v10, %v3923_v24 }
  0x55   : > { %v1132_v25 = vadd.f32 %v3601_v19, %v1096_v6  ;;  %v852_v26 = vadd.f32 %v758_v7, %v607_v21  ;;  %v4012_v36 = vadd.f32 %v514_v63, %v3632_v39  ;;  %v4015_v41 = vadd.f32 %v515_v1, %v3645_v45  ;;  %v4049_v1 = vld [vmem:[%s3584_s12 + $0xe0] sm:$0xff] }
  0x56   : > { %v516_v9 = vadd.f32 %v468_v5, %v416_v13  ;;  %v369_v27 = vmul.f32 %v3588_v11, %v3974_v33  ;;  %v370_v31 = vmul.f32 %v3588_v11, %v3977_v35  ;;  %v469_v24 = vmul.f32 %v3590_v12, %v4018_v59 }
  0x57   : > { %1165 = vst.msk [vmem:[%s3716_s23 + $0x50] sm:$0xff] %vm1154_vm2, %v1132_v25  ;;  %v1097_v21 = vadd.f32 %v1003_v29, %v852_v26  ;;  %v608_v37 = vmul.f32 %v3595_v16, %v4012_v36  ;;  %v650_v14 = vmul.f32 %v3597_v17, %v4012_v36  ;;  %v651_v61 = vmul.f32 %v3597_v17, %v4015_v41 }
  0x58   : > { %v895_v42 = vmul.f32 %v3599_v18, %v4012_v36  ;;  %v896_v44 = vmul.f32 %v3599_v18, %v4015_v41  ;;  %v4039_v46 = vadd.f32 %v516_v9, %v3653_v51  ;;  %v609_v48 = vmul.f32 %v3595_v16, %v4015_v41 }
  0x59   : > { %v1133_v62 = vadd.f32 %v3601_v19, %v1097_v21  ;;  %v759_v20 = vrot.slane %v650_v14, 1  ;;  %v760_v0 = vrot.slane %v651_v61, 1  ;;  %v417_v57 = vadd.f32 %v369_v27, %v317_v50  ;;  %v4061_v61 = vld [vmem:[%s3584_s12 + $0xe8] sm:$0x3] }
  0x5a   : > { %v1004_v52 = vrot.slane %v895_v42, 2  ;;  %v1005_v5 = vrot.slane %v896_v44, 2  ;;  %v652_v6 = vmul.f32 %v3597_v17, %v4039_v46  ;;  %v897_v63 = vmul.f32 %v3599_v18, %v4039_v46 }
  0x5b   : > { %1166 = vst.msk [vmem:[%s3716_s23 + $0x58] sm:$0xff] %vm1154_vm2, %v1133_v62  ;;  %v761_v7 = vsel %vm728_vm0, %v759_v20, %v760_v0  ;;  %v418_v29 = vadd.f32 %v370_v31, %v318_v15  ;;  %v470_v13 = vmul.f32 %v3590_v12, %v4049_v1  ;;  %v517_v50 = vadd.f32 %v469_v24, %v417_v57 }
  0x5c   : > { %v853_v25 = vadd.f32 %v761_v7, %v608_v37  ;;  %v1006_v26 = vsel %vm973_vm1, %v1004_v52, %v1005_v5  ;;  %v762_v9 = vrot.slane %v652_v6, 1  ;;  %v1007_v27 = vrot.slane %v897_v63, 2 }
  0x5d   : > { %v518_v21 = vadd.f32 %v470_v13, %v418_v29  ;;  %v4058_v14 = vadd.f32 %v517_v50, %v3632_v39  ;;  %v319_v42 = vmul.f32 %v3586_v10, %v3934_v40  ;;  %v371_v15 = vmul.f32 %v3588_v11, %v3996_v47 }
  0x5e   : > { %v1098_v31 = vadd.f32 %v1006_v26, %v853_v25  ;;  %v763_v24 = vsel %vm728_vm0, %v760_v0, %v762_v9  ;;  %v1008_v37 = vsel %vm973_vm1, %v1005_v5, %v1007_v27  ;;  %v471_v44 = vmul.f32 %v3590_v12, %v4061_v61 }
  0x5f   : > { %6606 = vst [vmem:[#allocation2_spill] sm:$0xff] %v4058_v14  ;;  %v854_v62 = vadd.f32 %v763_v24, %v609_v48  ;;  %v4072_v20 = vadd.f32 %v518_v21, %v3645_v45  ;;  %v610_v57 = vmul.f32 %v3595_v16, %v4058_v14  ;;  %v653_v40 = vmul.f32 %v3597_v17, %v4058_v14  ;;  %v4095_v21 = vld [vmem:[%s3584_s12 + $0xf0] sm:$0xff] }
  0x60   : > { %v1134_v52 = vadd.f32 %v3601_v19, %v1098_v31  ;;  %v898_v0 = vmul.f32 %v3599_v18, %v4058_v14  ;;  %v419_v5 = vadd.f32 %v371_v15, %v319_v42  ;;  %v320_v48 = vmul.f32 %v3586_v10, %v3974_v33  ;;  %v4098_v42 = vld [vmem:[%s3584_s12 + $0xf8] sm:$0xff] }
  0x61   : > { %6607 = vst [vmem:[#allocation3_spill] sm:$0xff] %v4072_v20  ;;  %v1099_v6 = vadd.f32 %v1008_v37, %v854_v62  ;;  %v654_v63 = vmul.f32 %v3597_v17, %v4072_v20  ;;  %v764_v7 = vrot.slane %v653_v40, 1  ;;  %v899_v29 = vmul.f32 %v3599_v18, %v4072_v20 }
  0x62   : > { %1167 = vst.msk [vmem:[%s3716_s23 + $0x60] sm:$0xff] %vm1154_vm2, %v1134_v52  ;;  %v1009_v13 = vrot.slane %v898_v0, 2  ;;  %v519_v50 = vadd.f32 %v471_v44, %v419_v5  ;;  %v611_v25 = vmul.f32 %v3595_v16, %v4072_v20  ;;  %v321_v26 = vmul.f32 %v3586_v10, %v3977_v35 }
  0x63   : > { %v1135_v33 = vadd.f32 %v3601_v19, %v1099_v6  ;;  %v765_v9 = vrot.slane %v654_v63, 1  ;;  %v1010_v27 = vrot.slane %v899_v29, 2  ;;  %v372_v15 = vmul.f32 %v3588_v11, %v4018_v59  ;;  %v4122_v29 = vld [vmem:[%s3584_s12 + $0x100] sm:$0x3] }
  0x64   : > { %v4103_v31 = vadd.f32 %v519_v50, %v3653_v51  ;;  %v373_v24 = vmul.f32 %v3588_v11, %v4049_v1  ;;  %v472_v35 = vmul.f32 %v3590_v12, %v4095_v21  ;;  %v473_v37 = vmul.f32 %v3590_v12, %v4098_v42 }
  0x65   : > { %1168 = vst.msk [vmem:[%s3716_s23 + $0x68] sm:$0xff] %vm1154_vm2, %v1135_v33  ;;  %v766_v44 = vsel %vm728_vm0, %v764_v7, %v765_v9  ;;  %v1011_v62 = vsel %vm973_vm1, %v1009_v13, %v1010_v27  ;;  %v420_v40 = vadd.f32 %v372_v15, %v320_v48  ;;  %v322_v52 = vmul.f32 %v3586_v10, %v3996_v47 }
  0x66   : > { %6608 = vst [vmem:[#allocation4_spill] sm:$0xff] %v4103_v31  ;;  %v855_v0 = vadd.f32 %v766_v44, %v610_v57  ;;  %v655_v5 = vmul.f32 %v3597_v17, %v4103_v31  ;;  %v900_v6 = vmul.f32 %v3599_v18, %v4103_v31  ;;  %v421_v63 = vadd.f32 %v373_v24, %v321_v26 }
  0x67   : > { %v520_v50 = vadd.f32 %v472_v35, %v420_v40  ;;  %v374_v7 = vmul.f32 %v3588_v11, %v4061_v61  ;;  %v474_v48 = vmul.f32 %v3590_v12, %v4122_v29  ;;  %v323_v47 = vmul.f32 %v3586_v10, %v4018_v59 }
  0x68   : > { %v1100_v57 = vadd.f32 %v1011_v62, %v855_v0  ;;  %v767_v13 = vrot.slane %v655_v5, 1  ;;  %v1012_v33 = vrot.slane %v900_v6, 2  ;;  %v521_v15 = vadd.f32 %v473_v37, %v421_v63 }
  0x69   : > { %v4131_v44 = vadd.f32 %v520_v50, %v3632_v39  ;;  %v422_v26 = vadd.f32 %v374_v7, %v322_v52  ;;  %v324_v24 = vmul.f32 %v3586_v10, %v4049_v1  ;;  %v375_v35 = vmul.f32 %v3588_v11, %v4095_v21 }
  0x6a   : > { %v1136_v40 = vadd.f32 %v3601_v19, %v1100_v57  ;;  %v768_v31 = vsel %vm728_vm0, %v765_v9, %v767_v13  ;;  %v1013_v59 = vsel %vm973_vm1, %v1010_v27, %v1012_v33  ;;  %v4141_v62 = vadd.f32 %v521_v15, %v3645_v45  ;;  %v4163_v33 = vld [vmem:[%s3584_s12 + $0x108] sm:$0xff]  ;;  %v4166_v15 = vld [vmem:[%s3584_s12 + $0x110] sm:$0xff] }
  0x6b   : > { %6609 = vst [vmem:[#allocation5_spill] sm:$0xff] %v4131_v44  ;;  %v856_v37 = vadd.f32 %v768_v31, %v611_v25  ;;  %v612_v52 = vmul.f32 %v3595_v16, %v4131_v44  ;;  %v656_v1 = vmul.f32 %v3597_v17, %v4131_v44  ;;  %v901_v0 = vmul.f32 %v3599_v18, %v4131_v44 }
  0x6c   : > { %6610 = vst [vmem:[#allocation6_spill] sm:$0xff] %v4141_v62  ;;  %1169 = vst.msk [vmem:[%s3716_s23 + $0x70] sm:$0xff] %vm1154_vm2, %v1136_v40  ;;  %v657_v9 = vmul.f32 %v3597_v17, %v4141_v62  ;;  %v902_v27 = vmul.f32 %v3599_v18, %v4141_v62  ;;  %v522_v25 = vadd.f32 %v474_v48, %v422_v26 }
  0x6d   : > { %v613_v31 = vmul.f32 %v3595_v16, %v4141_v62  ;;  %v1101_v5 = vadd.f32 %v1013_v59, %v856_v37  ;;  %v769_v6 = vrot.slane %v656_v1, 1  ;;  %v1014_v63 = vrot.slane %v901_v0, 2 }
  0x6e   : > { %v376_v50 = vmul.f32 %v3588_v11, %v4098_v42  ;;  %v770_v7 = vrot.slane %v657_v9, 1  ;;  %v1015_v57 = vrot.slane %v902_v27, 2  ;;  %v4160_v13 = vadd.f32 %v522_v25, %v3653_v51  ;;  %v4182_v25 = vld [vmem:[%s3584_s12 + $0x118] sm:$0x3] }
  0x6f   : > { %v423_v48 = vadd.f32 %v375_v35, %v323_v47  ;;  %v1137_v26 = vadd.f32 %v3601_v19, %v1101_v5  ;;  %v475_v59 = vmul.f32 %v3590_v12, %v4163_v33  ;;  %v476_v37 = vmul.f32 %v3590_v12, %v4166_v15 }
  0x70   : > { %6611 = vst [vmem:[#allocation7_spill] sm:$0xff] %v4160_v13  ;;  %v424_v40 = vadd.f32 %v376_v50, %v324_v24  ;;  %v771_v1 = vsel %vm728_vm0, %v769_v6, %v770_v7  ;;  %v1016_v0 = vsel %vm973_vm1, %v1014_v63, %v1015_v57  ;;  %v658_v9 = vmul.f32 %v3597_v17, %v4160_v13 }
  0x71   : > { %v903_v27 = vmul.f32 %v3599_v18, %v4160_v13  ;;  %1170 = vst.msk [vmem:[%s3716_s23 + $0x78] sm:$0xff] %vm1154_vm2, %v1137_v26  ;;  %v857_v47 = vadd.f32 %v771_v1, %v612_v52  ;;  %v523_v24 = vadd.f32 %v475_v59, %v423_v48  ;;  %v325_v5 = vmul.f32 %v3586_v10, %v4061_v61 }
  0x72   : > { %v524_v35 = vadd.f32 %v476_v37, %v424_v40  ;;  %v772_v50 = vrot.slane %v658_v9, 1  ;;  %v377_v63 = vmul.f32 %v3588_v11, %v4122_v29  ;;  %v477_v62 = vmul.f32 %v3590_v12, %v4182_v25 }
  0x73   : > { %v1017_v6 = vrot.slane %v903_v27, 2  ;;  %v1102_v44 = vadd.f32 %v1016_v0, %v857_v47  ;;  %v4191_v26 = vadd.f32 %v523_v24, %v3632_v39  ;;  %v326_v48 = vmul.f32 %v3586_v10, %v4095_v21 }
  0x74   : > { %v4194_v52 = vadd.f32 %v524_v35, %v3645_v45  ;;  %v773_v61 = vsel %vm728_vm0, %v770_v7, %v772_v50  ;;  %v425_v59 = vadd.f32 %v377_v63, %v325_v5  ;;  %v327_v37 = vmul.f32 %v3586_v10, %v4098_v42  ;;  %v4223_v63 = vld [vmem:[%s3584_s12 + $0x120] sm:$0xff] }
  0x75   : > { %6612 = vst [vmem:[#allocation8_spill] sm:$0xff] %v4191_v26  ;;  %v1018_v40 = vsel %vm973_vm1, %v1015_v57, %v1017_v6  ;;  %v1138_v1 = vadd.f32 %v3601_v19, %v1102_v44  ;;  %v858_v0 = vadd.f32 %v773_v61, %v613_v31  ;;  %v614_v9 = vmul.f32 %v3595_v16, %v4191_v26 }
  0x76   : > { %6613 = vst [vmem:[#allocation9_spill] sm:$0xff] %v4194_v52  ;;  %v659_v27 = vmul.f32 %v3597_v17, %v4191_v26  ;;  %v660_v21 = vmul.f32 %v3597_v17, %v4194_v52  ;;  %v904_v7 = vmul.f32 %v3599_v18, %v4191_v26  ;;  %v905_v57 = vmul.f32 %v3599_v18, %v4194_v52 }
  0x77   : > { %v525_v42 = vadd.f32 %v477_v62, %v425_v59  ;;  %1171 = vst.msk [vmem:[%s3716_s23 + $0x80] sm:$0xff] %vm1154_vm2, %v1138_v1  ;;  %v1103_v44 = vadd.f32 %v1018_v40, %v858_v0  ;;  %v615_v47 = vmul.f32 %v3595_v16, %v4194_v52  ;;  %v378_v24 = vmul.f32 %v3588_v11, %v4163_v33  ;;  %v4244_v52 = vld [vmem:[%s3584_s12 + $0x130] sm:$0x3] }
  0x78   : > { %v774_v31 = vrot.slane %v659_v27, 1  ;;  %v775_v35 = vrot.slane %v660_v21, 1  ;;  %v1019_v5 = vrot.slane %v904_v7, 2  ;;  %v1020_v50 = vrot.slane %v905_v57, 2  ;;  %v4237_v7 = vld [vmem:[%s3584_s12 + $0x128] sm:$0xff] }
  0x79   : > { %v4220_v6 = vadd.f32 %v525_v42, %v3653_v51  ;;  %v1139_v62 = vadd.f32 %v3601_v19, %v1103_v44  ;;  %v379_v61 = vmul.f32 %v3588_v11, %v4166_v15  ;;  %v426_v40 = vadd.f32 %v378_v24, %v326_v48 }
  0x7a   : > { %v478_v59 = vmul.f32 %v3590_v12, %v4223_v63  ;;  %v776_v1 = vsel %vm728_vm0, %v774_v31, %v775_v35  ;;  %v1021_v0 = vsel %vm973_vm1, %v1019_v5, %v1020_v50  ;;  %v479_v48 = vmul.f32 %v3590_v12, %v4237_v7 }
  0x7b   : > { %6614 = vst [vmem:[#allocation10_spill] sm:$0xff] %v4220_v6  ;;  %v661_v27 = vmul.f32 %v3597_v17, %v4220_v6  ;;  %v906_v21 = vmul.f32 %v3599_v18, %v4220_v6  ;;  %1172 = vst.msk [vmem:[%s3716_s23 + $0x88] sm:$0xff] %vm1154_vm2, %v1139_v62  ;;  %v859_v57 = vadd.f32 %v776_v1, %v614_v9 }
  0x7c   : > { %v427_v42 = vadd.f32 %v379_v61, %v327_v37  ;;  %v526_v44 = vadd.f32 %v478_v59, %v426_v40  ;;  %v328_v5 = vmul.f32 %v3586_v10, %v4122_v29  ;;  %v380_v6 = vmul.f32 %v3588_v11, %v4182_v25 }
  0x7d   : > { %v777_v24 = vrot.slane %v661_v27, 1  ;;  %v1022_v31 = vrot.slane %v906_v21, 2  ;;  %v1104_v26 = vadd.f32 %v1021_v0, %v859_v57  ;;  %v480_v37 = vmul.f32 %v3590_v12, %v4244_v52 }
  0x7e   : > { %v527_v13 = vadd.f32 %v479_v48, %v427_v42  ;;  %v4251_v9 = vadd.f32 %v526_v44, %v3632_v39  ;;  %v428_v40 = vadd.f32 %v380_v6, %v328_v5  ;;  %v329_v29 = vmul.f32 %v3586_v10, %v4163_v33 }
  0x7f   : > { %v778_v62 = vsel %vm728_vm0, %v775_v35, %v777_v24  ;;  %v1023_v61 = vsel %vm973_vm1, %v1020_v50, %v1022_v31  ;;  %v1140_v59 = vadd.f32 %v3601_v19, %v1104_v26  ;;  %v330_v33 = vmul.f32 %v3586_v10, %v4166_v15  ;;  %v4286_v24 = vld [vmem:[%s3584_s12 + $0x138] sm:$0xff] }
  0x80   : > { %6615 = vst [vmem:[#allocation11_spill] sm:$0xff] %v4251_v9  ;;  %v860_v1 = vadd.f32 %v778_v62, %v615_v47  ;;  %v4261_v0 = vadd.f32 %v527_v13, %v3645_v45  ;;  %v616_v39 = vmul.f32 %v3595_v16, %v4251_v9  ;;  %v662_v27 = vmul.f32 %v3597_v17, %v4251_v9 }
  0x81   : > { %v907_v35 = vmul.f32 %v3599_v18, %v4251_v9  ;;  %v528_v50 = vadd.f32 %v480_v37, %v428_v40  ;;  %1173 = vst.msk [vmem:[%s3716_s23 + $0x90] sm:$0xff] %vm1154_vm2, %v1140_v59  ;;  %v381_v15 = vmul.f32 %v3588_v11, %v4223_v63  ;;  %v382_v31 = vmul.f32 %v3588_v11, %v4237_v7  ;;  %v4295_v37 = vld [vmem:[%s3584_s12 + $0x140] sm:$0xff] }
  0x82   : > { %6616 = vst [vmem:[#allocation12_spill] sm:$0xff] %v4261_v0  ;;  %v1105_v26 = vadd.f32 %v1023_v61, %v860_v1  ;;  %v663_v45 = vmul.f32 %v3597_v17, %v4261_v0  ;;  %v908_v13 = vmul.f32 %v3599_v18, %v4261_v0  ;;  %v617_v47 = vmul.f32 %v3595_v16, %v4261_v0 }
  0x83   : > { %v779_v6 = vrot.slane %v662_v27, 1  ;;  %v1024_v21 = vrot.slane %v907_v35, 2  ;;  %v4280_v57 = vadd.f32 %v528_v50, %v3653_v51  ;;  %v429_v62 = vadd.f32 %v381_v15, %v329_v29 }
  0x84   : > { %v1141_v42 = vadd.f32 %v3601_v19, %v1105_v26  ;;  %v780_v48 = vrot.slane %v663_v45, 1  ;;  %v1025_v44 = vrot.slane %v908_v13, 2  ;;  %v481_v61 = vmul.f32 %v3590_v12, %v4286_v24  ;;  %v4306_v13 = vld [vmem:[%s3584_s12 + $0x148] sm:$0x3] }
  0x85   : > { %6617 = vst [vmem:[#allocation13_spill] sm:$0xff] %v4280_v57  ;;  %v664_v5 = vmul.f32 %v3597_v17, %v4280_v57  ;;  %v909_v51 = vmul.f32 %v3599_v18, %v4280_v57  ;;  %v430_v1 = vadd.f32 %v382_v31, %v330_v33  ;;  %v482_v27 = vmul.f32 %v3590_v12, %v4295_v37  ;;  %v4319_v31 = vld [vmem:[%s6522_s2] sm:$0xff] }
  0x86   : > { %1174 = vst.msk [vmem:[%s3716_s23 + $0x98] sm:$0xff] %vm1154_vm2, %v1141_v42  ;;  %v781_v40 = vsel %vm728_vm0, %v779_v6, %v780_v48  ;;  %v1026_v59 = vsel %vm973_vm1, %v1024_v21, %v1025_v44  ;;  %v529_v45 = vadd.f32 %v481_v61, %v429_v62  ;;  %v331_v15 = vmul.f32 %v3586_v10, %v4182_v25  ;;  %v4383_v57 = vld [vmem:[%s3584_s12 + $0x160] sm:$0x3] }
  0x87   : > { %v861_v35 = vadd.f32 %v781_v40, %v616_v39  ;;  %v782_v50 = vrot.slane %v664_v5, 1  ;;  %v1027_v26 = vrot.slane %v909_v51, 2  ;;  %v530_v29 = vadd.f32 %v482_v27, %v430_v1  ;;  %v4327_v51 = vld [vmem:[%s6522_s2 + $0x8] sm:$0xff] }
  0x88   : > { %v383_v42 = vmul.f32 %v3588_v11, %v4244_v52  ;;  %v483_v6 = vmul.f32 %v3590_v12, %v4306_v13  ;;  %v4322_v5 = vadd.f32 %v4319_v31, %v529_v45  ;;  %v334_v0 = vmul.f32 %v3586_v10, %v4244_v52 }
  0x89   : > { %v1106_v33 = vadd.f32 %v1026_v59, %v861_v35  ;;  %v783_v21 = vsel %vm728_vm0, %v780_v48, %v782_v50  ;;  %v1028_v39 = vsel %vm973_vm1, %v1025_v44, %v1027_v26  ;;  %v4330_v62 = vadd.f32 %v4327_v51, %v530_v29 }
  0x8a   : > { %6618 = vst [vmem:[#allocation14_spill] sm:$0xff] %v4322_v5  ;;  %v862_v25 = vadd.f32 %v783_v21, %v617_v47  ;;  %v431_v48 = vadd.f32 %v383_v42, %v331_v15  ;;  %v332_v44 = vmul.f32 %v3586_v10, %v4223_v63  ;;  %v618_v40 = vmul.f32 %v3595_v16, %v4322_v5  ;;  %v4355_v21 = vld [vmem:[%s6522_s2 + $0x10] sm:$0x3] }
  0x8b   : > { %6619 = vst [vmem:[#allocation15_spill] sm:$0xff] %v4330_v62  ;;  %v1142_v61 = vadd.f32 %v3601_v19, %v1106_v33  ;;  %v665_v47 = vmul.f32 %v3597_v17, %v4322_v5  ;;  %v910_v59 = vmul.f32 %v3599_v18, %v4322_v5  ;;  %v666_v27 = vmul.f32 %v3597_v17, %v4330_v62 }
  0x8c   : > { %v1107_v1 = vadd.f32 %v1028_v39, %v862_v25  ;;  %v911_v63 = vmul.f32 %v3599_v18, %v4330_v62  ;;  %v531_v35 = vadd.f32 %v483_v6, %v431_v48  ;;  %v619_v45 = vmul.f32 %v3595_v16, %v4330_v62  ;;  %v4361_v39 = vld [vmem:[%s3584_s12 + $0x150] sm:$0xff]  ;;  %v4364_v25 = vld [vmem:[%s3584_s12 + $0x158] sm:$0xff] }
  0x8d   : > { %1175 = vst.msk [vmem:[%s3716_s23 + $0xa0] sm:$0xff] %vm1154_vm2, %v1142_v61  ;;  %v784_v50 = vrot.slane %v665_v47, 1  ;;  %v1029_v26 = vrot.slane %v910_v59, 2  ;;  %v333_v29 = vmul.f32 %v3586_v10, %v4237_v7  ;;  %v785_v42 = vrot.slane %v666_v27, 1 }
  0x8e   : > { %v1143_v15 = vadd.f32 %v3601_v19, %v1107_v1  ;;  %v1030_v33 = vrot.slane %v911_v63, 2  ;;  %v4358_v6 = vadd.f32 %v4355_v21, %v531_v35  ;;  %v384_v7 = vmul.f32 %v3588_v11, %v4286_v24 }
  0x8f   : > { %v385_v48 = vmul.f32 %v3588_v11, %v4295_v37  ;;  %v484_v61 = vmul.f32 %v3590_v12, %v4361_v39  ;;  %v485_v47 = vmul.f32 %v3590_v12, %v4364_v25  ;;  %v786_v59 = vsel %vm728_vm0, %v784_v50, %v785_v42 }
  0x90   : > { %1176 = vst.msk [vmem:[%s3716_s23 + $0xa8] sm:$0xff] %vm1154_vm2, %v1143_v15  ;;  %v1031_v1 = vsel %vm973_vm1, %v1029_v26, %v1030_v33  ;;  %v667_v27 = vmul.f32 %v3597_v17, %v4358_v6  ;;  %v912_v63 = vmul.f32 %v3599_v18, %v4358_v6  ;;  %v863_v35 = vadd.f32 %v786_v59, %v618_v40 }
  0x91   : > { %v432_v62 = vadd.f32 %v384_v7, %v332_v44  ;;  %v433_v5 = vadd.f32 %v385_v48, %v333_v29  ;;  %v386_v50 = vmul.f32 %v3588_v11, %v4306_v13  ;;  %v486_v26 = vmul.f32 %v3590_v12, %v4383_v57 }
  0x92   : > { %v787_v9 = vrot.slane %v667_v27, 1  ;;  %v1032_v15 = vrot.slane %v912_v63, 2  ;;  %v1108_v20 = vadd.f32 %v1031_v1, %v863_v35  ;;  %v335_v44 = vmul.f32 %v3586_v10, %v4286_v24 }
  0x93   : > { %v532_v14 = vadd.f32 %v484_v61, %v432_v62  ;;  %v533_v40 = vadd.f32 %v485_v47, %v433_v5  ;;  %v434_v7 = vadd.f32 %v386_v50, %v334_v0  ;;  %v336_v48 = vmul.f32 %v3586_v10, %v4295_v37  ;;  %v4405_v5 = vld [vmem:[%s3584_s12 + $0x168] sm:$0xff] }
  0x94   : > { %v788_v29 = vsel %vm728_vm0, %v785_v42, %v787_v9  ;;  %v1033_v52 = vsel %vm973_vm1, %v1030_v33, %v1032_v15  ;;  %v1144_v59 = vadd.f32 %v3601_v19, %v1108_v20  ;;  %v387_v9 = vmul.f32 %v3588_v11, %v4361_v39 }
  0x95   : > { %v864_v27 = vadd.f32 %v788_v29, %v619_v45  ;;  %v4399_v63 = vadd.f32 %v4319_v31, %v532_v14  ;;  %v4402_v62 = vadd.f32 %v4327_v51, %v533_v40  ;;  %v534_v24 = vadd.f32 %v486_v26, %v434_v7 }
  0x96   : > { %v388_v0 = vmul.f32 %v3588_v11, %v4364_v25  ;;  %v487_v37 = vmul.f32 %v3590_v12, %v4405_v5  ;;  %1177 = vst.msk [vmem:[%s3716_s23 + $0xb0] sm:$0xff] %vm1154_vm2, %v1144_v59  ;;  %v435_v26 = vadd.f32 %v387_v9, %v335_v44  ;;  %v4436_v59 = vld [vmem:[%s3584_s12 + $0x170] sm:$0xff] }
  0x97   : > { %6620 = vst [vmem:[#allocation16_spill] sm:$0xff] %v4402_v62  ;;  %v1109_v20 = vadd.f32 %v1033_v52, %v864_v27  ;;  %v620_v14 = vmul.f32 %v3595_v16, %v4399_v63  ;;  %v668_v45 = vmul.f32 %v3597_v17, %v4399_v63  ;;  %v669_v42 = vmul.f32 %v3597_v17, %v4402_v62 }
  0x98   : > { %v913_v33 = vmul.f32 %v3599_v18, %v4399_v63  ;;  %v914_v61 = vmul.f32 %v3599_v18, %v4402_v62  ;;  %v4426_v47 = vadd.f32 %v4355_v21, %v534_v24  ;;  %v621_v1 = vmul.f32 %v3595_v16, %v4402_v62 }
  0x99   : > { %v1145_v35 = vadd.f32 %v3601_v19, %v1109_v20  ;;  %v789_v15 = vrot.slane %v668_v45, 1  ;;  %v790_v50 = vrot.slane %v669_v42, 1  ;;  %v436_v24 = vadd.f32 %v388_v0, %v336_v48 }
  0x9a   : > { %6621 = vst [vmem:[#allocation17_spill] sm:$0xff] %v4426_v47  ;;  %v1034_v40 = vrot.slane %v913_v33, 2  ;;  %v1035_v29 = vrot.slane %v914_v61, 2  ;;  %v670_v52 = vmul.f32 %v3597_v17, %v4426_v47  ;;  %v915_v7 = vmul.f32 %v3599_v18, %v4426_v47  ;;  %v4448_v47 = vld [vmem:[%s3584_s12 + $0x178] sm:$0x3] }
  0x9b   : > { %1178 = vst.msk [vmem:[%s3716_s23 + $0xb8] sm:$0xff] %vm1154_vm2, %v1145_v35  ;;  %v791_v27 = vsel %vm728_vm0, %v789_v15, %v790_v50  ;;  %v488_v20 = vmul.f32 %v3590_v12, %v4436_v59  ;;  %v535_v44 = vadd.f32 %v487_v37, %v435_v26  ;;  %v337_v35 = vmul.f32 %v3586_v10, %v4306_v13 }
  0x9c   : > { %v865_v9 = vadd.f32 %v791_v27, %v620_v14  ;;  %v1036_v45 = vsel %vm973_vm1, %v1034_v40, %v1035_v29  ;;  %v792_v42 = vrot.slane %v670_v52, 1  ;;  %v1037_v33 = vrot.slane %v915_v7, 2 }
  0x9d   : > { %v536_v61 = vadd.f32 %v488_v20, %v436_v24  ;;  %v4445_v62 = vadd.f32 %v4319_v31, %v535_v44  ;;  %v389_v48 = vmul.f32 %v3588_v11, %v4383_v57  ;;  %v489_v15 = vmul.f32 %v3590_v12, %v4448_v47 }
  0x9e   : > { %v1110_v0 = vadd.f32 %v1036_v45, %v865_v9  ;;  %v793_v37 = vsel %vm728_vm0, %v790_v50, %v792_v42  ;;  %v1038_v14 = vsel %vm973_vm1, %v1035_v29, %v1037_v33  ;;  %v339_v33 = vmul.f32 %v3586_v10, %v4364_v25 }
  0x9f   : > { %6622 = vst [vmem:[#allocation18_spill] sm:$0xff] %v4445_v62  ;;  %v866_v26 = vadd.f32 %v793_v37, %v621_v1  ;;  %v4459_v40 = vadd.f32 %v4327_v51, %v536_v61  ;;  %v622_v52 = vmul.f32 %v3595_v16, %v4445_v62  ;;  %v671_v13 = vmul.f32 %v3597_v17, %v4445_v62 }
  0xa0   : > { %v1146_v7 = vadd.f32 %v3601_v19, %v1110_v0  ;;  %v916_v50 = vmul.f32 %v3599_v18, %v4445_v62  ;;  %v437_v29 = vadd.f32 %v389_v48, %v337_v35  ;;  %v338_v1 = vmul.f32 %v3586_v10, %v4361_v39  ;;  %v273_v48 = vld [vmem:[%s3584_s12 + $0x180] sm:$0xff]  ;;  %v274_v0 = vld [vmem:[%s3584_s12 + $0x188] sm:$0xff] }
  0xa1   : > { %6623 = vst [vmem:[#allocation19_spill] sm:$0xff] %v4459_v40  ;;  %v1111_v27 = vadd.f32 %v1038_v14, %v866_v26  ;;  %v672_v24 = vmul.f32 %v3597_v17, %v4459_v40  ;;  %v794_v20 = vrot.slane %v671_v13, 1  ;;  %v917_v44 = vmul.f32 %v3599_v18, %v4459_v40 }
  0xa2   : > { %1179 = vst.msk [vmem:[%s3716_s23 + $0xc0] sm:$0xff] %vm1154_vm2, %v1146_v7  ;;  %v1039_v9 = vrot.slane %v916_v50, 2  ;;  %v537_v45 = vadd.f32 %v489_v15, %v437_v29  ;;  %v623_v42 = vmul.f32 %v3595_v16, %v4459_v40  ;;  %v390_v37 = vmul.f32 %v3588_v11, %v4405_v5  ;;  %v275_v40 = vld [vmem:[%s3584_s12 + $0x190] sm:$0x3] }
  0xa3   : > { %v1147_v39 = vadd.f32 %v3601_v19, %v1111_v27  ;;  %v795_v61 = vrot.slane %v672_v24, 1  ;;  %v1040_v35 = vrot.slane %v917_v44, 2  ;;  %v391_v15 = vmul.f32 %v3588_v11, %v4436_v59 }
  0xa4   : > { %v4486_v14 = vadd.f32 %v4355_v21, %v537_v45  ;;  %v490_v26 = vmul.f32 %v3590_v12, %v273_v48  ;;  %v491_v25 = vmul.f32 %v3590_v12, %v274_v0  ;;  %v438_v50 = vadd.f32 %v390_v37, %v338_v1 }
  0xa5   : > { %1180 = vst.msk [vmem:[%s3716_s23 + $0xc8] sm:$0xff] %vm1154_vm2, %v1147_v39  ;;  %v796_v13 = vsel %vm728_vm0, %v794_v20, %v795_v61  ;;  %v1041_v7 = vsel %vm973_vm1, %v1039_v9, %v1040_v35  ;;  %v340_v29 = vmul.f32 %v3586_v10, %v4383_v57  ;;  %v439_v45 = vadd.f32 %v391_v15, %v339_v33 }
  0xa6   : > { %6624 = vst [vmem:[#allocation20_spill] sm:$0xff] %v4486_v14  ;;  %v867_v27 = vadd.f32 %v796_v13, %v622_v52  ;;  %v673_v24 = vmul.f32 %v3597_v17, %v4486_v14  ;;  %v918_v44 = vmul.f32 %v3599_v18, %v4486_v14  ;;  %v538_v62 = vadd.f32 %v490_v26, %v438_v50 }
  0xa7   : > { %v392_v39 = vmul.f32 %v3588_v11, %v4448_v47  ;;  %v492_v20 = vmul.f32 %v3590_v12, %v275_v40  ;;  %v341_v1 = vmul.f32 %v3586_v10, %v4405_v5  ;;  %v539_v37 = vadd.f32 %v491_v25, %v439_v45 }
  0xa8   : > { %v1112_v9 = vadd.f32 %v1041_v7, %v867_v27  ;;  %v797_v57 = vrot.slane %v673_v24, 1  ;;  %v1042_v52 = vrot.slane %v918_v44, 2  ;;  %v4509_v13 = vadd.f32 %v4319_v31, %v538_v62  ;;  %v276_v27 = vld [vmem:[%s3584_s12 + $0x198] sm:$0xff]  ;;  %v277_v24 = vld [vmem:[%s3584_s12 + $0x1a0] sm:$0xff] }
  0xa9   : > { %v440_v14 = vadd.f32 %v392_v39, %v340_v29  ;;  %v342_v33 = vmul.f32 %v3586_v10, %v4436_v59  ;;  %v393_v15 = vmul.f32 %v3588_v11, %v273_v48  ;;  %v4518_v50 = vadd.f32 %v4327_v51, %v539_v37 }
  0xaa   : > { %6625 = vst [vmem:[#allocation21_spill] sm:$0xff] %v4509_v13  ;;  %v1148_v26 = vadd.f32 %v3601_v19, %v1112_v9  ;;  %v798_v5 = vsel %vm728_vm0, %v795_v61, %v797_v57  ;;  %v1043_v7 = vsel %vm973_vm1, %v1040_v35, %v1042_v52  ;;  %v624_v62 = vmul.f32 %v3595_v16, %v4509_v13 }
  0xab   : > { %6626 = vst [vmem:[#allocation22_spill] sm:$0xff] %v4518_v50  ;;  %v868_v25 = vadd.f32 %v798_v5, %v623_v42  ;;  %v674_v29 = vmul.f32 %v3597_v17, %v4509_v13  ;;  %v919_v59 = vmul.f32 %v3599_v18, %v4509_v13  ;;  %v675_v61 = vmul.f32 %v3597_v17, %v4518_v50  ;;  %v278_v13 = vld [vmem:[%s3584_s12 + $0x1a8] sm:$0x3] }
  0xac   : > { %1181 = vst.msk [vmem:[%s3716_s23 + $0xd0] sm:$0xff] %vm1154_vm2, %v1148_v26  ;;  %v920_v35 = vmul.f32 %v3599_v18, %v4518_v50  ;;  %v540_v48 = vadd.f32 %v492_v20, %v440_v14  ;;  %v625_v42 = vmul.f32 %v3595_v16, %v4518_v50  ;;  %v394_v9 = vmul.f32 %v3588_v11, %v274_v0 }
  0xad   : > { %v1113_v44 = vadd.f32 %v1043_v7, %v868_v25  ;;  %v799_v45 = vrot.slane %v674_v29, 1  ;;  %v1044_v39 = vrot.slane %v919_v59, 2  ;;  %v800_v57 = vrot.slane %v675_v61, 1 }
  0xae   : > { %v1045_v52 = vrot.slane %v920_v35, 2  ;;  %v4538_v37 = vadd.f32 %v4355_v21, %v540_v48  ;;  %v441_v26 = vadd.f32 %v393_v15, %v341_v1  ;;  %v442_v20 = vadd.f32 %v394_v9, %v342_v33 }
  0xaf   : > { %v1149_v14 = vadd.f32 %v3601_v19, %v1113_v44  ;;  %v493_v5 = vmul.f32 %v3590_v12, %v276_v27  ;;  %v494_v50 = vmul.f32 %v3590_v12, %v277_v24  ;;  %v801_v7 = vsel %vm728_vm0, %v799_v45, %v800_v57 }
  0xb0   : > { %v1046_v25 = vsel %vm973_vm1, %v1044_v39, %v1045_v52  ;;  %v676_v0 = vmul.f32 %v3597_v17, %v4538_v37  ;;  %v921_v29 = vmul.f32 %v3599_v18, %v4538_v37  ;;  %v869_v1 = vadd.f32 %v801_v7, %v624_v62 }
  0xb1   : > { %1182 = vst.msk [vmem:[%s3716_s23 + $0xd8] sm:$0xff] %vm1154_vm2, %v1149_v14  ;;  %v541_v15 = vadd.f32 %v493_v5, %v441_v26  ;;  %v542_v33 = vadd.f32 %v494_v50, %v442_v20  ;;  %v343_v59 = vmul.f32 %v3586_v10, %v4448_v47  ;;  %v395_v48 = vmul.f32 %v3588_v11, %v275_v40  ;;  %v4586_v14 = vld [vmem:[%s6523_s3] sm:$0xf] }
  0xb2   : > { %v802_v61 = vrot.slane %v676_v0, 1  ;;  %v1047_v35 = vrot.slane %v921_v29, 2  ;;  %v495_v27 = vmul.f32 %v3590_v12, %v278_v13  ;;  %v1114_v24 = vadd.f32 %v1046_v25, %v869_v1  ;;  %v4600_v1 = vld [vmem:[%s6523_s3 + $0x4] sm:$0xf] }
  0xb3   : > { %v4557_v44 = vadd.f32 %v4319_v31, %v541_v15  ;;  %v4560_v45 = vadd.f32 %v4327_v51, %v542_v33  ;;  %v1189_v62 = vsub.s32 1, %v3562_v3  ;;  %v443_v47 = vadd.f32 %v395_v48, %v343_v59  ;;  %v4608_v33 = vld [vmem:[%s6523_s3 + $0x8] sm:$0xf] }
  0xb4   : > { %v803_v50 = vsel %vm728_vm0, %v800_v57, %v802_v61  ;;  %v1048_v10 = vsel %vm973_vm1, %v1045_v52, %v1047_v35  ;;  %v4566_v39 = vsub.s32 2, %v3562_v3  ;;  %v1150_v11 = vadd.f32 %v3601_v19, %v1114_v24 }
  0xb5   : > { %v870_v12 = vadd.f32 %v803_v50, %v625_v42  ;;  %v626_v31 = vmul.f32 %v3595_v16, %v4557_v44  ;;  %v677_v51 = vmul.f32 %v3597_v17, %v4557_v44  ;;  %v678_v40 = vmul.f32 %v3597_v17, %v4560_v45 }
  0xb6   : > { %v922_v13 = vmul.f32 %v3599_v18, %v4557_v44  ;;  %v923_v9 = vmul.f32 %v3599_v18, %v4560_v45  ;;  %v543_v57 = vadd.f32 %v495_v27, %v443_v47  ;;  %1183 = vst.msk [vmem:[%s3716_s23 + $0xe0] sm:$0xff] %vm1154_vm2, %v1150_v11  ;;  %v627_v26 = vmul.f32 %v3595_v16, %v4560_v45 }
  0xb7   : > { %v1115_v52 = vadd.f32 %v1048_v10, %v870_v12  ;;  %v804_v42 = vrot.slane %v677_v51, 1  ;;  %v4589_v20 = vrot.slane %v4586_v14, %v1189_v62  ;;  %v805_v5 = vrot.slane %v678_v40, 1 }
  0xb8   : > { %v1049_v7 = vrot.slane %v922_v13, 2  ;;  %v1050_v25 = vrot.slane %v923_v9, 2  ;;  %v4592_v0 = vadd.f32 %v4355_v21, %v543_v57  ;;  %v4603_v15 = vrot.slane %v4600_v1, %v1189_v62 }
  0xb9   : > { %v1151_v29 = vadd.f32 %v3601_v19, %v1115_v52  ;;  %v1191_v16 = vmul.f32 %v4589_v20, %v3661_v56  ;;  %v4611_v21 = vrot.slane %v4608_v33, %v1189_v62  ;;  %v806_v59 = vsel %vm728_vm0, %v804_v42, %v805_v5  ;;  %v3444_v52 = vld [vmem:[%s6521_s1] sm:$0x3] }
  0xba   : > { %v1051_v61 = vsel %vm973_vm1, %v1049_v7, %v1050_v25  ;;  %v679_v35 = vmul.f32 %v3597_v17, %v4592_v0  ;;  %v924_v48 = vmul.f32 %v3599_v18, %v4592_v0  ;;  %v871_v27 = vadd.f32 %v806_v59, %v626_v31  ;;  %v4632_v18 = vld [vmem:[%s6524_s4] sm:$0xf] }
  0xbb   : > { %1184 = vst.msk [vmem:[%s3716_s23 + $0xe8] sm:$0xff] %vm1154_vm2, %v1151_v29  ;;  %v1227_v24 = vmul.f32 %v4603_v15, %v3661_v56  ;;  %v1228_v50 = vmul.f32 %v4603_v15, %v3667_v60  ;;  %v1471_v10 = vmul.f32 %v4611_v21, %v3661_v56  ;;  %v1472_v17 = vmul.f32 %v4611_v21, %v3667_v60 }
  0xbc   : > { %v807_v47 = vrot.slane %v679_v35, 1  ;;  %v1052_v11 = vrot.slane %v924_v48, 2  ;;  %v4635_v12 = vrot.slane %v4632_v18, %v1189_v62  ;;  %v1116_v31 = vadd.f32 %v1051_v61, %v871_v27  ;;  %v3445_v61 = vld [vmem:[%s6521_s1 + $0x2] sm:$0x3]  ;;  %v3446_v48 = vld [vmem:[%s6521_s1 + $0x4] sm:$0x3] }
  0xbd   : > { %v1323_v51 = vrot.slane %v1227_v24, 1  ;;  %v1324_v40 = vrot.slane %v1228_v50, 1  ;;  %v1567_v13 = vrot.slane %v1471_v10, 2  ;;  %v1568_v57 = vrot.slane %v1472_v17, 2 }
  0xbe   : > { %v808_v56 = vsel %vm728_vm0, %v805_v5, %v807_v47  ;;  %v1053_v9 = vsel %vm973_vm1, %v1050_v25, %v1052_v11  ;;  %v4642_v42 = vrot.slane %v3444_v52, %v1189_v62  ;;  %v1152_v7 = vadd.f32 %v3601_v19, %v1116_v31 }
  0xbf   : > { %v872_v29 = vadd.f32 %v808_v56, %v627_v26  ;;  %v1325_v59 = vsel %vm728_vm0, %v1323_v51, %v1324_v40  ;;  %v4649_v35 = vrot.slane %v3445_v61, %v1189_v62  ;;  %v1569_v25 = vsel %vm973_vm1, %v1567_v13, %v1568_v57 }
  0xc0   : > { %v1435_v5 = vadd.f32 %v1325_v59, %v1191_v16  ;;  %v4655_v27 = vrot.slane %v3446_v48, %v1189_v62  ;;  %v1192_v26 = vmul.f32 %v4589_v20, %v3667_v60  ;;  %1185 = vst.msk [vmem:[%s3716_s23 + $0xf0] sm:$0xff] %vm1154_vm2, %v1152_v7  ;;  %v1229_v50 = vmul.f32 %v4603_v15, %v3676_v4 }
  0xc1   : > { %v1117_v24 = vadd.f32 %v1053_v9, %v872_v29  ;;  %v1473_v16 = vmul.f32 %v4611_v21, %v3676_v4  ;;  %v1193_v10 = vmul.f32 %v4589_v20, %v3685_v8  ;;  %v1230_v62 = vmul.f32 %v4603_v15, %v3685_v8 }
  0xc2   : > { %v1679_v47 = vadd.f32 %v1569_v25, %v1435_v5  ;;  %v1231_v60 = vmul.f32 %v4603_v15, %v3692_v23  ;;  %v1474_v11 = vmul.f32 %v4611_v21, %v3685_v8  ;;  %v1326_v31 = vrot.slane %v1229_v50, 1 }
  0xc3   : > { %v1153_v17 = vadd.f32 %v3601_v19, %v1117_v24  ;;  %v1570_v51 = vrot.slane %v1473_v16, 2  ;;  %v1475_v4 = vmul.f32 %v4611_v21, %v3692_v23  ;;  %v1328_v56 = vrot.slane %v1230_v62, 1 }
  0xc4   : > { %v1715_v13 = vadd.f32 %v4635_v12, %v1679_v47  ;;  %v1329_v9 = vrot.slane %v1231_v60, 1  ;;  %v1572_v52 = vrot.slane %v1474_v11, 2  ;;  %v1327_v7 = vsel %vm728_vm0, %v1324_v40, %v1326_v31 }
  0xc5   : > { %1186 = vst.msk [vmem:[%s3716_s23 + $0xf8] sm:$0xff] %vm1154_vm2, %v1153_v17  ;;  %v1571_v29 = vsel %vm973_vm1, %v1568_v57, %v1570_v51  ;;  %v1573_v59 = vrot.slane %v1475_v4, 2  ;;  %v1194_v19 = vmul.f32 %v4589_v20, %v3692_v23  ;;  %v1436_v8 = vadd.f32 %v1327_v7, %v1192_v26 }
  0xc6   : > { %3329 = vst.msk [vmem:[%s3716_s23 + $0x100] sm:$0xff] %vm1154_vm2, %v1715_v13  ;;  %v1330_v61 = vsel %vm728_vm0, %v1328_v56, %v1329_v9  ;;  %v1232_v5 = vmul.f32 %v4603_v15, %v3724_v22  ;;  %v1476_v25 = vmul.f32 %v4611_v21, %v3724_v22  ;;  %v1195_v57 = vmul.f32 %v4589_v20, %v3758_v28 }
  0xc7   : > { %v1437_v48 = vadd.f32 %v1330_v61, %v1193_v10  ;;  %v1574_v40 = vsel %vm973_vm1, %v1572_v52, %v1573_v59  ;;  %v1233_v23 = vmul.f32 %v4603_v15, %v3758_v28  ;;  %v1680_v24 = vadd.f32 %v1571_v29, %v1436_v8 }
  0xc8   : > { %v1331_v26 = vrot.slane %v1232_v5, 1  ;;  %v1575_v50 = vrot.slane %v1476_v25, 2  ;;  %v1234_v16 = vmul.f32 %v4603_v15, %v3769_v34  ;;  %v1477_v22 = vmul.f32 %v4611_v21, %v3758_v28 }
  0xc9   : > { %v1681_v47 = vadd.f32 %v1574_v40, %v1437_v48  ;;  %v1333_v62 = vrot.slane %v1233_v23, 1  ;;  %v1478_v10 = vmul.f32 %v4611_v21, %v3769_v34  ;;  %v1716_v60 = vadd.f32 %v4635_v12, %v1680_v24 }
  0xca   : > { %v1332_v11 = vsel %vm728_vm0, %v1329_v9, %v1331_v26  ;;  %v1576_v17 = vsel %vm973_vm1, %v1573_v59, %v1575_v50  ;;  %v1334_v31 = vrot.slane %v1234_v16, 1  ;;  %v1577_v13 = vrot.slane %v1477_v22, 2 }
  0xcb   : > { %v1717_v51 = vadd.f32 %v4635_v12, %v1681_v47  ;;  %v1438_v4 = vadd.f32 %v1332_v11, %v1194_v19  ;;  %v1578_v56 = vrot.slane %v1478_v10, 2  ;;  %3330 = vst.msk [vmem:[%s3716_s23 + $0x108] sm:$0xff] %vm1154_vm2, %v1716_v60  ;;  %v1196_v28 = vmul.f32 %v4589_v20, %v3769_v34 }
  0xcc   : > { %v1335_v52 = vsel %vm728_vm0, %v1333_v62, %v1334_v31  ;;  %v1235_v7 = vmul.f32 %v4603_v15, %v3788_v53  ;;  %v1479_v9 = vmul.f32 %v4611_v21, %v3788_v53  ;;  %v1197_v8 = vmul.f32 %v4589_v20, %v3819_v30 }
  0xcd   : > { %3331 = vst.msk [vmem:[%s3716_s23 + $0x110] sm:$0xff] %vm1154_vm2, %v1717_v51  ;;  %v1682_v29 = vadd.f32 %v1576_v17, %v1438_v4  ;;  %v1439_v59 = vadd.f32 %v1335_v52, %v1195_v57  ;;  %v1579_v19 = vsel %vm973_vm1, %v1577_v13, %v1578_v56  ;;  %v1236_v34 = vmul.f32 %v4603_v15, %v3819_v30 }
  0xce   : > { %v1336_v61 = vrot.slane %v1235_v7, 1  ;;  %v1580_v5 = vrot.slane %v1479_v9, 2  ;;  %v1237_v25 = vmul.f32 %v4603_v15, %v3822_v32  ;;  %v1480_v40 = vmul.f32 %v4611_v21, %v3819_v30 }
  0xcf   : > { %v1718_v53 = vadd.f32 %v4635_v12, %v1682_v29  ;;  %v1683_v48 = vadd.f32 %v1579_v19, %v1439_v59  ;;  %v1481_v57 = vmul.f32 %v4611_v21, %v3822_v32  ;;  %v1338_v26 = vrot.slane %v1236_v34, 1 }
  0xd0   : > { %v1337_v23 = vsel %vm728_vm0, %v1334_v31, %v1336_v61  ;;  %v1581_v24 = vsel %vm973_vm1, %v1578_v56, %v1580_v5  ;;  %v1339_v50 = vrot.slane %v1237_v25, 1  ;;  %v1582_v62 = vrot.slane %v1480_v40, 2 }
  0xd1   : > { %3332 = vst.msk [vmem:[%s3716_s23 + $0x118] sm:$0xff] %vm1154_vm2, %v1718_v53  ;;  %v1719_v16 = vadd.f32 %v4635_v12, %v1683_v48  ;;  %v1440_v47 = vadd.f32 %v1337_v23, %v1196_v28  ;;  %v1583_v22 = vrot.slane %v1481_v57, 2  ;;  %v1198_v30 = vmul.f32 %v4589_v20, %v3822_v32 }
  0xd2   : > { %v1340_v10 = vsel %vm728_vm0, %v1338_v26, %v1339_v50  ;;  %v1238_v60 = vmul.f32 %v4603_v15, %v3848_v58  ;;  %v1482_v11 = vmul.f32 %v4611_v21, %v3848_v58  ;;  %v1199_v4 = vmul.f32 %v4589_v20, %v3879_v38 }
  0xd3   : > { %3333 = vst.msk [vmem:[%s3716_s23 + $0x120] sm:$0xff] %vm1154_vm2, %v1719_v16  ;;  %v1684_v17 = vadd.f32 %v1581_v24, %v1440_v47  ;;  %v1441_v31 = vadd.f32 %v1340_v10, %v1197_v8  ;;  %v1584_v51 = vsel %vm973_vm1, %v1582_v62, %v1583_v22  ;;  %v1239_v32 = vmul.f32 %v4603_v15, %v3879_v38 }
  0xd4   : > { %v1341_v13 = vrot.slane %v1238_v60, 1  ;;  %v1585_v56 = vrot.slane %v1482_v11, 2  ;;  %v1240_v52 = vmul.f32 %v4603_v15, %v3889_v43  ;;  %v1483_v7 = vmul.f32 %v4611_v21, %v3879_v38 }
  0xd5   : > { %v1720_v58 = vadd.f32 %v4635_v12, %v1684_v17  ;;  %v1685_v28 = vadd.f32 %v1584_v51, %v1441_v31  ;;  %v1484_v9 = vmul.f32 %v4611_v21, %v3889_v43  ;;  %v1343_v19 = vrot.slane %v1239_v32, 1 }
  0xd6   : > { %v1342_v29 = vsel %vm728_vm0, %v1339_v50, %v1341_v13  ;;  %v1586_v59 = vsel %vm973_vm1, %v1583_v22, %v1585_v56  ;;  %v1344_v8 = vrot.slane %v1240_v52, 1  ;;  %v1587_v34 = vrot.slane %v1483_v7, 2 }
  0xd7   : > { %3334 = vst.msk [vmem:[%s3716_s23 + $0x128] sm:$0xff] %vm1154_vm2, %v1720_v58  ;;  %v1721_v61 = vadd.f32 %v4635_v12, %v1685_v28  ;;  %v1442_v5 = vadd.f32 %v1342_v29, %v1198_v30  ;;  %v1588_v25 = vrot.slane %v1484_v9, 2  ;;  %v1200_v38 = vmul.f32 %v4589_v20, %v3889_v43 }
  0xd8   : > { %v1345_v53 = vsel %vm728_vm0, %v1343_v19, %v1344_v8  ;;  %v1241_v48 = vmul.f32 %v4603_v15, %v3908_v2  ;;  %v1485_v40 = vmul.f32 %v4611_v21, %v3908_v2  ;;  %v1201_v26 = vmul.f32 %v4589_v20, %v3945_v55 }
  0xd9   : > { %3335 = vst.msk [vmem:[%s3716_s23 + $0x130] sm:$0xff] %vm1154_vm2, %v1721_v61  ;;  %v1686_v57 = vadd.f32 %v1586_v59, %v1442_v5  ;;  %v1443_v23 = vadd.f32 %v1345_v53, %v1199_v4  ;;  %v1589_v24 = vsel %vm973_vm1, %v1587_v34, %v1588_v25  ;;  %v1242_v43 = vmul.f32 %v4603_v15, %v3945_v55 }
  0xda   : > { %v1346_v50 = vrot.slane %v1241_v48, 1  ;;  %v1590_v16 = vrot.slane %v1485_v40, 2  ;;  %v1243_v47 = vmul.f32 %v4603_v15, %v3948_v49  ;;  %v1486_v22 = vmul.f32 %v4611_v21, %v3945_v55 }
  0xdb   : > { %v1722_v2 = vadd.f32 %v4635_v12, %v1686_v57  ;;  %v1687_v62 = vadd.f32 %v1589_v24, %v1443_v23  ;;  %v1487_v10 = vmul.f32 %v4611_v21, %v3948_v49  ;;  %v1348_v11 = vrot.slane %v1242_v43, 1 }
  0xdc   : > { %v1347_v30 = vsel %vm728_vm0, %v1344_v8, %v1346_v50  ;;  %v1591_v60 = vsel %vm973_vm1, %v1588_v25, %v1590_v16  ;;  %v1349_v17 = vrot.slane %v1243_v47, 1  ;;  %v1592_v4 = vrot.slane %v1486_v22, 2 }
  0xdd   : > { %3336 = vst.msk [vmem:[%s3716_s23 + $0x138] sm:$0xff] %vm1154_vm2, %v1722_v2  ;;  %v1723_v31 = vadd.f32 %v4635_v12, %v1687_v62  ;;  %v1444_v51 = vadd.f32 %v1347_v30, %v1200_v38  ;;  %v1593_v13 = vrot.slane %v1487_v10, 2  ;;  %v1202_v55 = vmul.f32 %v4589_v20, %v3948_v49  ;;  %v6627_v2 = vld [vmem:[#allocation2_spill] sm:$0xff]  ;;  %v6628_v30 = vld [vmem:[#allocation3_spill] sm:$0xff] }
  0xde   : > { %v1350_v56 = vsel %vm728_vm0, %v1348_v11, %v1349_v17  ;;  %v1244_v32 = vmul.f32 %v4603_v15, %v3971_v54  ;;  %v1488_v52 = vmul.f32 %v4611_v21, %v3971_v54  ;;  %v1203_v9 = vmul.f32 %v4589_v20, %v4012_v36 }
  0xdf   : > { %3337 = vst.msk [vmem:[%s3716_s23 + $0x140] sm:$0xff] %vm1154_vm2, %v1723_v31  ;;  %v1688_v58 = vadd.f32 %v1591_v60, %v1444_v51  ;;  %v1445_v28 = vadd.f32 %v1350_v56, %v1201_v26  ;;  %v1594_v7 = vsel %vm973_vm1, %v1592_v4, %v1593_v13  ;;  %v1245_v49 = vmul.f32 %v4603_v15, %v4012_v36 }
  0xe0   : > { %v1351_v29 = vrot.slane %v1244_v32, 1  ;;  %v1595_v59 = vrot.slane %v1488_v52, 2  ;;  %v1246_v19 = vmul.f32 %v4603_v15, %v4015_v41  ;;  %v1489_v61 = vmul.f32 %v4611_v21, %v4012_v36 }
  0xe1   : > { %v1724_v54 = vadd.f32 %v4635_v12, %v1688_v58  ;;  %v1689_v8 = vadd.f32 %v1594_v7, %v1445_v28  ;;  %v1490_v5 = vmul.f32 %v4611_v21, %v4015_v41  ;;  %v1353_v53 = vrot.slane %v1245_v49, 1 }
  0xe2   : > { %v1352_v34 = vsel %vm728_vm0, %v1349_v17, %v1351_v29  ;;  %v1596_v25 = vsel %vm973_vm1, %v1593_v13, %v1595_v59  ;;  %v1354_v38 = vrot.slane %v1246_v19, 1  ;;  %v1597_v57 = vrot.slane %v1489_v61, 2 }
  0xe3   : > { %3338 = vst.msk [vmem:[%s3716_s23 + $0x148] sm:$0xff] %vm1154_vm2, %v1724_v54  ;;  %v1725_v48 = vadd.f32 %v4635_v12, %v1689_v8  ;;  %v1446_v40 = vadd.f32 %v1352_v34, %v1202_v55  ;;  %v1598_v23 = vrot.slane %v1490_v5, 2  ;;  %v1204_v36 = vmul.f32 %v4589_v20, %v4015_v41  ;;  %v6630_v8 = vld [vmem:[#allocation5_spill] sm:$0xff] }
  0xe4   : > { %v1355_v24 = vsel %vm728_vm0, %v1353_v53, %v1354_v38  ;;  %v1247_v26 = vmul.f32 %v4603_v15, %v4039_v46  ;;  %v1491_v50 = vmul.f32 %v4611_v21, %v4039_v46  ;;  %v1205_v62 = vmul.f32 %v4589_v20, %v6627_v2  ;;  %v6631_v53 = vld [vmem:[#allocation6_spill] sm:$0xff] }
  0xe5   : > { %3339 = vst.msk [vmem:[%s3716_s23 + $0x150] sm:$0xff] %vm1154_vm2, %v1725_v48  ;;  %v1690_v16 = vadd.f32 %v1596_v25, %v1446_v40  ;;  %v1447_v43 = vadd.f32 %v1355_v24, %v1203_v9  ;;  %v1599_v47 = vsel %vm973_vm1, %v1597_v57, %v1598_v23  ;;  %v1248_v41 = vmul.f32 %v4603_v15, %v6627_v2  ;;  %v6629_v9 = vld [vmem:[#allocation4_spill] sm:$0xff] }
  0xe6   : > { %v1356_v22 = vrot.slane %v1247_v26, 1  ;;  %v1600_v10 = vrot.slane %v1491_v50, 2  ;;  %v1249_v60 = vmul.f32 %v4603_v15, %v6628_v30  ;;  %v1492_v17 = vmul.f32 %v4611_v21, %v6627_v2 }
  0xe7   : > { %v1726_v46 = vadd.f32 %v4635_v12, %v1690_v16  ;;  %v1691_v11 = vadd.f32 %v1599_v47, %v1447_v43  ;;  %v1493_v31 = vmul.f32 %v4611_v21, %v6628_v30  ;;  %v1358_v13 = vrot.slane %v1248_v41, 1 }
  0xe8   : > { %v1357_v51 = vsel %vm728_vm0, %v1354_v38, %v1356_v22  ;;  %v1601_v4 = vsel %vm973_vm1, %v1598_v23, %v1600_v10  ;;  %v1359_v56 = vrot.slane %v1249_v60, 1  ;;  %v1602_v52 = vrot.slane %v1492_v17, 2  ;;  %v6632_v10 = vld [vmem:[#allocation7_spill] sm:$0xff]  ;;  %v6633_v17 = vld [vmem:[#allocation8_spill] sm:$0xff] }
  0xe9   : > { %3340 = vst.msk [vmem:[%s3716_s23 + $0x158] sm:$0xff] %vm1154_vm2, %v1726_v46  ;;  %v1727_v55 = vadd.f32 %v4635_v12, %v1691_v11  ;;  %v1448_v32 = vadd.f32 %v1357_v51, %v1204_v36  ;;  %v1603_v58 = vrot.slane %v1493_v31, 2  ;;  %v1206_v7 = vmul.f32 %v4589_v20, %v6628_v30 }
  0xea   : > { %v1360_v28 = vsel %vm728_vm0, %v1358_v13, %v1359_v56  ;;  %v1250_v29 = vmul.f32 %v4603_v15, %v6629_v9  ;;  %v1494_v59 = vmul.f32 %v4611_v21, %v6629_v9  ;;  %v1207_v61 = vmul.f32 %v4589_v20, %v6630_v8 }
  0xeb   : > { %3341 = vst.msk [vmem:[%s3716_s23 + $0x160] sm:$0xff] %vm1154_vm2, %v1727_v55  ;;  %v1692_v49 = vadd.f32 %v1601_v4, %v1448_v32  ;;  %v1449_v19 = vadd.f32 %v1360_v28, %v1205_v62  ;;  %v1604_v54 = vsel %vm973_vm1, %v1602_v52, %v1603_v58  ;;  %v1251_v25 = vmul.f32 %v4603_v15, %v6630_v8 }
  0xec   : > { %v1361_v5 = vrot.slane %v1250_v29, 1  ;;  %v1605_v34 = vrot.slane %v1494_v59, 2  ;;  %v1252_v38 = vmul.f32 %v4603_v15, %v6631_v53  ;;  %v1495_v57 = vmul.f32 %v4611_v21, %v6630_v8 }
  0xed   : > { %v1728_v48 = vadd.f32 %v4635_v12, %v1692_v49  ;;  %v1693_v40 = vadd.f32 %v1604_v54, %v1449_v19  ;;  %v1496_v23 = vmul.f32 %v4611_v21, %v6631_v53  ;;  %v1363_v26 = vrot.slane %v1251_v25, 1 }
  0xee   : > { %v1362_v24 = vsel %vm728_vm0, %v1359_v56, %v1361_v5  ;;  %v1606_v36 = vsel %vm973_vm1, %v1603_v58, %v1605_v34  ;;  %v1364_v50 = vrot.slane %v1252_v38, 1  ;;  %v1607_v47 = vrot.slane %v1495_v57, 2  ;;  %v6634_v56 = vld [vmem:[#allocation9_spill] sm:$0xff]  ;;  %v6635_v34 = vld [vmem:[#allocation10_spill] sm:$0xff]  ;;  %v6636_v57 = vld [vmem:[#allocation11_spill] sm:$0xff] }
  0xef   : > { %3342 = vst.msk [vmem:[%s3716_s23 + $0x168] sm:$0xff] %vm1154_vm2, %v1728_v48  ;;  %v1729_v16 = vadd.f32 %v4635_v12, %v1693_v40  ;;  %v1450_v43 = vadd.f32 %v1362_v24, %v1206_v7  ;;  %v1608_v2 = vrot.slane %v1496_v23, 2  ;;  %v1208_v22 = vmul.f32 %v4589_v20, %v6631_v53 }
  0xf0   : > { %v1365_v62 = vsel %vm728_vm0, %v1363_v26, %v1364_v50  ;;  %v1253_v41 = vmul.f32 %v4603_v15, %v6632_v10  ;;  %v1497_v30 = vmul.f32 %v4611_v21, %v6632_v10  ;;  %v1209_v31 = vmul.f32 %v4589_v20, %v6633_v17 }
  0xf1   : > { %3343 = vst.msk [vmem:[%s3716_s23 + $0x170] sm:$0xff] %vm1154_vm2, %v1729_v16  ;;  %v1694_v60 = vadd.f32 %v1606_v36, %v1450_v43  ;;  %v1451_v46 = vadd.f32 %v1365_v62, %v1207_v61  ;;  %v1609_v11 = vsel %vm973_vm1, %v1607_v47, %v1608_v2  ;;  %v1254_v13 = vmul.f32 %v4603_v15, %v6633_v17 }
  0xf2   : > { %v1366_v51 = vrot.slane %v1253_v41, 1  ;;  %v1610_v4 = vrot.slane %v1497_v30, 2  ;;  %v1255_v55 = vmul.f32 %v4603_v15, %v6634_v56  ;;  %v1498_v58 = vmul.f32 %v4611_v21, %v6633_v17 }
  0xf3   : > { %v1730_v32 = vadd.f32 %v4635_v12, %v1694_v60  ;;  %v1695_v52 = vadd.f32 %v1609_v11, %v1451_v46  ;;  %v1499_v28 = vmul.f32 %v4611_v21, %v6634_v56  ;;  %v1368_v29 = vrot.slane %v1254_v13, 1 }
  0xf4   : > { %v1367_v7 = vsel %vm728_vm0, %v1364_v50, %v1366_v51  ;;  %v1611_v9 = vsel %vm973_vm1, %v1608_v2, %v1610_v4  ;;  %v1369_v59 = vrot.slane %v1255_v55, 1  ;;  %v1612_v54 = vrot.slane %v1498_v58, 2  ;;  %v6637_v50 = vld [vmem:[#allocation12_spill] sm:$0xff]  ;;  %v6638_v4 = vld [vmem:[#allocation13_spill] sm:$0xff]  ;;  %v6639_v58 = vld [vmem:[#allocation14_spill] sm:$0xff] }
  0xf5   : > { %3344 = vst.msk [vmem:[%s3716_s23 + $0x178] sm:$0xff] %vm1154_vm2, %v1730_v32  ;;  %v1731_v49 = vadd.f32 %v4635_v12, %v1695_v52  ;;  %v1452_v19 = vadd.f32 %v1367_v7, %v1208_v22  ;;  %v1613_v8 = vrot.slane %v1499_v28, 2  ;;  %v1210_v5 = vmul.f32 %v4589_v20, %v6634_v56 }
  0xf6   : > { %v1370_v61 = vsel %vm728_vm0, %v1368_v29, %v1369_v59  ;;  %v1256_v25 = vmul.f32 %v4603_v15, %v6635_v34  ;;  %v1500_v53 = vmul.f32 %v4611_v21, %v6635_v34  ;;  %v1211_v23 = vmul.f32 %v4589_v20, %v6636_v57 }
  0xf7   : > { %3345 = vst.msk [vmem:[%s3716_s23 + $0x180] sm:$0xff] %vm1154_vm2, %v1731_v49  ;;  %v1696_v38 = vadd.f32 %v1611_v9, %v1452_v19  ;;  %v1453_v48 = vadd.f32 %v1370_v61, %v1209_v31  ;;  %v1614_v40 = vsel %vm973_vm1, %v1612_v54, %v1613_v8  ;;  %v1257_v26 = vmul.f32 %v4603_v15, %v6636_v57 }
  0xf8   : > { %v1371_v24 = vrot.slane %v1256_v25, 1  ;;  %v1615_v36 = vrot.slane %v1500_v53, 2  ;;  %v1258_v16 = vmul.f32 %v4603_v15, %v6637_v50  ;;  %v1501_v2 = vmul.f32 %v4611_v21, %v6636_v57 }
  0xf9   : > { %v1732_v43 = vadd.f32 %v4635_v12, %v1696_v38  ;;  %v1697_v47 = vadd.f32 %v1614_v40, %v1453_v48  ;;  %v1502_v62 = vmul.f32 %v4611_v21, %v6637_v50  ;;  %v1373_v41 = vrot.slane %v1257_v26, 1 }
  0xfa   : > { %v1372_v22 = vsel %vm728_vm0, %v1369_v59, %v1371_v24  ;;  %v1616_v10 = vsel %vm973_vm1, %v1613_v8, %v1615_v36  ;;  %v1374_v30 = vrot.slane %v1258_v16, 1  ;;  %v1617_v11 = vrot.slane %v1501_v2, 2  ;;  %v6640_v59 = vld [vmem:[#allocation15_spill] sm:$0xff] }
  0xfb   : > { %3346 = vst.msk [vmem:[%s3716_s23 + $0x188] sm:$0xff] %vm1154_vm2, %v1732_v43  ;;  %v1733_v60 = vadd.f32 %v4635_v12, %v1697_v47  ;;  %v1454_v46 = vadd.f32 %v1372_v22, %v1210_v5  ;;  %v1618_v17 = vrot.slane %v1502_v62, 2  ;;  %v1212_v51 = vmul.f32 %v4589_v20, %v6637_v50 }
  0xfc   : > { %v1375_v31 = vsel %vm728_vm0, %v1373_v41, %v1374_v30  ;;  %v1259_v13 = vmul.f32 %v4603_v15, %v6638_v4  ;;  %v1503_v56 = vmul.f32 %v4611_v21, %v6638_v4  ;;  %v1213_v28 = vmul.f32 %v4589_v20, %v6639_v58 }
  0xfd   : > { %3347 = vst.msk [vmem:[%s3716_s23 + $0x190] sm:$0xff] %vm1154_vm2, %v1733_v60  ;;  %v1698_v55 = vadd.f32 %v1616_v10, %v1454_v46  ;;  %v1455_v32 = vadd.f32 %v1375_v31, %v1211_v23  ;;  %v1619_v52 = vsel %vm973_vm1, %v1617_v11, %v1618_v17  ;;  %v1260_v29 = vmul.f32 %v4603_v15, %v6639_v58  ;;  %v6641_v10 = vld [vmem:[#allocation16_spill] sm:$0xff] }
  0xfe   : > { %v1376_v7 = vrot.slane %v1259_v13, 1  ;;  %v1620_v9 = vrot.slane %v1503_v56, 2  ;;  %v1261_v49 = vmul.f32 %v4603_v15, %v6640_v59  ;;  %v1504_v8 = vmul.f32 %v4611_v21, %v6639_v58 }
  0xff   : > { %v1734_v19 = vadd.f32 %v4635_v12, %v1698_v55  ;;  %v1699_v54 = vadd.f32 %v1619_v52, %v1455_v32  ;;  %v1505_v61 = vmul.f32 %v4611_v21, %v6640_v59  ;;  %v1378_v25 = vrot.slane %v1260_v29, 1  ;;  %v6642_v52 = vld [vmem:[#allocation17_spill] sm:$0xff] }
 0x100   : > { %v1377_v5 = vsel %vm728_vm0, %v1374_v30, %v1376_v7  ;;  %v1621_v34 = vsel %vm973_vm1, %v1618_v17, %v1620_v9  ;;  %v1379_v53 = vrot.slane %v1261_v49, 1  ;;  %v1622_v40 = vrot.slane %v1504_v8, 2 }
 0x101   : > { %3348 = vst.msk [vmem:[%s3716_s23 + $0x198] sm:$0xff] %vm1154_vm2, %v1734_v19  ;;  %v1735_v38 = vadd.f32 %v4635_v12, %v1699_v54  ;;  %v1456_v48 = vadd.f32 %v1377_v5, %v1212_v51  ;;  %v1623_v57 = vrot.slane %v1505_v61, 2  ;;  %v1214_v24 = vmul.f32 %v4589_v20, %v6640_v59  ;;  %v6643_v59 = vld [vmem:[#allocation18_spill] sm:$0xff]  ;;  %v6644_v61 = vld [vmem:[#allocation19_spill] sm:$0xff] }
 0x102   : > { %v1380_v23 = vsel %vm728_vm0, %v1378_v25, %v1379_v53  ;;  %v1262_v36 = vmul.f32 %v4603_v15, %v4358_v6  ;;  %v1506_v26 = vmul.f32 %v4611_v21, %v4358_v6  ;;  %v1215_v47 = vmul.f32 %v4589_v20, %v4399_v63 }
 0x103   : > { %3349 = vst.msk [vmem:[%s3716_s23 + $0x1a0] sm:$0xff] %vm1154_vm2, %v1735_v38  ;;  %v1700_v50 = vadd.f32 %v1621_v34, %v1456_v48  ;;  %v1457_v16 = vadd.f32 %v1380_v23, %v1213_v28  ;;  %v1624_v43 = vsel %vm973_vm1, %v1622_v40, %v1623_v57  ;;  %v1263_v22 = vmul.f32 %v4603_v15, %v4399_v63 }
 0x104   : > { %v1381_v2 = vrot.slane %v1262_v36, 1  ;;  %v1625_v62 = vrot.slane %v1506_v26, 2  ;;  %v1264_v41 = vmul.f32 %v4603_v15, %v6641_v10  ;;  %v1507_v60 = vmul.f32 %v4611_v21, %v4399_v63 }
 0x105   : > { %v1736_v6 = vadd.f32 %v4635_v12, %v1700_v50  ;;  %v1701_v30 = vadd.f32 %v1624_v43, %v1457_v16  ;;  %v1508_v46 = vmul.f32 %v4611_v21, %v6641_v10  ;;  %v1383_v31 = vrot.slane %v1263_v22, 1 }
 0x106   : > { %v1382_v11 = vsel %vm728_vm0, %v1379_v53, %v1381_v2  ;;  %v1626_v17 = vsel %vm973_vm1, %v1623_v57, %v1625_v62  ;;  %v1384_v51 = vrot.slane %v1264_v41, 1  ;;  %v1627_v56 = vrot.slane %v1507_v60, 2 }
 0x107   : > { %3350 = vst.msk [vmem:[%s3716_s23 + $0x1a8] sm:$0xff] %vm1154_vm2, %v1736_v6  ;;  %v1737_v4 = vadd.f32 %v4635_v12, %v1701_v30  ;;  %v1458_v13 = vadd.f32 %v1382_v11, %v1214_v24  ;;  %v1628_v55 = vrot.slane %v1508_v46, 2  ;;  %v1216_v63 = vmul.f32 %v4589_v20, %v6641_v10  ;;  %v6646_v6 = vld [vmem:[#allocation21_spill] sm:$0xff] }
 0x108   : > { %v1385_v32 = vsel %vm728_vm0, %v1383_v31, %v1384_v51  ;;  %v1265_v58 = vmul.f32 %v4603_v15, %v6642_v52  ;;  %v1509_v28 = vmul.f32 %v4611_v21, %v6642_v52  ;;  %v1217_v49 = vmul.f32 %v4589_v20, %v6643_v59 }
 0x109   : > { %3351 = vst.msk [vmem:[%s3716_s23 + $0x1b0] sm:$0xff] %vm1154_vm2, %v1737_v4  ;;  %v1702_v7 = vadd.f32 %v1626_v17, %v1458_v13  ;;  %v1459_v9 = vadd.f32 %v1385_v32, %v1215_v47  ;;  %v1629_v29 = vsel %vm973_vm1, %v1627_v56, %v1628_v55  ;;  %v1266_v8 = vmul.f32 %v4603_v15, %v6643_v59  ;;  %v6645_v47 = vld [vmem:[#allocation20_spill] sm:$0xff]  ;;  %v6647_v17 = vld [vmem:[#allocation22_spill] sm:$0xff] }
 0x10a   : > { %v1386_v19 = vrot.slane %v1265_v58, 1  ;;  %v1630_v54 = vrot.slane %v1509_v28, 2  ;;  %v1267_v5 = vmul.f32 %v4603_v15, %v6644_v61  ;;  %v1510_v53 = vmul.f32 %v4611_v21, %v6643_v59 }
 0x10b   : > { %v1738_v34 = vadd.f32 %v4635_v12, %v1702_v7  ;;  %v1703_v25 = vadd.f32 %v1629_v29, %v1459_v9  ;;  %v1511_v38 = vmul.f32 %v4611_v21, %v6644_v61  ;;  %v1388_v57 = vrot.slane %v1266_v8, 1 }
 0x10c   : > { %v1387_v48 = vsel %vm728_vm0, %v1384_v51, %v1386_v19  ;;  %v1631_v40 = vsel %vm973_vm1, %v1628_v55, %v1630_v54  ;;  %v1389_v23 = vrot.slane %v1267_v5, 1  ;;  %v1632_v26 = vrot.slane %v1510_v53, 2 }
 0x10d   : > { %3352 = vst.msk [vmem:[%s3716_s23 + $0x1b8] sm:$0xff] %vm1154_vm2, %v1738_v34  ;;  %v1739_v24 = vadd.f32 %v4635_v12, %v1703_v25  ;;  %v1460_v36 = vadd.f32 %v1387_v48, %v1216_v63  ;;  %v1633_v50 = vrot.slane %v1511_v38, 2  ;;  %v1218_v43 = vmul.f32 %v4589_v20, %v6644_v61 }
 0x10e   : > { %v1390_v16 = vsel %vm728_vm0, %v1388_v57, %v1389_v23  ;;  %v1268_v2 = vmul.f32 %v4603_v15, %v6645_v47  ;;  %v1512_v62 = vmul.f32 %v4611_v21, %v6645_v47  ;;  %v1219_v30 = vmul.f32 %v4589_v20, %v6646_v6 }
 0x10f   : > { %3353 = vst.msk [vmem:[%s3716_s23 + $0x1c0] sm:$0xff] %vm1154_vm2, %v1739_v24  ;;  %v1704_v22 = vadd.f32 %v1631_v40, %v1460_v36  ;;  %v1461_v10 = vadd.f32 %v1390_v16, %v1217_v49  ;;  %v1634_v41 = vsel %vm973_vm1, %v1632_v26, %v1633_v50  ;;  %v1269_v11 = vmul.f32 %v4603_v15, %v6646_v6 }
 0x110   : > { %v1391_v60 = vrot.slane %v1268_v2, 1  ;;  %v1635_v46 = vrot.slane %v1512_v62, 2  ;;  %v1270_v31 = vmul.f32 %v4603_v15, %v6647_v17  ;;  %v1513_v13 = vmul.f32 %v4611_v21, %v6646_v6 }
 0x111   : > { %v1740_v51 = vadd.f32 %v4635_v12, %v1704_v22  ;;  %v1705_v4 = vadd.f32 %v1634_v41, %v1461_v10  ;;  %v1514_v56 = vmul.f32 %v4611_v21, %v6647_v17  ;;  %v1393_v63 = vrot.slane %v1269_v11, 1  ;;  %v3449_v11 = vld [vmem:[%s3584_s12 + $0x18] sm:$0xff] }
 0x112   : > { %v1392_v55 = vsel %vm728_vm0, %v1389_v23, %v1391_v60  ;;  %v1636_v32 = vsel %vm973_vm1, %v1633_v50, %v1635_v46  ;;  %v1394_v52 = vrot.slane %v1270_v31, 1  ;;  %v1637_v7 = vrot.slane %v1513_v13, 2  ;;  %v3450_v31 = vld [vmem:[%s3584_s12 + $0x20] sm:$0xff] }
 0x113   : > { %3354 = vst.msk [vmem:[%s3716_s23 + $0x1c8] sm:$0xff] %vm1154_vm2, %v1740_v51  ;;  %v1741_v58 = vadd.f32 %v4635_v12, %v1705_v4  ;;  %v1462_v28 = vadd.f32 %v1392_v55, %v1218_v43  ;;  %v1638_v9 = vrot.slane %v1514_v56, 2  ;;  %v1220_v59 = vmul.f32 %v4589_v20, %v6647_v17  ;;  %v5065_v4 = vld [vmem:[%s3584_s12 + $0x30] sm:$0xff] }
 0x114   : > { %v1395_v29 = vsel %vm728_vm0, %v1393_v63, %v1394_v52  ;;  %v1271_v49 = vmul.f32 %v4603_v15, %v4538_v37  ;;  %v1515_v19 = vmul.f32 %v4611_v21, %v4538_v37  ;;  %v1221_v5 = vmul.f32 %v4589_v20, %v4557_v44  ;;  %v5072_v63 = vld [vmem:[%s3584_s12 + $0x38] sm:$0xff] }
 0x115   : > { %3355 = vst.msk [vmem:[%s3716_s23 + $0x1d0] sm:$0xff] %vm1154_vm2, %v1741_v58  ;;  %v1706_v54 = vadd.f32 %v1636_v32, %v1462_v28  ;;  %v1463_v8 = vadd.f32 %v1395_v29, %v1219_v30  ;;  %v1639_v61 = vsel %vm973_vm1, %v1637_v7, %v1638_v9  ;;  %v1272_v53 = vmul.f32 %v4603_v15, %v4557_v44  ;;  %v3447_v30 = vld [vmem:[%s3584_s12] sm:$0xff]  ;;  %v5082_v7 = vld [vmem:[%s6522_s2 + $0x18] sm:$0xff] }
 0x116   : > { %v1396_v34 = vrot.slane %v1271_v49, 1  ;;  %v1640_v25 = vrot.slane %v1515_v19, 2  ;;  %v1273_v38 = vmul.f32 %v4603_v15, %v4560_v45  ;;  %v1516_v40 = vmul.f32 %v4611_v21, %v4557_v44 }
 0x117   : > { %v1742_v37 = vadd.f32 %v4635_v12, %v1706_v54  ;;  %v1707_v48 = vadd.f32 %v1639_v61, %v1463_v8  ;;  %v1517_v57 = vmul.f32 %v4611_v21, %v4560_v45  ;;  %v1398_v36 = vrot.slane %v1272_v53, 1 }
 0x118   : > { %v1397_v23 = vsel %vm728_vm0, %v1394_v52, %v1396_v34  ;;  %v1641_v24 = vsel %vm973_vm1, %v1638_v9, %v1640_v25  ;;  %v1399_v26 = vrot.slane %v1273_v38, 1  ;;  %v1642_v43 = vrot.slane %v1516_v40, 2  ;;  %v3454_v25 = vld [vmem:[%s3584_s12 + $0x28] sm:$0x3] }
 0x119   : > { %3356 = vst.msk [vmem:[%s3716_s23 + $0x1d8] sm:$0xff] %vm1154_vm2, %v1742_v37  ;;  %v1743_v50 = vadd.f32 %v4635_v12, %v1707_v48  ;;  %v1464_v16 = vadd.f32 %v1397_v23, %v1220_v59  ;;  %v1643_v47 = vrot.slane %v1517_v57, 2  ;;  %v1222_v2 = vmul.f32 %v4589_v20, %v4560_v45  ;;  %v3448_v20 = vld [vmem:[%s3584_s12 + $0x8] sm:$0xff]  ;;  %v5091_v59 = vld [vmem:[%s6522_s2 + $0x20] sm:$0xff] }
 0x11a   : > { %v1400_v44 = vsel %vm728_vm0, %v1398_v36, %v1399_v26  ;;  %v1274_v62 = vmul.f32 %v4603_v15, %v4592_v0  ;;  %v1518_v22 = vmul.f32 %v4611_v21, %v4592_v0  ;;  %v1784_v60 = vmul.f32 %v3447_v30, %v4642_v42  ;;  %v5152_v30 = vld [vmem:[%s3584_s12 + $0x48] sm:$0xff] }
 0x11b   : > { %3357 = vst.msk [vmem:[%s3716_s23 + $0x1e0] sm:$0xff] %vm1154_vm2, %v1743_v50  ;;  %v1708_v10 = vadd.f32 %v1641_v24, %v1464_v16  ;;  %v1465_v41 = vadd.f32 %v1400_v44, %v1221_v5  ;;  %v1644_v6 = vsel %vm973_vm1, %v1642_v43, %v1643_v47  ;;  %v1785_v15 = vmul.f32 %v3448_v20, %v4642_v42  ;;  %v3453_v5 = vld [vmem:[%s3584_s12 + $0x10] sm:$0x3] }
 0x11c   : > { %v1401_v46 = vrot.slane %v1274_v62, 1  ;;  %v1645_v45 = vrot.slane %v1518_v22, 2  ;;  %v1836_v0 = vmul.f32 %v3449_v11, %v4649_v35  ;;  %v1837_v51 = vmul.f32 %v3450_v31, %v4649_v35 }
 0x11d   : > { %v1744_v21 = vadd.f32 %v4635_v12, %v1708_v10  ;;  %v1709_v17 = vadd.f32 %v1644_v6, %v1465_v41  ;;  %v1936_v13 = vmul.f32 %v5065_v4, %v4655_v27  ;;  %v1937_v52 = vmul.f32 %v5072_v63, %v4655_v27 }
 0x11e   : > { %v1402_v56 = vsel %vm728_vm0, %v1399_v26, %v1401_v46  ;;  %v1646_v55 = vsel %vm973_vm1, %v1643_v47, %v1645_v45  ;;  %v1884_v32 = vadd.f32 %v1836_v0, %v1784_v60  ;;  %v1885_v9 = vadd.f32 %v1837_v51, %v1785_v15  ;;  %v5157_v46 = vld [vmem:[%s3584_s12 + $0x50] sm:$0xff] }
 0x11f   : > { %3358 = vst.msk [vmem:[%s3716_s23 + $0x1e8] sm:$0xff] %vm1154_vm2, %v1744_v21  ;;  %v1745_v58 = vadd.f32 %v4635_v12, %v1709_v17  ;;  %v1466_v28 = vadd.f32 %v1402_v56, %v1222_v2  ;;  %v5086_v29 = vrot.slane %v4586_v14, %v4566_v39  ;;  %v5095_v19 = vrot.slane %v4600_v1, %v4566_v39 }
 0x120   : > { %v1984_v49 = vadd.f32 %v1936_v13, %v1884_v32  ;;  %v5099_v54 = vrot.slane %v4608_v33, %v4566_v39  ;;  %v5103_v8 = vrot.slane %v4632_v18, %v4566_v39  ;;  %v1985_v61 = vadd.f32 %v1937_v52, %v1885_v9  ;;  %v5115_v33 = vld [vmem:[%s3584_s12 + $0x40] sm:$0x3] }
 0x121   : > { %3359 = vst.msk [vmem:[%s3716_s23 + $0x1f0] sm:$0xff] %vm1154_vm2, %v1745_v58  ;;  %v1710_v14 = vadd.f32 %v1646_v55, %v1466_v28  ;;  %v1786_v34 = vmul.f32 %v3453_v5, %v4642_v42  ;;  %v1838_v1 = vmul.f32 %v3454_v25, %v4649_v35  ;;  %v1938_v39 = vmul.f32 %v5115_v33, %v4655_v27 }
 0x122   : > { %v5112_v53 = vadd.f32 %v1984_v49, %v5082_v7  ;;  %v1787_v18 = vmul.f32 %v3449_v11, %v4642_v42  ;;  %v1788_v38 = vmul.f32 %v3450_v31, %v4642_v42  ;;  %v5123_v48 = vadd.f32 %v1985_v61, %v5091_v59  ;;  %v5165_v11 = vld [vmem:[%s3584_s12 + $0x58] sm:$0x3] }
 0x123   : > { %v1746_v37 = vadd.f32 %v4635_v12, %v1710_v14  ;;  %v1886_v40 = vadd.f32 %v1838_v1, %v1786_v34  ;;  %v1839_v57 = vmul.f32 %v5065_v4, %v4649_v35  ;;  %v5136_v12 = vld [vmem:[%s6522_s2 + $0x28] sm:$0x3]  ;;  %v1840_v26 = vmul.f32 %v5072_v63, %v4649_v35 }
 0x124   : > { %v2084_v23 = vmul.f32 %v5086_v29, %v5112_v53  ;;  %v2120_v24 = vmul.f32 %v5095_v19, %v5112_v53  ;;  %v2364_v36 = vmul.f32 %v5099_v54, %v5112_v53  ;;  %v2121_v50 = vmul.f32 %v5095_v19, %v5123_v48 }
 0x125   : > { %3360 = vst.msk [vmem:[%s3716_s23 + $0x1f8] sm:$0xff] %vm1154_vm2, %v1746_v37  ;;  %v2365_v16 = vmul.f32 %v5099_v54, %v5123_v48  ;;  %v1986_v43 = vadd.f32 %v1938_v39, %v1886_v40  ;;  %v2085_v47 = vmul.f32 %v5086_v29, %v5123_v48  ;;  %v1887_v62 = vadd.f32 %v1839_v57, %v1787_v18 }
 0x126   : > { %v2216_v44 = vrot.slane %v2120_v24, 1  ;;  %v2460_v2 = vrot.slane %v2364_v36, 2  ;;  %v1888_v22 = vadd.f32 %v1840_v26, %v1788_v38  ;;  %v2217_v10 = vrot.slane %v2121_v50, 1 }
 0x127   : > { %v2461_v41 = vrot.slane %v2365_v16, 2  ;;  %v5149_v6 = vadd.f32 %v1986_v43, %v5136_v12  ;;  %v1939_v60 = vmul.f32 %v5152_v30, %v4655_v27  ;;  %v1940_v45 = vmul.f32 %v5157_v46, %v4655_v27 }
 0x128   : > { %v1789_v20 = vmul.f32 %v3454_v25, %v4642_v42  ;;  %v1841_v15 = vmul.f32 %v5115_v33, %v4649_v35  ;;  %v1941_v0 = vmul.f32 %v5165_v11, %v4655_v27  ;;  %v2218_v21 = vsel %vm728_vm0, %v2216_v44, %v2217_v10 }
 0x129   : > { %v2462_v17 = vsel %vm973_vm1, %v2460_v2, %v2461_v41  ;;  %v2122_v31 = vmul.f32 %v5095_v19, %v5149_v6  ;;  %v2366_v51 = vmul.f32 %v5099_v54, %v5149_v6  ;;  %v2328_v13 = vadd.f32 %v2218_v21, %v2084_v23 }
 0x12a   : > { %v1987_v56 = vadd.f32 %v1939_v60, %v1887_v62  ;;  %v1988_v55 = vadd.f32 %v1940_v45, %v1888_v22  ;;  %v1889_v32 = vadd.f32 %v1841_v15, %v1789_v20  ;;  %v1790_v28 = vmul.f32 %v5065_v4, %v4642_v42  ;;  %v5222_v15 = vld [vmem:[%s3584_s12 + $0x68] sm:$0xff] }
 0x12b   : > { %v2219_v52 = vrot.slane %v2122_v31, 1  ;;  %v2463_v58 = vrot.slane %v2366_v51, 2  ;;  %v1791_v9 = vmul.f32 %v5072_v63, %v4642_v42  ;;  %v2572_v49 = vadd.f32 %v2462_v17, %v2328_v13 }
 0x12c   : > { %v5180_v14 = vadd.f32 %v1987_v56, %v5082_v7  ;;  %v5183_v61 = vadd.f32 %v1988_v55, %v5091_v59  ;;  %v1989_v5 = vadd.f32 %v1941_v0, %v1889_v32  ;;  %v1842_v1 = vmul.f32 %v5152_v30, %v4649_v35  ;;  %v5234_v32 = vld [vmem:[%s3584_s12 + $0x70] sm:$0x3] }
 0x12d   : > { %v2220_v34 = vsel %vm728_vm0, %v2217_v10, %v2219_v52  ;;  %v2464_v25 = vsel %vm973_vm1, %v2461_v41, %v2463_v58  ;;  %v1843_v4 = vmul.f32 %v5157_v46, %v4649_v35  ;;  %v2608_v63 = vadd.f32 %v5103_v8, %v2572_v49  ;;  %v5215_v10 = vld [vmem:[%s3584_s12 + $0x60] sm:$0xff] }
 0x12e   : > { %v2329_v39 = vadd.f32 %v2220_v34, %v2085_v47  ;;  %v2086_v18 = vmul.f32 %v5086_v29, %v5180_v14  ;;  %v2123_v38 = vmul.f32 %v5095_v19, %v5180_v14  ;;  %v2124_v37 = vmul.f32 %v5095_v19, %v5183_v61 }
 0x12f   : > { %v2367_v40 = vmul.f32 %v5099_v54, %v5180_v14  ;;  %v2368_v57 = vmul.f32 %v5099_v54, %v5183_v61  ;;  %v5203_v23 = vadd.f32 %v1989_v5, %v5136_v12  ;;  %3361 = vst.msk [vmem:[%s3716_s23 + $0x200] sm:$0xff] %vm1154_vm2, %v2608_v63  ;;  %v2087_v26 = vmul.f32 %v5086_v29, %v5183_v61 }
 0x130   : > { %v2573_v24 = vadd.f32 %v2464_v25, %v2329_v39  ;;  %v2221_v36 = vrot.slane %v2123_v38, 1  ;;  %v1890_v50 = vadd.f32 %v1842_v1, %v1790_v28  ;;  %v2222_v16 = vrot.slane %v2124_v37, 1 }
 0x131   : > { %v2465_v43 = vrot.slane %v2367_v40, 2  ;;  %v2466_v47 = vrot.slane %v2368_v57, 2  ;;  %v2125_v44 = vmul.f32 %v5095_v19, %v5203_v23  ;;  %v2369_v62 = vmul.f32 %v5099_v54, %v5203_v23 }
 0x132   : > { %v2609_v2 = vadd.f32 %v5103_v8, %v2573_v24  ;;  %v1891_v22 = vadd.f32 %v1843_v4, %v1791_v9  ;;  %v1942_v41 = vmul.f32 %v5215_v10, %v4655_v27  ;;  %v2223_v60 = vsel %vm728_vm0, %v2221_v36, %v2222_v16 }
 0x133   : > { %v2467_v45 = vsel %vm973_vm1, %v2465_v43, %v2466_v47  ;;  %v2224_v20 = vrot.slane %v2125_v44, 1  ;;  %v1943_v0 = vmul.f32 %v5222_v15, %v4655_v27  ;;  %v2330_v21 = vadd.f32 %v2223_v60, %v2086_v18  ;;  %v5275_v44 = vld [vmem:[%s3584_s12 + $0x78] sm:$0xff] }
 0x134   : > { %3362 = vst.msk [vmem:[%s3716_s23 + $0x208] sm:$0xff] %vm1154_vm2, %v2609_v2  ;;  %v2468_v17 = vrot.slane %v2369_v62, 2  ;;  %v1990_v31 = vadd.f32 %v1942_v41, %v1890_v50  ;;  %v1792_v51 = vmul.f32 %v5115_v33, %v4642_v42  ;;  %v1844_v55 = vmul.f32 %v5165_v11, %v4649_v35  ;;  %v5280_v62 = vld [vmem:[%s3584_s12 + $0x80] sm:$0xff] }
 0x135   : > { %v2225_v13 = vsel %vm728_vm0, %v2222_v16, %v2224_v20  ;;  %v1991_v56 = vadd.f32 %v1943_v0, %v1891_v22  ;;  %v1944_v52 = vmul.f32 %v5234_v32, %v4655_v27  ;;  %v2574_v58 = vadd.f32 %v2467_v45, %v2330_v21 }
 0x136   : > { %v2331_v28 = vadd.f32 %v2225_v13, %v2087_v26  ;;  %v2469_v9 = vsel %vm973_vm1, %v2466_v47, %v2468_v17  ;;  %v5240_v49 = vadd.f32 %v1990_v31, %v5082_v7  ;;  %v1892_v5 = vadd.f32 %v1844_v55, %v1792_v51  ;;  %v5295_v55 = vld [vmem:[%s3584_s12 + $0x88] sm:$0x3] }
 0x137   : > { %v5243_v33 = vadd.f32 %v1991_v56, %v5091_v59  ;;  %v1793_v34 = vmul.f32 %v5152_v30, %v4642_v42  ;;  %v1794_v25 = vmul.f32 %v5157_v46, %v4642_v42  ;;  %v2610_v1 = vadd.f32 %v5103_v8, %v2574_v58 }
 0x138   : > { %v2575_v4 = vadd.f32 %v2469_v9, %v2331_v28  ;;  %v2088_v63 = vmul.f32 %v5086_v29, %v5240_v49  ;;  %v2126_v39 = vmul.f32 %v5095_v19, %v5240_v49  ;;  %v2370_v30 = vmul.f32 %v5099_v54, %v5240_v49 }
 0x139   : > { %v2127_v18 = vmul.f32 %v5095_v19, %v5243_v33  ;;  %v2371_v46 = vmul.f32 %v5099_v54, %v5243_v33  ;;  %v1992_v38 = vadd.f32 %v1944_v52, %v1892_v5  ;;  %3363 = vst.msk [vmem:[%s3716_s23 + $0x210] sm:$0xff] %vm1154_vm2, %v2610_v1  ;;  %v2089_v57 = vmul.f32 %v5086_v29, %v5243_v33 }
 0x13a   : > { %v2611_v37 = vadd.f32 %v5103_v8, %v2575_v4  ;;  %v2226_v40 = vrot.slane %v2126_v39, 1  ;;  %v1845_v24 = vmul.f32 %v5215_v10, %v4649_v35  ;;  %v2470_v26 = vrot.slane %v2370_v30, 2 }
 0x13b   : > { %v2227_v36 = vrot.slane %v2127_v18, 1  ;;  %v2471_v50 = vrot.slane %v2371_v46, 2  ;;  %v5268_v16 = vadd.f32 %v1992_v38, %v5136_v12  ;;  %v1846_v43 = vmul.f32 %v5222_v15, %v4649_v35 }
 0x13c   : > { %3364 = vst.msk [vmem:[%s3716_s23 + $0x218] sm:$0xff] %vm1154_vm2, %v2611_v37  ;;  %v1893_v47 = vadd.f32 %v1845_v24, %v1793_v34  ;;  %v1945_v2 = vmul.f32 %v5275_v44, %v4655_v27  ;;  %v1946_v22 = vmul.f32 %v5280_v62, %v4655_v27  ;;  %v1795_v31 = vmul.f32 %v5165_v11, %v4642_v42 }
 0x13d   : > { %v2228_v41 = vsel %vm728_vm0, %v2226_v40, %v2227_v36  ;;  %v2472_v60 = vsel %vm973_vm1, %v2470_v26, %v2471_v50  ;;  %v2128_v45 = vmul.f32 %v5095_v19, %v5268_v16  ;;  %v2372_v20 = vmul.f32 %v5099_v54, %v5268_v16 }
 0x13e   : > { %v2332_v0 = vadd.f32 %v2228_v41, %v2088_v63  ;;  %v1894_v21 = vadd.f32 %v1846_v43, %v1794_v25  ;;  %v1993_v17 = vadd.f32 %v1945_v2, %v1893_v47  ;;  %v1847_v56 = vmul.f32 %v5234_v32, %v4649_v35 }
 0x13f   : > { %v2229_v51 = vrot.slane %v2128_v45, 1  ;;  %v2473_v13 = vrot.slane %v2372_v20, 2  ;;  %v1947_v52 = vmul.f32 %v5295_v55, %v4655_v27  ;;  %v1796_v5 = vmul.f32 %v5215_v10, %v4642_v42  ;;  %v5339_v20 = vld [vmem:[%s3584_s12 + $0x90] sm:$0xff] }
 0x140   : > { %v2576_v58 = vadd.f32 %v2472_v60, %v2332_v0  ;;  %v1994_v28 = vadd.f32 %v1946_v22, %v1894_v21  ;;  %v5300_v9 = vadd.f32 %v1993_v17, %v5082_v7  ;;  %v1895_v25 = vadd.f32 %v1847_v56, %v1795_v31  ;;  %v5348_v31 = vld [vmem:[%s3584_s12 + $0x98] sm:$0xff] }
 0x141   : > { %v2230_v11 = vsel %vm728_vm0, %v2227_v36, %v2229_v51  ;;  %v2474_v34 = vsel %vm973_vm1, %v2471_v50, %v2473_v13  ;;  %v1797_v1 = vmul.f32 %v5222_v15, %v4642_v42  ;;  %v1848_v38 = vmul.f32 %v5275_v44, %v4649_v35 }
 0x142   : > { %v2612_v4 = vadd.f32 %v5103_v8, %v2576_v58  ;;  %v2333_v63 = vadd.f32 %v2230_v11, %v2089_v57  ;;  %v5310_v39 = vadd.f32 %v1994_v28, %v5091_v59  ;;  %v2090_v18 = vmul.f32 %v5086_v29, %v5300_v9 }
 0x143   : > { %v2129_v10 = vmul.f32 %v5095_v19, %v5300_v9  ;;  %v2373_v30 = vmul.f32 %v5099_v54, %v5300_v9  ;;  %v1995_v46 = vadd.f32 %v1947_v52, %v1895_v25  ;;  %v1849_v50 = vmul.f32 %v5280_v62, %v4649_v35 }
 0x144   : > { %3365 = vst.msk [vmem:[%s3716_s23 + $0x220] sm:$0xff] %vm1154_vm2, %v2612_v4  ;;  %v2577_v15 = vadd.f32 %v2474_v34, %v2333_v63  ;;  %v2130_v37 = vmul.f32 %v5095_v19, %v5310_v39  ;;  %v2374_v40 = vmul.f32 %v5099_v54, %v5310_v39  ;;  %v2091_v57 = vmul.f32 %v5086_v29, %v5310_v39  ;;  %v5357_v34 = vld [vmem:[%s3584_s12 + $0xa0] sm:$0x3] }
 0x145   : > { %v2231_v24 = vrot.slane %v2129_v10, 1  ;;  %v2475_v36 = vrot.slane %v2373_v30, 2  ;;  %v5329_v26 = vadd.f32 %v1995_v46, %v5136_v12  ;;  %v1896_v22 = vadd.f32 %v1848_v38, %v1796_v5 }
 0x146   : > { %v2613_v43 = vadd.f32 %v5103_v8, %v2577_v15  ;;  %v2232_v47 = vrot.slane %v2130_v37, 1  ;;  %v2476_v2 = vrot.slane %v2374_v40, 2  ;;  %v1897_v45 = vadd.f32 %v1849_v50, %v1797_v1 }
 0x147   : > { %v2131_v41 = vmul.f32 %v5095_v19, %v5329_v26  ;;  %v2375_v60 = vmul.f32 %v5099_v54, %v5329_v26  ;;  %v1948_v0 = vmul.f32 %v5339_v20, %v4655_v27  ;;  %v1949_v51 = vmul.f32 %v5348_v31, %v4655_v27 }
 0x148   : > { %3366 = vst.msk [vmem:[%s3716_s23 + $0x228] sm:$0xff] %vm1154_vm2, %v2613_v43  ;;  %v2233_v21 = vsel %vm728_vm0, %v2231_v24, %v2232_v47  ;;  %v2477_v17 = vsel %vm973_vm1, %v2475_v36, %v2476_v2  ;;  %v1798_v13 = vmul.f32 %v5234_v32, %v4642_v42  ;;  %v1850_v11 = vmul.f32 %v5295_v55, %v4649_v35 }
 0x149   : > { %v2334_v56 = vadd.f32 %v2233_v21, %v2090_v18  ;;  %v2234_v52 = vrot.slane %v2131_v41, 1  ;;  %v2478_v58 = vrot.slane %v2375_v60, 2  ;;  %v1996_v28 = vadd.f32 %v1948_v0, %v1896_v22 }
 0x14a   : > { %v1997_v5 = vadd.f32 %v1949_v51, %v1897_v45  ;;  %v1950_v25 = vmul.f32 %v5357_v34, %v4655_v27  ;;  %v1799_v1 = vmul.f32 %v5275_v44, %v4642_v42  ;;  %v1898_v46 = vadd.f32 %v1850_v11, %v1798_v13  ;;  %v5402_v13 = vld [vmem:[%s3584_s12 + $0xb0] sm:$0xff] }
 0x14b   : > { %v2578_v4 = vadd.f32 %v2477_v17, %v2334_v56  ;;  %v2235_v32 = vsel %vm728_vm0, %v2232_v47, %v2234_v52  ;;  %v2479_v63 = vsel %vm973_vm1, %v2476_v2, %v2478_v58  ;;  %v5366_v18 = vadd.f32 %v1996_v28, %v5082_v7  ;;  %v5397_v17 = vld [vmem:[%s3584_s12 + $0xa8] sm:$0xff] }
 0x14c   : > { %v2335_v10 = vadd.f32 %v2235_v32, %v2091_v57  ;;  %v5369_v30 = vadd.f32 %v1997_v5, %v5091_v59  ;;  %v1800_v38 = vmul.f32 %v5280_v62, %v4642_v42  ;;  %v1998_v36 = vadd.f32 %v1950_v25, %v1898_v46  ;;  %v5419_v46 = vld [vmem:[%s3584_s12 + $0xb8] sm:$0x3] }
 0x14d   : > { %v2614_v15 = vadd.f32 %v5103_v8, %v2578_v4  ;;  %v2092_v44 = vmul.f32 %v5086_v29, %v5366_v18  ;;  %v2132_v37 = vmul.f32 %v5095_v19, %v5366_v18  ;;  %v2376_v40 = vmul.f32 %v5099_v54, %v5366_v18 }
 0x14e   : > { %v2579_v57 = vadd.f32 %v2479_v63, %v2335_v10  ;;  %v2133_v24 = vmul.f32 %v5095_v19, %v5369_v30  ;;  %v2377_v62 = vmul.f32 %v5099_v54, %v5369_v30  ;;  %v2093_v47 = vmul.f32 %v5086_v29, %v5369_v30 }
 0x14f   : > { %3367 = vst.msk [vmem:[%s3716_s23 + $0x230] sm:$0xff] %vm1154_vm2, %v2614_v15  ;;  %v2236_v50 = vrot.slane %v2132_v37, 1  ;;  %v2480_v43 = vrot.slane %v2376_v40, 2  ;;  %v1851_v2 = vmul.f32 %v5339_v20, %v4649_v35  ;;  %v5392_v45 = vadd.f32 %v1998_v36, %v5136_v12 }
 0x150   : > { %v2615_v22 = vadd.f32 %v5103_v8, %v2579_v57  ;;  %v2237_v41 = vrot.slane %v2133_v24, 1  ;;  %v2481_v60 = vrot.slane %v2377_v62, 2  ;;  %v1852_v0 = vmul.f32 %v5348_v31, %v4649_v35 }
 0x151   : > { %v1899_v21 = vadd.f32 %v1851_v2, %v1799_v1  ;;  %v1951_v51 = vmul.f32 %v5397_v17, %v4655_v27  ;;  %v1952_v56 = vmul.f32 %v5402_v13, %v4655_v27  ;;  %v2134_v28 = vmul.f32 %v5095_v19, %v5392_v45 }
 0x152   : > { %3368 = vst.msk [vmem:[%s3716_s23 + $0x238] sm:$0xff] %vm1154_vm2, %v2615_v22  ;;  %v2238_v52 = vsel %vm728_vm0, %v2236_v50, %v2237_v41  ;;  %v2482_v58 = vsel %vm973_vm1, %v2480_v43, %v2481_v60  ;;  %v2378_v5 = vmul.f32 %v5099_v54, %v5392_v45  ;;  %v1900_v25 = vadd.f32 %v1852_v0, %v1800_v38 }
 0x153   : > { %v2336_v11 = vadd.f32 %v2238_v52, %v2092_v44  ;;  %v1999_v1 = vadd.f32 %v1951_v51, %v1899_v21  ;;  %v1801_v4 = vmul.f32 %v5295_v55, %v4642_v42  ;;  %v2239_v32 = vrot.slane %v2134_v28, 1 }
 0x154   : > { %v2483_v63 = vrot.slane %v2378_v5, 2  ;;  %v1853_v10 = vmul.f32 %v5357_v34, %v4649_v35  ;;  %v1953_v15 = vmul.f32 %v5419_v46, %v4655_v27  ;;  %v2000_v40 = vadd.f32 %v1952_v56, %v1900_v25 }
 0x155   : > { %v2580_v37 = vadd.f32 %v2482_v58, %v2336_v11  ;;  %v5424_v44 = vadd.f32 %v1999_v1, %v5082_v7  ;;  %v1802_v38 = vmul.f32 %v5339_v20, %v4642_v42  ;;  %v2240_v55 = vsel %vm728_vm0, %v2237_v41, %v2239_v32 }
 0x156   : > { %v2484_v57 = vsel %vm973_vm1, %v2481_v60, %v2483_v63  ;;  %v1901_v24 = vadd.f32 %v1853_v10, %v1801_v4  ;;  %v1803_v62 = vmul.f32 %v5348_v31, %v4642_v42  ;;  %v2337_v50 = vadd.f32 %v2240_v55, %v2093_v47  ;;  %v5463_v63 = vld [vmem:[%s3584_s12 + $0xc0] sm:$0xff] }
 0x157   : > { %v2616_v36 = vadd.f32 %v5103_v8, %v2580_v37  ;;  %v5434_v43 = vadd.f32 %v2000_v40, %v5091_v59  ;;  %v2094_v2 = vmul.f32 %v5086_v29, %v5424_v44  ;;  %v2135_v20 = vmul.f32 %v5095_v19, %v5424_v44  ;;  %v5472_v40 = vld [vmem:[%s3584_s12 + $0xc8] sm:$0xff] }
 0x158   : > { %v2379_v22 = vmul.f32 %v5099_v54, %v5424_v44  ;;  %v2001_v41 = vadd.f32 %v1953_v15, %v1901_v24  ;;  %v1854_v60 = vmul.f32 %v5397_v17, %v4649_v35  ;;  %v2581_v31 = vadd.f32 %v2484_v57, %v2337_v50 }
 0x159   : > { %3369 = vst.msk [vmem:[%s3716_s23 + $0x240] sm:$0xff] %vm1154_vm2, %v2616_v36  ;;  %v2136_v47 = vmul.f32 %v5095_v19, %v5434_v43  ;;  %v2380_v0 = vmul.f32 %v5099_v54, %v5434_v43  ;;  %v2095_v21 = vmul.f32 %v5086_v29, %v5434_v43  ;;  %v2241_v51 = vrot.slane %v2135_v20, 1 }
 0x15a   : > { %v2485_v56 = vrot.slane %v2379_v22, 2  ;;  %v5453_v52 = vadd.f32 %v2001_v41, %v5136_v12  ;;  %v1855_v58 = vmul.f32 %v5402_v13, %v4649_v35  ;;  %v2617_v28 = vadd.f32 %v5103_v8, %v2581_v31  ;;  %v5481_v22 = vld [vmem:[%s3584_s12 + $0xd0] sm:$0x3] }
 0x15b   : > { %v2242_v5 = vrot.slane %v2136_v47, 1  ;;  %v2486_v11 = vrot.slane %v2380_v0, 2  ;;  %v1902_v25 = vadd.f32 %v1854_v60, %v1802_v38  ;;  %v1954_v10 = vmul.f32 %v5463_v63, %v4655_v27 }
 0x15c   : > { %v2137_v1 = vmul.f32 %v5095_v19, %v5453_v52  ;;  %v2381_v4 = vmul.f32 %v5099_v54, %v5453_v52  ;;  %v1903_v32 = vadd.f32 %v1855_v58, %v1803_v62  ;;  %3370 = vst.msk [vmem:[%s3716_s23 + $0x248] sm:$0xff] %vm1154_vm2, %v2617_v28  ;;  %v1955_v38 = vmul.f32 %v5472_v40, %v4655_v27 }
 0x15d   : > { %v2243_v15 = vsel %vm728_vm0, %v2241_v51, %v2242_v5  ;;  %v2487_v37 = vsel %vm973_vm1, %v2485_v56, %v2486_v11  ;;  %v1804_v55 = vmul.f32 %v5357_v34, %v4642_v42  ;;  %v2002_v36 = vadd.f32 %v1954_v10, %v1902_v25 }
 0x15e   : > { %v2338_v57 = vadd.f32 %v2243_v15, %v2094_v2  ;;  %v2244_v24 = vrot.slane %v2137_v1, 1  ;;  %v2488_v62 = vrot.slane %v2381_v4, 2  ;;  %v2003_v50 = vadd.f32 %v1955_v38, %v1903_v32 }
 0x15f   : > { %v1856_v20 = vmul.f32 %v5419_v46, %v4649_v35  ;;  %v1956_v41 = vmul.f32 %v5481_v22, %v4655_v27  ;;  %v1805_v60 = vmul.f32 %v5397_v17, %v4642_v42  ;;  %v5490_v47 = vadd.f32 %v2002_v36, %v5082_v7  ;;  %v5521_v36 = vld [vmem:[%s3584_s12 + $0xd8] sm:$0xff] }
 0x160   : > { %v2582_v31 = vadd.f32 %v2487_v37, %v2338_v57  ;;  %v2245_v34 = vsel %vm728_vm0, %v2242_v5, %v2244_v24  ;;  %v2489_v2 = vsel %vm973_vm1, %v2486_v11, %v2488_v62  ;;  %v5493_v51 = vadd.f32 %v2003_v50, %v5091_v59 }
 0x161   : > { %v2339_v0 = vadd.f32 %v2245_v34, %v2095_v21  ;;  %v1904_v56 = vadd.f32 %v1856_v20, %v1804_v55  ;;  %v1806_v58 = vmul.f32 %v5402_v13, %v4642_v42  ;;  %v2096_v17 = vmul.f32 %v5086_v29, %v5490_v47  ;;  %v5526_v20 = vld [vmem:[%s3584_s12 + $0xe0] sm:$0xff] }
 0x162   : > { %v2618_v28 = vadd.f32 %v5103_v8, %v2582_v31  ;;  %v2138_v5 = vmul.f32 %v5095_v19, %v5490_v47  ;;  %v2382_v11 = vmul.f32 %v5099_v54, %v5490_v47  ;;  %v2139_v25 = vmul.f32 %v5095_v19, %v5493_v51 }
 0x163   : > { %v2583_v21 = vadd.f32 %v2489_v2, %v2339_v0  ;;  %v2383_v13 = vmul.f32 %v5099_v54, %v5493_v51  ;;  %v2004_v1 = vadd.f32 %v1956_v41, %v1904_v56  ;;  %v2097_v10 = vmul.f32 %v5086_v29, %v5493_v51 }
 0x164   : > { %3371 = vst.msk [vmem:[%s3716_s23 + $0x250] sm:$0xff] %vm1154_vm2, %v2618_v28  ;;  %v2246_v4 = vrot.slane %v2138_v5, 1  ;;  %v2490_v32 = vrot.slane %v2382_v11, 2  ;;  %v1857_v15 = vmul.f32 %v5463_v63, %v4649_v35  ;;  %v2247_v38 = vrot.slane %v2139_v25, 1 }
 0x165   : > { %v2619_v37 = vadd.f32 %v5103_v8, %v2583_v21  ;;  %v2491_v55 = vrot.slane %v2383_v13, 2  ;;  %v5516_v57 = vadd.f32 %v2004_v1, %v5136_v12  ;;  %v1858_v24 = vmul.f32 %v5472_v40, %v4649_v35  ;;  %v5543_v13 = vld [vmem:[%s3584_s12 + $0xe8] sm:$0x3] }
 0x166   : > { %v1905_v62 = vadd.f32 %v1857_v15, %v1805_v60  ;;  %v1957_v50 = vmul.f32 %v5521_v36, %v4655_v27  ;;  %v1958_v41 = vmul.f32 %v5526_v20, %v4655_v27  ;;  %v2248_v31 = vsel %vm728_vm0, %v2246_v4, %v2247_v38 }
 0x167   : > { %3372 = vst.msk [vmem:[%s3716_s23 + $0x258] sm:$0xff] %vm1154_vm2, %v2619_v37  ;;  %v2492_v34 = vsel %vm973_vm1, %v2490_v32, %v2491_v55  ;;  %v2140_v60 = vmul.f32 %v5095_v19, %v5516_v57  ;;  %v2384_v2 = vmul.f32 %v5099_v54, %v5516_v57  ;;  %v2340_v0 = vadd.f32 %v2248_v31, %v2096_v17 }
 0x168   : > { %v1906_v56 = vadd.f32 %v1858_v24, %v1806_v58  ;;  %v2005_v28 = vadd.f32 %v1957_v50, %v1905_v62  ;;  %v1807_v5 = vmul.f32 %v5419_v46, %v4642_v42  ;;  %v1859_v25 = vmul.f32 %v5481_v22, %v4649_v35 }
 0x169   : > { %v2249_v11 = vrot.slane %v2140_v60, 1  ;;  %v2493_v21 = vrot.slane %v2384_v2, 2  ;;  %v1959_v1 = vmul.f32 %v5543_v13, %v4655_v27  ;;  %v2584_v4 = vadd.f32 %v2492_v34, %v2340_v0 }
 0x16a   : > { %v2006_v32 = vadd.f32 %v1958_v41, %v1906_v56  ;;  %v5548_v17 = vadd.f32 %v2005_v28, %v5082_v7  ;;  %v1808_v58 = vmul.f32 %v5463_v63, %v4642_v42  ;;  %v1907_v37 = vadd.f32 %v1859_v25, %v1807_v5 }
 0x16b   : > { %v2250_v46 = vsel %vm728_vm0, %v2247_v38, %v2249_v11  ;;  %v2494_v15 = vsel %vm973_vm1, %v2491_v55, %v2493_v21  ;;  %v1809_v24 = vmul.f32 %v5472_v40, %v4642_v42  ;;  %v2620_v62 = vadd.f32 %v5103_v8, %v2584_v4 }
 0x16c   : > { %v2341_v50 = vadd.f32 %v2250_v46, %v2097_v10  ;;  %v5558_v31 = vadd.f32 %v2006_v32, %v5091_v59  ;;  %v2098_v41 = vmul.f32 %v5086_v29, %v5548_v17  ;;  %v2141_v63 = vmul.f32 %v5095_v19, %v5548_v17 }
 0x16d   : > { %v2385_v38 = vmul.f32 %v5099_v54, %v5548_v17  ;;  %v2007_v55 = vadd.f32 %v1959_v1, %v1907_v37  ;;  %v1860_v34 = vmul.f32 %v5521_v36, %v4649_v35  ;;  %3373 = vst.msk [vmem:[%s3716_s23 + $0x260] sm:$0xff] %vm1154_vm2, %v2620_v62  ;;  %v1861_v5 = vmul.f32 %v5526_v20, %v4649_v35 }
 0x16e   : > { %6648 = vst [vmem:[#allocation2_spill] sm:$0xff] %v5558_v31  ;;  %v2585_v40 = vadd.f32 %v2494_v15, %v2341_v50  ;;  %v2142_v10 = vmul.f32 %v5095_v19, %v5558_v31  ;;  %v2386_v60 = vmul.f32 %v5099_v54, %v5558_v31  ;;  %v2099_v2 = vmul.f32 %v5086_v29, %v5558_v31  ;;  %v5587_v15 = vld [vmem:[%s3584_s12 + $0xf0] sm:$0xff] }
 0x16f   : > { %v2251_v0 = vrot.slane %v2141_v63, 1  ;;  %v2495_v56 = vrot.slane %v2385_v38, 2  ;;  %v5577_v28 = vadd.f32 %v2007_v55, %v5136_v12  ;;  %v1908_v1 = vadd.f32 %v1860_v34, %v1808_v58  ;;  %v5596_v58 = vld [vmem:[%s3584_s12 + $0xf8] sm:$0xff] }
 0x170   : > { %v2621_v11 = vadd.f32 %v5103_v8, %v2585_v40  ;;  %v2252_v21 = vrot.slane %v2142_v10, 1  ;;  %v2496_v25 = vrot.slane %v2386_v60, 2  ;;  %v1909_v46 = vadd.f32 %v1861_v5, %v1809_v24  ;;  %v5605_v5 = vld [vmem:[%s3584_s12 + $0x100] sm:$0x3] }
 0x171   : > { %6649 = vst [vmem:[#allocation3_spill] sm:$0xff] %v5577_v28  ;;  %v2143_v4 = vmul.f32 %v5095_v19, %v5577_v28  ;;  %v2387_v32 = vmul.f32 %v5099_v54, %v5577_v28  ;;  %v1960_v37 = vmul.f32 %v5587_v15, %v4655_v27  ;;  %v1961_v63 = vmul.f32 %v5596_v58, %v4655_v27 }
 0x172   : > { %3374 = vst.msk [vmem:[%s3716_s23 + $0x268] sm:$0xff] %vm1154_vm2, %v2621_v11  ;;  %v2253_v62 = vsel %vm728_vm0, %v2251_v0, %v2252_v21  ;;  %v2497_v50 = vsel %vm973_vm1, %v2495_v56, %v2496_v25  ;;  %v1810_v38 = vmul.f32 %v5481_v22, %v4642_v42  ;;  %v1862_v60 = vmul.f32 %v5543_v13, %v4649_v35 }
 0x173   : > { %v2342_v24 = vadd.f32 %v2253_v62, %v2098_v41  ;;  %v2254_v55 = vrot.slane %v2143_v4, 1  ;;  %v2498_v34 = vrot.slane %v2387_v32, 2  ;;  %v2008_v40 = vadd.f32 %v1960_v37, %v1908_v1 }
 0x174   : > { %v2009_v10 = vadd.f32 %v1961_v63, %v1909_v46  ;;  %v1962_v0 = vmul.f32 %v5605_v5, %v4655_v27  ;;  %v1811_v56 = vmul.f32 %v5521_v36, %v4642_v42  ;;  %v1910_v46 = vadd.f32 %v1862_v60, %v1810_v38 }
 0x175   : > { %v2586_v11 = vadd.f32 %v2497_v50, %v2342_v24  ;;  %v2255_v22 = vsel %vm728_vm0, %v2252_v21, %v2254_v55  ;;  %v2499_v41 = vsel %vm973_vm1, %v2496_v25, %v2498_v34  ;;  %v5614_v1 = vadd.f32 %v2008_v40, %v5082_v7 }
 0x176   : > { %v2343_v4 = vadd.f32 %v2255_v22, %v2099_v2  ;;  %v5617_v32 = vadd.f32 %v2009_v10, %v5091_v59  ;;  %v1812_v37 = vmul.f32 %v5526_v20, %v4642_v42  ;;  %v2010_v63 = vadd.f32 %v1962_v0, %v1910_v46  ;;  %v5650_v46 = vld [vmem:[%s3584_s12 + $0x110] sm:$0xff] }
 0x177   : > { %6650 = vst [vmem:[#allocation4_spill] sm:$0xff] %v5614_v1  ;;  %v2622_v62 = vadd.f32 %v5103_v8, %v2586_v11  ;;  %v2100_v36 = vmul.f32 %v5086_v29, %v5614_v1  ;;  %v2144_v21 = vmul.f32 %v5095_v19, %v5614_v1  ;;  %v2388_v25 = vmul.f32 %v5099_v54, %v5614_v1 }
 0x178   : > { %6651 = vst [vmem:[#allocation5_spill] sm:$0xff] %v5617_v32  ;;  %v2587_v2 = vadd.f32 %v2499_v41, %v2343_v4  ;;  %v2145_v50 = vmul.f32 %v5095_v19, %v5617_v32  ;;  %v2389_v20 = vmul.f32 %v5099_v54, %v5617_v32  ;;  %v2101_v55 = vmul.f32 %v5086_v29, %v5617_v32  ;;  %v5645_v41 = vld [vmem:[%s3584_s12 + $0x108] sm:$0xff] }
 0x179   : > { %3375 = vst.msk [vmem:[%s3716_s23 + $0x270] sm:$0xff] %vm1154_vm2, %v2622_v62  ;;  %v2256_v38 = vrot.slane %v2144_v21, 1  ;;  %v2500_v24 = vrot.slane %v2388_v25, 2  ;;  %v1863_v34 = vmul.f32 %v5587_v15, %v4649_v35  ;;  %v5640_v11 = vadd.f32 %v2010_v63, %v5136_v12 }
 0x17a   : > { %v2623_v40 = vadd.f32 %v5103_v8, %v2587_v2  ;;  %v2257_v10 = vrot.slane %v2145_v50, 1  ;;  %v2501_v60 = vrot.slane %v2389_v20, 2  ;;  %v1864_v0 = vmul.f32 %v5596_v58, %v4649_v35 }
 0x17b   : > { %6652 = vst [vmem:[#allocation6_spill] sm:$0xff] %v5640_v11  ;;  %v1911_v22 = vadd.f32 %v1863_v34, %v1811_v56  ;;  %v1963_v4 = vmul.f32 %v5645_v41, %v4655_v27  ;;  %v1964_v62 = vmul.f32 %v5650_v46, %v4655_v27  ;;  %v2146_v56 = vmul.f32 %v5095_v19, %v5640_v11 }
 0x17c   : > { %3376 = vst.msk [vmem:[%s3716_s23 + $0x278] sm:$0xff] %vm1154_vm2, %v2623_v40  ;;  %v2258_v21 = vsel %vm728_vm0, %v2256_v38, %v2257_v10  ;;  %v2502_v25 = vsel %vm973_vm1, %v2500_v24, %v2501_v60  ;;  %v2390_v2 = vmul.f32 %v5099_v54, %v5640_v11  ;;  %v1912_v20 = vadd.f32 %v1864_v0, %v1812_v37  ;;  %v5667_v38 = vld [vmem:[%s3584_s12 + $0x118] sm:$0x3] }
 0x17d   : > { %v2344_v50 = vadd.f32 %v2258_v21, %v2100_v36  ;;  %v2011_v63 = vadd.f32 %v1963_v4, %v1911_v22  ;;  %v1813_v34 = vmul.f32 %v5543_v13, %v4642_v42  ;;  %v2259_v32 = vrot.slane %v2146_v56, 1 }
 0x17e   : > { %v2503_v1 = vrot.slane %v2390_v2, 2  ;;  %v1865_v40 = vmul.f32 %v5605_v5, %v4649_v35  ;;  %v1965_v24 = vmul.f32 %v5667_v38, %v4655_v27  ;;  %v2012_v31 = vadd.f32 %v1964_v62, %v1912_v20 }
 0x17f   : > { %v2588_v28 = vadd.f32 %v2502_v25, %v2344_v50  ;;  %v5672_v36 = vadd.f32 %v2011_v63, %v5082_v7  ;;  %v1814_v37 = vmul.f32 %v5587_v15, %v4642_v42  ;;  %v2260_v13 = vsel %vm728_vm0, %v2257_v10, %v2259_v32 }
 0x180   : > { %v2504_v0 = vsel %vm973_vm1, %v2501_v60, %v2503_v1  ;;  %v1913_v22 = vadd.f32 %v1865_v40, %v1813_v34  ;;  %v1815_v4 = vmul.f32 %v5596_v58, %v4642_v42  ;;  %v2345_v56 = vadd.f32 %v2260_v13, %v2101_v55 }
 0x181   : > { %6653 = vst [vmem:[#allocation7_spill] sm:$0xff] %v5672_v36  ;;  %v2624_v21 = vadd.f32 %v5103_v8, %v2588_v28  ;;  %v5682_v25 = vadd.f32 %v2012_v31, %v5091_v59  ;;  %v2102_v62 = vmul.f32 %v5086_v29, %v5672_v36  ;;  %v2147_v15 = vmul.f32 %v5095_v19, %v5672_v36 }
 0x182   : > { %v2391_v32 = vmul.f32 %v5099_v54, %v5672_v36  ;;  %v2013_v1 = vadd.f32 %v1965_v24, %v1913_v22  ;;  %v1866_v10 = vmul.f32 %v5645_v41, %v4649_v35  ;;  %v2589_v28 = vadd.f32 %v2504_v0, %v2345_v56 }
 0x183   : > { %6654 = vst [vmem:[#allocation8_spill] sm:$0xff] %v5682_v25  ;;  %3377 = vst.msk [vmem:[%s3716_s23 + $0x280] sm:$0xff] %vm1154_vm2, %v2624_v21  ;;  %v2148_v31 = vmul.f32 %v5095_v19, %v5682_v25  ;;  %v2392_v58 = vmul.f32 %v5099_v54, %v5682_v25  ;;  %v2103_v55 = vmul.f32 %v5086_v29, %v5682_v25  ;;  %v2261_v60 = vrot.slane %v2147_v15, 1  ;;  %v5711_v21 = vld [vmem:[%s3584_s12 + $0x120] sm:$0xff] }
 0x184   : > { %v2505_v2 = vrot.slane %v2391_v32, 2  ;;  %v5701_v50 = vadd.f32 %v2013_v1, %v5136_v12  ;;  %v1867_v20 = vmul.f32 %v5650_v46, %v4649_v35  ;;  %v2625_v63 = vadd.f32 %v5103_v8, %v2589_v28 }
 0x185   : > { %v2262_v34 = vrot.slane %v2148_v31, 1  ;;  %v2506_v40 = vrot.slane %v2392_v58, 2  ;;  %v1914_v24 = vadd.f32 %v1866_v10, %v1814_v37  ;;  %v1966_v56 = vmul.f32 %v5711_v21, %v4655_v27  ;;  %v5720_v37 = vld [vmem:[%s3584_s12 + $0x128] sm:$0xff] }
 0x186   : > { %6655 = vst [vmem:[#allocation9_spill] sm:$0xff] %v5701_v50  ;;  %v2149_v13 = vmul.f32 %v5095_v19, %v5701_v50  ;;  %v2393_v0 = vmul.f32 %v5099_v54, %v5701_v50  ;;  %v1915_v22 = vadd.f32 %v1867_v20, %v1815_v4  ;;  %3378 = vst.msk [vmem:[%s3716_s23 + $0x288] sm:$0xff] %vm1154_vm2, %v2625_v63  ;;  %v5729_v50 = vld [vmem:[%s3584_s12 + $0x130] sm:$0x3] }
 0x187   : > { %v2263_v15 = vsel %vm728_vm0, %v2261_v60, %v2262_v34  ;;  %v2507_v32 = vsel %vm973_vm1, %v2505_v2, %v2506_v40  ;;  %v1967_v1 = vmul.f32 %v5720_v37, %v4655_v27  ;;  %v1816_v10 = vmul.f32 %v5605_v5, %v4642_v42 }
 0x188   : > { %v2346_v4 = vadd.f32 %v2263_v15, %v2102_v62  ;;  %v2264_v28 = vrot.slane %v2149_v13, 1  ;;  %v2508_v31 = vrot.slane %v2393_v0, 2  ;;  %v2014_v58 = vadd.f32 %v1966_v56, %v1914_v24 }
 0x189   : > { %v2015_v20 = vadd.f32 %v1967_v1, %v1915_v22  ;;  %v1868_v63 = vmul.f32 %v5667_v38, %v4649_v35  ;;  %v1968_v60 = vmul.f32 %v5729_v50, %v4655_v27  ;;  %v1817_v2 = vmul.f32 %v5645_v41, %v4642_v42 }
 0x18a   : > { %v2590_v25 = vadd.f32 %v2507_v32, %v2346_v4  ;;  %v2265_v5 = vsel %vm728_vm0, %v2262_v34, %v2264_v28  ;;  %v2509_v62 = vsel %vm973_vm1, %v2506_v40, %v2508_v31  ;;  %v5738_v24 = vadd.f32 %v2014_v58, %v5082_v7 }
 0x18b   : > { %v2347_v13 = vadd.f32 %v2265_v5, %v2103_v55  ;;  %v5741_v0 = vadd.f32 %v2015_v20, %v5091_v59  ;;  %v1916_v22 = vadd.f32 %v1868_v63, %v1816_v10  ;;  %v1818_v56 = vmul.f32 %v5650_v46, %v4642_v42 }
 0x18c   : > { %6656 = vst [vmem:[#allocation10_spill] sm:$0xff] %v5738_v24  ;;  %v2626_v15 = vadd.f32 %v5103_v8, %v2590_v25  ;;  %v2104_v41 = vmul.f32 %v5086_v29, %v5738_v24  ;;  %v2150_v34 = vmul.f32 %v5095_v19, %v5738_v24  ;;  %v2394_v40 = vmul.f32 %v5099_v54, %v5738_v24 }
 0x18d   : > { %6657 = vst [vmem:[#allocation11_spill] sm:$0xff] %v5741_v0  ;;  %v2591_v55 = vadd.f32 %v2509_v62, %v2347_v13  ;;  %v2151_v32 = vmul.f32 %v5095_v19, %v5741_v0  ;;  %v2395_v46 = vmul.f32 %v5099_v54, %v5741_v0  ;;  %v2016_v1 = vadd.f32 %v1968_v60, %v1916_v22  ;;  %v5769_v62 = vld [vmem:[%s3584_s12 + $0x138] sm:$0xff]  ;;  %v5774_v22 = vld [vmem:[%s3584_s12 + $0x140] sm:$0xff] }
 0x18e   : > { %3379 = vst.msk [vmem:[%s3716_s23 + $0x290] sm:$0xff] %vm1154_vm2, %v2626_v15  ;;  %v2266_v25 = vrot.slane %v2150_v34, 1  ;;  %v2510_v10 = vrot.slane %v2394_v40, 2  ;;  %v2105_v4 = vmul.f32 %v5086_v29, %v5741_v0  ;;  %v1869_v28 = vmul.f32 %v5711_v21, %v4649_v35 }
 0x18f   : > { %v2627_v31 = vadd.f32 %v5103_v8, %v2591_v55  ;;  %v2267_v58 = vrot.slane %v2151_v32, 1  ;;  %v2511_v20 = vrot.slane %v2395_v46, 2  ;;  %v5764_v63 = vadd.f32 %v2016_v1, %v5136_v12 }
 0x190   : > { %v1870_v60 = vmul.f32 %v5720_v37, %v4649_v35  ;;  %v1917_v5 = vadd.f32 %v1869_v28, %v1817_v2  ;;  %v1969_v13 = vmul.f32 %v5769_v62, %v4655_v27  ;;  %v1970_v15 = vmul.f32 %v5774_v22, %v4655_v27 }
 0x191   : > { %6658 = vst [vmem:[#allocation12_spill] sm:$0xff] %v5764_v63  ;;  %3380 = vst.msk [vmem:[%s3716_s23 + $0x298] sm:$0xff] %vm1154_vm2, %v2627_v31  ;;  %v2268_v34 = vsel %vm728_vm0, %v2266_v25, %v2267_v58  ;;  %v2512_v40 = vsel %vm973_vm1, %v2510_v10, %v2511_v20  ;;  %v2152_v2 = vmul.f32 %v5095_v19, %v5764_v63  ;;  %v5791_v25 = vld [vmem:[%s3584_s12 + $0x148] sm:$0x3] }
 0x192   : > { %v2396_v55 = vmul.f32 %v5099_v54, %v5764_v63  ;;  %v2348_v32 = vadd.f32 %v2268_v34, %v2104_v41  ;;  %v1918_v46 = vadd.f32 %v1870_v60, %v1818_v56  ;;  %v2017_v1 = vadd.f32 %v1969_v13, %v1917_v5 }
 0x193   : > { %v1819_v28 = vmul.f32 %v5667_v38, %v4642_v42  ;;  %v2269_v0 = vrot.slane %v2152_v2, 1  ;;  %v1871_v31 = vmul.f32 %v5729_v50, %v4649_v35  ;;  %v1971_v10 = vmul.f32 %v5791_v25, %v4655_v27 }
 0x194   : > { %v2513_v24 = vrot.slane %v2396_v55, 2  ;;  %v2592_v36 = vadd.f32 %v2512_v40, %v2348_v32  ;;  %v2018_v11 = vadd.f32 %v1970_v15, %v1918_v46  ;;  %v5796_v41 = vadd.f32 %v2017_v1, %v5082_v7 }
 0x195   : > { %v1820_v56 = vmul.f32 %v5711_v21, %v4642_v42  ;;  %v2270_v38 = vsel %vm728_vm0, %v2267_v58, %v2269_v0  ;;  %v1919_v5 = vadd.f32 %v1871_v31, %v1819_v28  ;;  %v1821_v13 = vmul.f32 %v5720_v37, %v4642_v42 }
 0x196   : > { %6659 = vst [vmem:[#allocation13_spill] sm:$0xff] %v5796_v41  ;;  %v2514_v60 = vsel %vm973_vm1, %v2511_v20, %v2513_v24  ;;  %v2628_v34 = vadd.f32 %v5103_v8, %v2592_v36  ;;  %v2349_v2 = vadd.f32 %v2270_v38, %v2105_v4  ;;  %v5806_v40 = vadd.f32 %v2018_v11, %v5091_v59 }
 0x197   : > { %v2106_v7 = vmul.f32 %v5086_v29, %v5796_v41  ;;  %v2153_v21 = vmul.f32 %v5095_v19, %v5796_v41  ;;  %v2397_v0 = vmul.f32 %v5099_v54, %v5796_v41  ;;  %v2019_v24 = vadd.f32 %v1971_v10, %v1919_v5 }
 0x198   : > { %6660 = vst [vmem:[#allocation14_spill] sm:$0xff] %v5806_v40  ;;  %v1872_v58 = vmul.f32 %v5769_v62, %v4649_v35  ;;  %3381 = vst.msk [vmem:[%s3716_s23 + $0x2a0] sm:$0xff] %vm1154_vm2, %v2628_v34  ;;  %v2593_v36 = vadd.f32 %v2514_v60, %v2349_v2  ;;  %v2154_v59 = vmul.f32 %v5095_v19, %v5806_v40  ;;  %v5835_v60 = vld [vmem:[%s3584_s12 + $0x150] sm:$0xff] }
 0x199   : > { %v2398_v11 = vmul.f32 %v5099_v54, %v5806_v40  ;;  %v2107_v37 = vmul.f32 %v5086_v29, %v5806_v40  ;;  %v2271_v4 = vrot.slane %v2153_v21, 1  ;;  %v2515_v20 = vrot.slane %v2397_v0, 2 }
 0x19a   : > { %v5825_v15 = vadd.f32 %v2019_v24, %v5136_v12  ;;  %v1873_v55 = vmul.f32 %v5774_v22, %v4649_v35  ;;  %v2629_v32 = vadd.f32 %v5103_v8, %v2593_v36  ;;  %v2272_v46 = vrot.slane %v2154_v59, 1 }
 0x19b   : > { %v2516_v1 = vrot.slane %v2398_v11, 2  ;;  %v1920_v28 = vadd.f32 %v1872_v58, %v1820_v56  ;;  %v1972_v12 = vmul.f32 %v5835_v60, %v4655_v27  ;;  %v5844_v56 = vld [vmem:[%s3584_s12 + $0x158] sm:$0xff]  ;;  %v1822_v21 = vmul.f32 %v5729_v50, %v4642_v42  ;;  %v5853_v11 = vld [vmem:[%s3584_s12 + $0x160] sm:$0x3] }
 0x19c   : > { %6661 = vst [vmem:[#allocation15_spill] sm:$0xff] %v5825_v15  ;;  %v2155_v31 = vmul.f32 %v5095_v19, %v5825_v15  ;;  %v2399_v10 = vmul.f32 %v5099_v54, %v5825_v15  ;;  %v1921_v38 = vadd.f32 %v1873_v55, %v1821_v13  ;;  %3382 = vst.msk [vmem:[%s3716_s23 + $0x2a8] sm:$0xff] %vm1154_vm2, %v2629_v32 }
 0x19d   : > { %v2273_v5 = vsel %vm728_vm0, %v2271_v4, %v2272_v46  ;;  %v2517_v34 = vsel %vm973_vm1, %v2515_v20, %v2516_v1  ;;  %v1973_v2 = vmul.f32 %v5844_v56, %v4655_v27  ;;  %v2020_v58 = vadd.f32 %v1972_v12, %v1920_v28 }
 0x19e   : > { %v2350_v13 = vadd.f32 %v2273_v5, %v2106_v7  ;;  %v2274_v0 = vrot.slane %v2155_v31, 1  ;;  %v2518_v24 = vrot.slane %v2399_v10, 2  ;;  %v1874_v59 = vmul.f32 %v5791_v25, %v4649_v35  ;;  %v5864_v7 = vld [vmem:[%s6522_s2 + $0x18] sm:$0xff]  ;;  %v5872_v10 = vld [vmem:[%s6522_s2 + $0x20] sm:$0xff] }
 0x19f   : > { %v2021_v36 = vadd.f32 %v1973_v2, %v1921_v38  ;;  %v1974_v4 = vmul.f32 %v5853_v11, %v4655_v27  ;;  %v1823_v20 = vmul.f32 %v5769_v62, %v4642_v42  ;;  %v5867_v28 = vadd.f32 %v5864_v7, %v2020_v58 }
 0x1a0   : > { %v2594_v55 = vadd.f32 %v2517_v34, %v2350_v13  ;;  %v2275_v32 = vsel %vm728_vm0, %v2272_v46, %v2274_v0  ;;  %v2519_v50 = vsel %vm973_vm1, %v2516_v1, %v2518_v24  ;;  %v1922_v46 = vadd.f32 %v1874_v59, %v1822_v21 }
 0x1a1   : > { %6662 = vst [vmem:[#allocation16_spill] sm:$0xff] %v5867_v28  ;;  %v2351_v31 = vadd.f32 %v2275_v32, %v2107_v37  ;;  %v5875_v62 = vadd.f32 %v5872_v10, %v2021_v36  ;;  %v1824_v1 = vmul.f32 %v5774_v22, %v4642_v42  ;;  %v2108_v12 = vmul.f32 %v5086_v29, %v5867_v28  ;;  %v5900_v32 = vld [vmem:[%s6522_s2 + $0x28] sm:$0x3] }
 0x1a2   : > { %v2630_v38 = vadd.f32 %v5103_v8, %v2594_v55  ;;  %v2156_v37 = vmul.f32 %v5095_v19, %v5867_v28  ;;  %v2400_v5 = vmul.f32 %v5099_v54, %v5867_v28  ;;  %v2022_v22 = vadd.f32 %v1974_v4, %v1922_v46  ;;  %v5908_v46 = vld [vmem:[%s3584_s12 + $0x168] sm:$0xff] }
 0x1a3   : > { %6663 = vst [vmem:[#allocation17_spill] sm:$0xff] %v5875_v62  ;;  %v2595_v34 = vadd.f32 %v2519_v50, %v2351_v31  ;;  %v2157_v2 = vmul.f32 %v5095_v19, %v5875_v62  ;;  %v2401_v21 = vmul.f32 %v5099_v54, %v5875_v62  ;;  %v2109_v24 = vmul.f32 %v5086_v29, %v5875_v62 }
 0x1a4   : > { %3383 = vst.msk [vmem:[%s3716_s23 + $0x2b0] sm:$0xff] %vm1154_vm2, %v2630_v38  ;;  %v2276_v13 = vrot.slane %v2156_v37, 1  ;;  %v2520_v0 = vrot.slane %v2400_v5, 2  ;;  %v1875_v58 = vmul.f32 %v5835_v60, %v4649_v35  ;;  %v5903_v4 = vadd.f32 %v5900_v32, %v2022_v22  ;;  %v5913_v37 = vld [vmem:[%s3584_s12 + $0x170] sm:$0xff] }
 0x1a5   : > { %v2631_v36 = vadd.f32 %v5103_v8, %v2595_v34  ;;  %v2277_v59 = vrot.slane %v2157_v2, 1  ;;  %v2521_v55 = vrot.slane %v2401_v21, 2  ;;  %v1876_v50 = vmul.f32 %v5844_v56, %v4649_v35 }
 0x1a6   : > { %v1923_v31 = vadd.f32 %v1875_v58, %v1823_v20  ;;  %v1975_v38 = vmul.f32 %v5908_v46, %v4655_v27  ;;  %v1976_v5 = vmul.f32 %v5913_v37, %v4655_v27  ;;  %v2158_v20 = vmul.f32 %v5095_v19, %v5903_v4 }
 0x1a7   : > { %3384 = vst.msk [vmem:[%s3716_s23 + $0x2b8] sm:$0xff] %vm1154_vm2, %v2631_v36  ;;  %v2278_v34 = vsel %vm728_vm0, %v2276_v13, %v2277_v59  ;;  %v2522_v2 = vsel %vm973_vm1, %v2520_v0, %v2521_v55  ;;  %v2402_v21 = vmul.f32 %v5099_v54, %v5903_v4  ;;  %v1924_v58 = vadd.f32 %v1876_v50, %v1824_v1  ;;  %v5930_v13 = vld [vmem:[%s3584_s12 + $0x178] sm:$0x3] }
 0x1a8   : > { %v2352_v22 = vadd.f32 %v2278_v34, %v2108_v12  ;;  %v2023_v62 = vadd.f32 %v1975_v38, %v1923_v31  ;;  %v1825_v28 = vmul.f32 %v5791_v25, %v4642_v42  ;;  %v2279_v15 = vrot.slane %v2158_v20, 1 }
 0x1a9   : > { %v2523_v40 = vrot.slane %v2402_v21, 2  ;;  %v1877_v36 = vmul.f32 %v5853_v11, %v4649_v35  ;;  %v1977_v0 = vmul.f32 %v5930_v13, %v4655_v27  ;;  %v2024_v63 = vadd.f32 %v1976_v5, %v1924_v58 }
 0x1aa   : > { %v2596_v41 = vadd.f32 %v2522_v2, %v2352_v22  ;;  %v5935_v12 = vadd.f32 %v5864_v7, %v2023_v62  ;;  %v1826_v1 = vmul.f32 %v5835_v60, %v4642_v42  ;;  %v2280_v25 = vsel %vm728_vm0, %v2277_v59, %v2279_v15 }
 0x1ab   : > { %v2524_v50 = vsel %vm973_vm1, %v2521_v55, %v2523_v40  ;;  %v1925_v31 = vadd.f32 %v1877_v36, %v1825_v28  ;;  %v1827_v38 = vmul.f32 %v5844_v56, %v4642_v42  ;;  %v2353_v20 = vadd.f32 %v2280_v25, %v2109_v24 }
 0x1ac   : > { %6664 = vst [vmem:[#allocation18_spill] sm:$0xff] %v5935_v12  ;;  %v2632_v34 = vadd.f32 %v5103_v8, %v2596_v41  ;;  %v5945_v2 = vadd.f32 %v5872_v10, %v2024_v63  ;;  %v2110_v62 = vmul.f32 %v5086_v29, %v5935_v12  ;;  %v2159_v60 = vmul.f32 %v5095_v19, %v5935_v12 }
 0x1ad   : > { %v2403_v15 = vmul.f32 %v5099_v54, %v5935_v12  ;;  %v2025_v40 = vadd.f32 %v1977_v0, %v1925_v31  ;;  %v1878_v28 = vmul.f32 %v5908_v46, %v4649_v35  ;;  %v2597_v41 = vadd.f32 %v2524_v50, %v2353_v20 }
 0x1ae   : > { %6665 = vst [vmem:[#allocation19_spill] sm:$0xff] %v5945_v2  ;;  %3385 = vst.msk [vmem:[%s3716_s23 + $0x2c0] sm:$0xff] %vm1154_vm2, %v2632_v34  ;;  %v2160_v63 = vmul.f32 %v5095_v19, %v5945_v2  ;;  %v2404_v56 = vmul.f32 %v5099_v54, %v5945_v2  ;;  %v2111_v24 = vmul.f32 %v5086_v29, %v5945_v2  ;;  %v2281_v59 = vrot.slane %v2159_v60, 1  ;;  %v3498_v34 = vld [vmem:[%s3584_s12 + $0x180] sm:$0xff]  ;;  %v3500_v2 = vld [vmem:[%s3584_s12 + $0x190] sm:$0x3] }
 0x1af   : > { %v2525_v55 = vrot.slane %v2403_v15, 2  ;;  %v5964_v5 = vadd.f32 %v5900_v32, %v2025_v40  ;;  %v1879_v21 = vmul.f32 %v5913_v37, %v4649_v35  ;;  %v2633_v22 = vadd.f32 %v5103_v8, %v2597_v41  ;;  %v3499_v40 = vld [vmem:[%s3584_s12 + $0x188] sm:$0xff] }
 0x1b0   : > { %v2282_v58 = vrot.slane %v2160_v63, 1  ;;  %v2526_v36 = vrot.slane %v2404_v56, 2  ;;  %v1926_v0 = vadd.f32 %v1878_v28, %v1826_v1  ;;  %v1978_v20 = vmul.f32 %v3498_v34, %v4655_v27 }
 0x1b1   : > { %6666 = vst [vmem:[#allocation20_spill] sm:$0xff] %v5964_v5  ;;  %v2161_v25 = vmul.f32 %v5095_v19, %v5964_v5  ;;  %v2405_v50 = vmul.f32 %v5099_v54, %v5964_v5  ;;  %v1927_v31 = vadd.f32 %v1879_v21, %v1827_v38  ;;  %3386 = vst.msk [vmem:[%s3716_s23 + $0x2c8] sm:$0xff] %vm1154_vm2, %v2633_v22 }
 0x1b2   : > { %v2283_v60 = vsel %vm728_vm0, %v2281_v59, %v2282_v58  ;;  %v2527_v15 = vsel %vm973_vm1, %v2525_v55, %v2526_v36  ;;  %v1979_v1 = vmul.f32 %v3499_v40, %v4655_v27  ;;  %v1828_v28 = vmul.f32 %v5853_v11, %v4642_v42 }
 0x1b3   : > { %v2354_v41 = vadd.f32 %v2283_v60, %v2110_v62  ;;  %v2284_v63 = vrot.slane %v2161_v25, 1  ;;  %v2528_v56 = vrot.slane %v2405_v50, 2  ;;  %v2026_v5 = vadd.f32 %v1978_v20, %v1926_v0 }
 0x1b4   : > { %v2027_v38 = vadd.f32 %v1979_v1, %v1927_v31  ;;  %v1880_v21 = vmul.f32 %v5930_v13, %v4649_v35  ;;  %v1980_v22 = vmul.f32 %v3500_v2, %v4655_v27  ;;  %v1829_v59 = vmul.f32 %v5908_v46, %v4642_v42 }
 0x1b5   : > { %v2598_v55 = vadd.f32 %v2527_v15, %v2354_v41  ;;  %v2285_v12 = vsel %vm728_vm0, %v2282_v58, %v2284_v63  ;;  %v2529_v11 = vsel %vm973_vm1, %v2526_v36, %v2528_v56  ;;  %v5992_v62 = vadd.f32 %v5864_v7, %v2026_v5 }
 0x1b6   : > { %v2355_v0 = vadd.f32 %v2285_v12, %v2111_v24  ;;  %v5995_v25 = vadd.f32 %v5872_v10, %v2027_v38  ;;  %v1928_v50 = vadd.f32 %v1880_v21, %v1828_v28  ;;  %v1830_v31 = vmul.f32 %v5913_v37, %v4642_v42 }
 0x1b7   : > { %v2634_v20 = vadd.f32 %v5103_v8, %v2598_v55  ;;  %v2112_v46 = vmul.f32 %v5086_v29, %v5992_v62  ;;  %v2162_v58 = vmul.f32 %v5095_v19, %v5992_v62  ;;  %v2406_v5 = vmul.f32 %v5099_v54, %v5992_v62  ;;  %v3501_v55 = vld [vmem:[%s3584_s12 + $0x198] sm:$0xff] }
 0x1b8   : > { %v2599_v12 = vadd.f32 %v2529_v11, %v2355_v0  ;;  %v2163_v24 = vmul.f32 %v5095_v19, %v5995_v25  ;;  %v2407_v37 = vmul.f32 %v5099_v54, %v5995_v25  ;;  %v2028_v36 = vadd.f32 %v1980_v22, %v1928_v50  ;;  %v3502_v0 = vld [vmem:[%s3584_s12 + $0x1a0] sm:$0xff] }
 0x1b9   : > { %3387 = vst.msk [vmem:[%s3716_s23 + $0x2d0] sm:$0xff] %vm1154_vm2, %v2634_v20  ;;  %v2286_v60 = vrot.slane %v2162_v58, 1  ;;  %v2530_v15 = vrot.slane %v2406_v5, 2  ;;  %v2113_v1 = vmul.f32 %v5086_v29, %v5995_v25  ;;  %v1881_v28 = vmul.f32 %v3498_v34, %v4649_v35 }
 0x1ba   : > { %v2635_v41 = vadd.f32 %v5103_v8, %v2599_v12  ;;  %v2287_v63 = vrot.slane %v2163_v24, 1  ;;  %v2531_v56 = vrot.slane %v2407_v37, 2  ;;  %v6017_v38 = vadd.f32 %v5900_v32, %v2028_v36 }
 0x1bb   : > { %v1882_v21 = vmul.f32 %v3499_v40, %v4649_v35  ;;  %v1929_v22 = vadd.f32 %v1881_v28, %v1829_v59  ;;  %v1981_v11 = vmul.f32 %v3501_v55, %v4655_v27  ;;  %v1982_v50 = vmul.f32 %v3502_v0, %v4655_v27 }
 0x1bc   : > { %3388 = vst.msk [vmem:[%s3716_s23 + $0x2d8] sm:$0xff] %vm1154_vm2, %v2635_v41  ;;  %v2288_v34 = vsel %vm728_vm0, %v2286_v60, %v2287_v63  ;;  %v2532_v20 = vsel %vm973_vm1, %v2530_v15, %v2531_v56  ;;  %v2164_v58 = vmul.f32 %v5095_v19, %v6017_v38  ;;  %v2408_v40 = vmul.f32 %v5099_v54, %v6017_v38  ;;  %v3503_v41 = vld [vmem:[%s3584_s12 + $0x1a8] sm:$0x3] }
 0x1bd   : > { %v2356_v59 = vadd.f32 %v2288_v34, %v2112_v46  ;;  %v1930_v5 = vadd.f32 %v1882_v21, %v1830_v31  ;;  %v2029_v12 = vadd.f32 %v1981_v11, %v1929_v22  ;;  %v1831_v24 = vmul.f32 %v5930_v13, %v4642_v42 }
 0x1be   : > { %v2289_v37 = vrot.slane %v2164_v58, 1  ;;  %v2533_v36 = vrot.slane %v2408_v40, 2  ;;  %v1883_v28 = vmul.f32 %v3500_v2, %v4649_v35  ;;  %v1983_v60 = vmul.f32 %v3503_v41, %v4655_v27  ;;  %v3507_v41 = vld [vmem:[%s6524_s4] sm:$0xf] }
 0x1bf   : > { %v2600_v15 = vadd.f32 %v2532_v20, %v2356_v59  ;;  %v2030_v55 = vadd.f32 %v1982_v50, %v1930_v5  ;;  %v6038_v0 = vadd.f32 %v5864_v7, %v2029_v12  ;;  %v2675_v42 = vsub.s32 3, %v3562_v3  ;;  %v3504_v3 = vld [vmem:[%s6523_s3] sm:$0xf] }
 0x1c0   : > { %v2290_v46 = vsel %vm728_vm0, %v2287_v63, %v2289_v37  ;;  %v2534_v31 = vsel %vm973_vm1, %v2531_v56, %v2533_v36  ;;  %v1931_v21 = vadd.f32 %v1883_v28, %v1831_v24  ;;  %v3505_v24 = vld [vmem:[%s6523_s3 + $0x4] sm:$0xf]  ;;  %v3506_v36 = vld [vmem:[%s6523_s3 + $0x8] sm:$0xf] }
 0x1c1   : > { %v2636_v13 = vadd.f32 %v5103_v8, %v2600_v15  ;;  %v2357_v22 = vadd.f32 %v2290_v46, %v2113_v1  ;;  %v6045_v35 = vadd.f32 %v5872_v10, %v2030_v55  ;;  %v2114_v27 = vmul.f32 %v5086_v29, %v6038_v0 }
 0x1c2   : > { %v2165_v7 = vmul.f32 %v5095_v19, %v6038_v0  ;;  %v2409_v2 = vmul.f32 %v5099_v54, %v6038_v0  ;;  %v2031_v63 = vadd.f32 %v1983_v60, %v1931_v21  ;;  %v6056_v56 = vrot.slane %v3504_v3, %v2675_v42 }
 0x1c3   : > { %3389 = vst.msk [vmem:[%s3716_s23 + $0x2e0] sm:$0xff] %vm1154_vm2, %v2636_v13  ;;  %v2601_v10 = vadd.f32 %v2534_v31, %v2357_v22  ;;  %v2166_v1 = vmul.f32 %v5095_v19, %v6045_v35  ;;  %v2410_v11 = vmul.f32 %v5099_v54, %v6045_v35  ;;  %v2115_v50 = vmul.f32 %v5086_v29, %v6045_v35 }
 0x1c4   : > { %v2291_v34 = vrot.slane %v2165_v7, 1  ;;  %v2535_v20 = vrot.slane %v2409_v2, 2  ;;  %v6067_v58 = vadd.f32 %v5900_v32, %v2031_v63  ;;  %v2677_v40 = vmul.f32 %v6056_v56, %v5112_v53 }
 0x1c5   : > { %v2637_v59 = vadd.f32 %v5103_v8, %v2601_v10  ;;  %v2292_v5 = vrot.slane %v2166_v1, 1  ;;  %v2536_v12 = vrot.slane %v2410_v11, 2  ;;  %v6075_v37 = vrot.slane %v3505_v24, %v2675_v42 }
 0x1c6   : > { %v2167_v29 = vmul.f32 %v5095_v19, %v6067_v58  ;;  %v2411_v32 = vmul.f32 %v5099_v54, %v6067_v58  ;;  %v6084_v28 = vrot.slane %v3506_v36, %v2675_v42  ;;  %v6089_v60 = vrot.slane %v3507_v41, %v2675_v42 }
 0x1c7   : > { %3390 = vst.msk [vmem:[%s3716_s23 + $0x2e8] sm:$0xff] %vm1154_vm2, %v2637_v59  ;;  %v2293_v15 = vsel %vm728_vm0, %v2291_v34, %v2292_v5  ;;  %v2537_v19 = vsel %vm973_vm1, %v2535_v20, %v2536_v12  ;;  %v2713_v54 = vmul.f32 %v6075_v37, %v5112_v53  ;;  %v2714_v55 = vmul.f32 %v6075_v37, %v5123_v48 }
 0x1c8   : > { %v2358_v46 = vadd.f32 %v2293_v15, %v2114_v27  ;;  %v2294_v31 = vrot.slane %v2167_v29, 1  ;;  %v2538_v21 = vrot.slane %v2411_v32, 2  ;;  %v2957_v13 = vmul.f32 %v6084_v28, %v5112_v53 }
 0x1c9   : > { %v2809_v42 = vrot.slane %v2713_v54, 1  ;;  %v2810_v22 = vrot.slane %v2714_v55, 1  ;;  %v2958_v7 = vmul.f32 %v6084_v28, %v5123_v48  ;;  %v2678_v2 = vmul.f32 %v6056_v56, %v5123_v48 }
 0x1ca   : > { %v2602_v63 = vadd.f32 %v2537_v19, %v2358_v46  ;;  %v2295_v3 = vsel %vm728_vm0, %v2292_v5, %v2294_v31  ;;  %v2539_v10 = vsel %vm973_vm1, %v2536_v12, %v2538_v21  ;;  %v3053_v27 = vrot.slane %v2957_v13, 2 }
 0x1cb   : > { %v2359_v1 = vadd.f32 %v2295_v3, %v2115_v50  ;;  %v2811_v11 = vsel %vm728_vm0, %v2809_v42, %v2810_v22  ;;  %v3054_v34 = vrot.slane %v2958_v7, 2  ;;  %v2715_v53 = vmul.f32 %v6075_v37, %v5149_v6 }
 0x1cc   : > { %v2638_v20 = vadd.f32 %v5103_v8, %v2602_v63  ;;  %v2921_v59 = vadd.f32 %v2811_v11, %v2677_v40  ;;  %v2959_v48 = vmul.f32 %v6084_v28, %v5149_v6  ;;  %v2679_v24 = vmul.f32 %v6056_v56, %v5180_v14 }
 0x1cd   : > { %v2603_v5 = vadd.f32 %v2539_v10, %v2359_v1  ;;  %v3055_v12 = vsel %vm973_vm1, %v3053_v27, %v3054_v34  ;;  %v2812_v50 = vrot.slane %v2715_v53, 1  ;;  %v2716_v29 = vmul.f32 %v6075_v37, %v5180_v14 }
 0x1ce   : > { %3391 = vst.msk [vmem:[%s3716_s23 + $0x2f0] sm:$0xff] %vm1154_vm2, %v2638_v20  ;;  %v3165_v32 = vadd.f32 %v3055_v12, %v2921_v59  ;;  %v3056_v36 = vrot.slane %v2959_v48, 2  ;;  %v2717_v40 = vmul.f32 %v6075_v37, %v5183_v61  ;;  %v2960_v6 = vmul.f32 %v6084_v28, %v5180_v14 }
 0x1cf   : > { %v2639_v41 = vadd.f32 %v5103_v8, %v2603_v5  ;;  %v2813_v15 = vsel %vm728_vm0, %v2810_v22, %v2812_v50  ;;  %v2814_v19 = vrot.slane %v2716_v29, 1  ;;  %v2961_v54 = vmul.f32 %v6084_v28, %v5183_v61 }
 0x1d0   : > { %v3201_v55 = vadd.f32 %v6089_v60, %v3165_v32  ;;  %v2922_v46 = vadd.f32 %v2813_v15, %v2678_v2  ;;  %v3057_v31 = vsel %vm973_vm1, %v3054_v34, %v3056_v36  ;;  %v2815_v21 = vrot.slane %v2717_v40, 1 }
 0x1d1   : > { %3392 = vst.msk [vmem:[%s3716_s23 + $0x2f8] sm:$0xff] %vm1154_vm2, %v2639_v41  ;;  %v3058_v13 = vrot.slane %v2960_v6, 2  ;;  %v3059_v42 = vrot.slane %v2961_v54, 2  ;;  %v2680_v14 = vmul.f32 %v6056_v56, %v5183_v61  ;;  %v2718_v8 = vmul.f32 %v6075_v37, %v5203_v23 }
 0x1d2   : > { %3393 = vst.msk [vmem:[%s3716_s23 + $0x300] sm:$0xff] %vm1154_vm2, %v3201_v55  ;;  %v3166_v22 = vadd.f32 %v3057_v31, %v2922_v46  ;;  %v2816_v7 = vsel %vm728_vm0, %v2814_v19, %v2815_v21  ;;  %v2962_v2 = vmul.f32 %v6084_v28, %v5203_v23  ;;  %v2681_v63 = vmul.f32 %v6056_v56, %v5240_v49 }
 0x1d3   : > { %v2923_v3 = vadd.f32 %v2816_v7, %v2679_v24  ;;  %v3060_v10 = vsel %vm973_vm1, %v3058_v13, %v3059_v42  ;;  %v2817_v27 = vrot.slane %v2718_v8, 1  ;;  %v2719_v61 = vmul.f32 %v6075_v37, %v5240_v49 }
 0x1d4   : > { %v3202_v1 = vadd.f32 %v6089_v60, %v3166_v22  ;;  %v3061_v11 = vrot.slane %v2962_v2, 2  ;;  %v2720_v34 = vmul.f32 %v6075_v37, %v5243_v33  ;;  %v2963_v53 = vmul.f32 %v6084_v28, %v5240_v49 }
 0x1d5   : > { %v3167_v23 = vadd.f32 %v3060_v10, %v2923_v3  ;;  %v2818_v20 = vsel %vm728_vm0, %v2815_v21, %v2817_v27  ;;  %v2819_v59 = vrot.slane %v2719_v61, 1  ;;  %v2964_v48 = vmul.f32 %v6084_v28, %v5243_v33 }
 0x1d6   : > { %3394 = vst.msk [vmem:[%s3716_s23 + $0x308] sm:$0xff] %vm1154_vm2, %v3202_v1  ;;  %v2924_v24 = vadd.f32 %v2818_v20, %v2680_v14  ;;  %v3062_v5 = vsel %vm973_vm1, %v3059_v42, %v3061_v11  ;;  %v2820_v12 = vrot.slane %v2720_v34, 1  ;;  %v3063_v50 = vrot.slane %v2963_v53, 2 }
 0x1d7   : > { %v3203_v29 = vadd.f32 %v6089_v60, %v3167_v23  ;;  %v3064_v32 = vrot.slane %v2964_v48, 2  ;;  %v2682_v49 = vmul.f32 %v6056_v56, %v5243_v33  ;;  %v2721_v36 = vmul.f32 %v6075_v37, %v5268_v16 }
 0x1d8   : > { %v3168_v40 = vadd.f32 %v3062_v5, %v2924_v24  ;;  %v2821_v6 = vsel %vm728_vm0, %v2819_v59, %v2820_v12  ;;  %v2965_v41 = vmul.f32 %v6084_v28, %v5268_v16  ;;  %v2683_v15 = vmul.f32 %v6056_v56, %v5300_v9 }
 0x1d9   : > { %3395 = vst.msk [vmem:[%s3716_s23 + $0x310] sm:$0xff] %vm1154_vm2, %v3203_v29  ;;  %v2925_v19 = vadd.f32 %v2821_v6, %v2681_v63  ;;  %v3065_v54 = vsel %vm973_vm1, %v3063_v50, %v3064_v32  ;;  %v2822_v55 = vrot.slane %v2721_v36, 1  ;;  %v2722_v33 = vmul.f32 %v6075_v37, %v5300_v9 }
 0x1da   : > { %v3204_v46 = vadd.f32 %v6089_v60, %v3168_v40  ;;  %v3066_v31 = vrot.slane %v2965_v41, 2  ;;  %v2723_v21 = vmul.f32 %v6075_v37, %v5310_v39  ;;  %v2966_v16 = vmul.f32 %v6084_v28, %v5300_v9 }
 0x1db   : > { %v3169_v13 = vadd.f32 %v3065_v54, %v2925_v19  ;;  %v2823_v42 = vsel %vm728_vm0, %v2820_v12, %v2822_v55  ;;  %v2824_v14 = vrot.slane %v2722_v33, 1  ;;  %v2967_v8 = vmul.f32 %v6084_v28, %v5310_v39 }
 0x1dc   : > { %3396 = vst.msk [vmem:[%s3716_s23 + $0x318] sm:$0xff] %vm1154_vm2, %v3204_v46  ;;  %v2926_v22 = vadd.f32 %v2823_v42, %v2682_v49  ;;  %v3067_v7 = vsel %vm973_vm1, %v3064_v32, %v3066_v31  ;;  %v2825_v2 = vrot.slane %v2723_v21, 1  ;;  %v3068_v63 = vrot.slane %v2966_v16, 2 }
 0x1dd   : > { %v3205_v3 = vadd.f32 %v6089_v60, %v3169_v13  ;;  %v3069_v10 = vrot.slane %v2967_v8, 2  ;;  %v2684_v9 = vmul.f32 %v6056_v56, %v5310_v39  ;;  %v2724_v27 = vmul.f32 %v6075_v37, %v5329_v26 }
 0x1de   : > { %v3170_v61 = vadd.f32 %v3067_v7, %v2926_v22  ;;  %v2826_v1 = vsel %vm728_vm0, %v2824_v14, %v2825_v2  ;;  %v2968_v11 = vmul.f32 %v6084_v28, %v5329_v26  ;;  %v2685_v34 = vmul.f32 %v6056_v56, %v5366_v18 }
 0x1df   : > { %3397 = vst.msk [vmem:[%s3716_s23 + $0x320] sm:$0xff] %vm1154_vm2, %v3205_v3  ;;  %v2927_v53 = vadd.f32 %v2826_v1, %v2683_v15  ;;  %v3070_v23 = vsel %vm973_vm1, %v3068_v63, %v3069_v10  ;;  %v2827_v20 = vrot.slane %v2724_v27, 1  ;;  %v2725_v39 = vmul.f32 %v6075_v37, %v5366_v18 }
 0x1e0   : > { %v3206_v59 = vadd.f32 %v6089_v60, %v3170_v61  ;;  %v3071_v48 = vrot.slane %v2968_v11, 2  ;;  %v2726_v24 = vmul.f32 %v6075_v37, %v5369_v30  ;;  %v2969_v26 = vmul.f32 %v6084_v28, %v5366_v18 }
 0x1e1   : > { %v3171_v5 = vadd.f32 %v3070_v23, %v2927_v53  ;;  %v2828_v12 = vsel %vm728_vm0, %v2825_v2, %v2827_v20  ;;  %v2829_v50 = vrot.slane %v2725_v39, 1  ;;  %v2970_v29 = vmul.f32 %v6084_v28, %v5369_v30 }
 0x1e2   : > { %3398 = vst.msk [vmem:[%s3716_s23 + $0x328] sm:$0xff] %vm1154_vm2, %v3206_v59  ;;  %v2928_v32 = vadd.f32 %v2828_v12, %v2684_v9  ;;  %v3072_v49 = vsel %vm973_vm1, %v3069_v10, %v3071_v48  ;;  %v2830_v36 = vrot.slane %v2726_v24, 1  ;;  %v3073_v40 = vrot.slane %v2969_v26, 2 }
 0x1e3   : > { %v3207_v6 = vadd.f32 %v6089_v60, %v3171_v5  ;;  %v3074_v41 = vrot.slane %v2970_v29, 2  ;;  %v2686_v18 = vmul.f32 %v6056_v56, %v5369_v30  ;;  %v2727_v15 = vmul.f32 %v6075_v37, %v5392_v45 }
 0x1e4   : > { %v3172_v19 = vadd.f32 %v3072_v49, %v2928_v32  ;;  %v2831_v54 = vsel %vm728_vm0, %v2829_v50, %v2830_v36  ;;  %v2971_v55 = vmul.f32 %v6084_v28, %v5392_v45  ;;  %v2687_v33 = vmul.f32 %v6056_v56, %v5424_v44 }
 0x1e5   : > { %3399 = vst.msk [vmem:[%s3716_s23 + $0x330] sm:$0xff] %vm1154_vm2, %v3207_v6  ;;  %v2929_v46 = vadd.f32 %v2831_v54, %v2685_v34  ;;  %v3075_v31 = vsel %vm973_vm1, %v3073_v40, %v3074_v41  ;;  %v2832_v21 = vrot.slane %v2727_v15, 1  ;;  %v2728_v30 = vmul.f32 %v6075_v37, %v5424_v44 }
 0x1e6   : > { %v3208_v16 = vadd.f32 %v6089_v60, %v3172_v19  ;;  %v3076_v13 = vrot.slane %v2971_v55, 2  ;;  %v2729_v42 = vmul.f32 %v6075_v37, %v5434_v43  ;;  %v2972_v45 = vmul.f32 %v6084_v28, %v5424_v44 }
 0x1e7   : > { %v3173_v14 = vadd.f32 %v3075_v31, %v2929_v46  ;;  %v2833_v8 = vsel %vm728_vm0, %v2830_v36, %v2832_v21  ;;  %v2834_v22 = vrot.slane %v2728_v30, 1  ;;  %v2973_v7 = vmul.f32 %v6084_v28, %v5434_v43  ;;  %v6667_v30 = vld [vmem:[#allocation2_spill] sm:$0xff] }
 0x1e8   : > { %3400 = vst.msk [vmem:[%s3716_s23 + $0x338] sm:$0xff] %vm1154_vm2, %v3208_v16  ;;  %v2930_v2 = vadd.f32 %v2833_v8, %v2686_v18  ;;  %v3077_v63 = vsel %vm973_vm1, %v3074_v41, %v3076_v13  ;;  %v2835_v3 = vrot.slane %v2729_v42, 1  ;;  %v3078_v10 = vrot.slane %v2972_v45, 2 }
 0x1e9   : > { %v3209_v9 = vadd.f32 %v6089_v60, %v3173_v14  ;;  %v3079_v27 = vrot.slane %v2973_v7, 2  ;;  %v2688_v44 = vmul.f32 %v6056_v56, %v5434_v43  ;;  %v2730_v61 = vmul.f32 %v6075_v37, %v5453_v52 }
 0x1ea   : > { %v3174_v1 = vadd.f32 %v3077_v63, %v2930_v2  ;;  %v2836_v11 = vsel %vm728_vm0, %v2834_v22, %v2835_v3  ;;  %v2974_v34 = vmul.f32 %v6084_v28, %v5453_v52  ;;  %v2689_v53 = vmul.f32 %v6056_v56, %v5490_v47 }
 0x1eb   : > { %3401 = vst.msk [vmem:[%s3716_s23 + $0x340] sm:$0xff] %vm1154_vm2, %v3209_v9  ;;  %v2931_v23 = vadd.f32 %v2836_v11, %v2687_v33  ;;  %v3080_v20 = vsel %vm973_vm1, %v3078_v10, %v3079_v27  ;;  %v2837_v39 = vrot.slane %v2730_v61, 1  ;;  %v2731_v43 = vmul.f32 %v6075_v37, %v5490_v47  ;;  %v6668_v10 = vld [vmem:[#allocation3_spill] sm:$0xff] }
 0x1ec   : > { %v3210_v59 = vadd.f32 %v6089_v60, %v3174_v1  ;;  %v3081_v48 = vrot.slane %v2974_v34, 2  ;;  %v2732_v24 = vmul.f32 %v6075_v37, %v5493_v51  ;;  %v2975_v52 = vmul.f32 %v6084_v28, %v5490_v47  ;;  %v6669_v1 = vld [vmem:[#allocation4_spill] sm:$0xff] }
 0x1ed   : > { %v3175_v26 = vadd.f32 %v3080_v20, %v2931_v23  ;;  %v2838_v5 = vsel %vm728_vm0, %v2835_v3, %v2837_v39  ;;  %v2839_v12 = vrot.slane %v2731_v43, 1  ;;  %v2976_v50 = vmul.f32 %v6084_v28, %v5493_v51 }
 0x1ee   : > { %3402 = vst.msk [vmem:[%s3716_s23 + $0x348] sm:$0xff] %vm1154_vm2, %v3210_v59  ;;  %v2932_v29 = vadd.f32 %v2838_v5, %v2688_v44  ;;  %v3082_v32 = vsel %vm973_vm1, %v3079_v27, %v3081_v48  ;;  %v2840_v49 = vrot.slane %v2732_v24, 1  ;;  %v3083_v36 = vrot.slane %v2975_v52, 2  ;;  %v6670_v59 = vld [vmem:[#allocation5_spill] sm:$0xff] }
 0x1ef   : > { %v3211_v40 = vadd.f32 %v6089_v60, %v3175_v26  ;;  %v3084_v6 = vrot.slane %v2976_v50, 2  ;;  %v2690_v47 = vmul.f32 %v6056_v56, %v5493_v51  ;;  %v2733_v41 = vmul.f32 %v6075_v37, %v5516_v57 }
 0x1f0   : > { %v3176_v18 = vadd.f32 %v3082_v32, %v2932_v29  ;;  %v2841_v15 = vsel %vm728_vm0, %v2839_v12, %v2840_v49  ;;  %v2977_v19 = vmul.f32 %v6084_v28, %v5516_v57  ;;  %v2691_v54 = vmul.f32 %v6056_v56, %v5548_v17 }
 0x1f1   : > { %3403 = vst.msk [vmem:[%s3716_s23 + $0x350] sm:$0xff] %vm1154_vm2, %v3211_v40  ;;  %v2933_v55 = vadd.f32 %v2841_v15, %v2689_v53  ;;  %v3085_v33 = vsel %vm973_vm1, %v3083_v36, %v3084_v6  ;;  %v2842_v46 = vrot.slane %v2733_v41, 1  ;;  %v2734_v51 = vmul.f32 %v6075_v37, %v5548_v17 }
 0x1f2   : > { %v3212_v31 = vadd.f32 %v6089_v60, %v3176_v18  ;;  %v3086_v21 = vrot.slane %v2977_v19, 2  ;;  %v2735_v16 = vmul.f32 %v6075_v37, %v6667_v30  ;;  %v2978_v57 = vmul.f32 %v6084_v28, %v5548_v17 }
 0x1f3   : > { %v3177_v13 = vadd.f32 %v3085_v33, %v2933_v55  ;;  %v2843_v42 = vsel %vm728_vm0, %v2840_v49, %v2842_v46  ;;  %v2844_v45 = vrot.slane %v2734_v51, 1  ;;  %v2979_v14 = vmul.f32 %v6084_v28, %v6667_v30 }
 0x1f4   : > { %3404 = vst.msk [vmem:[%s3716_s23 + $0x358] sm:$0xff] %vm1154_vm2, %v3212_v31  ;;  %v2934_v8 = vadd.f32 %v2843_v42, %v2690_v47  ;;  %v3087_v22 = vsel %vm973_vm1, %v3084_v6, %v3086_v21  ;;  %v2845_v7 = vrot.slane %v2735_v16, 1  ;;  %v3088_v2 = vrot.slane %v2978_v57, 2  ;;  %v6671_v47 = vld [vmem:[#allocation6_spill] sm:$0xff]  ;;  %v6673_v16 = vld [vmem:[#allocation8_spill] sm:$0xff] }
 0x1f5   : > { %v3213_v63 = vadd.f32 %v6089_v60, %v3177_v13  ;;  %v3089_v3 = vrot.slane %v2979_v14, 2  ;;  %v2692_v17 = vmul.f32 %v6056_v56, %v6667_v30  ;;  %v2736_v9 = vmul.f32 %v6075_v37, %v6668_v10 }
 0x1f6   : > { %v3178_v27 = vadd.f32 %v3087_v22, %v2934_v8  ;;  %v2846_v44 = vsel %vm728_vm0, %v2844_v45, %v2845_v7  ;;  %v2980_v61 = vmul.f32 %v6084_v28, %v6668_v10  ;;  %v2693_v11 = vmul.f32 %v6056_v56, %v6669_v1 }
 0x1f7   : > { %3405 = vst.msk [vmem:[%s3716_s23 + $0x360] sm:$0xff] %vm1154_vm2, %v3213_v63  ;;  %v2935_v34 = vadd.f32 %v2846_v44, %v2691_v54  ;;  %v3090_v53 = vsel %vm973_vm1, %v3088_v2, %v3089_v3  ;;  %v2847_v23 = vrot.slane %v2736_v9, 1  ;;  %v2737_v20 = vmul.f32 %v6075_v37, %v6669_v1  ;;  %v6672_v54 = vld [vmem:[#allocation7_spill] sm:$0xff]  ;;  %v6674_v9 = vld [vmem:[#allocation9_spill] sm:$0xff] }
 0x1f8   : > { %v3214_v39 = vadd.f32 %v6089_v60, %v3178_v27  ;;  %v3091_v43 = vrot.slane %v2980_v61, 2  ;;  %v2738_v48 = vmul.f32 %v6075_v37, %v6670_v59  ;;  %v2981_v24 = vmul.f32 %v6084_v28, %v6669_v1 }
 0x1f9   : > { %v3179_v52 = vadd.f32 %v3090_v53, %v2935_v34  ;;  %v2848_v26 = vsel %vm728_vm0, %v2845_v7, %v2847_v23  ;;  %v2849_v5 = vrot.slane %v2737_v20, 1  ;;  %v2982_v12 = vmul.f32 %v6084_v28, %v6670_v59 }
 0x1fa   : > { %3406 = vst.msk [vmem:[%s3716_s23 + $0x368] sm:$0xff] %vm1154_vm2, %v3214_v39  ;;  %v2936_v50 = vadd.f32 %v2848_v26, %v2692_v17  ;;  %v3092_v29 = vsel %vm973_vm1, %v3089_v3, %v3091_v43  ;;  %v2850_v32 = vrot.slane %v2738_v48, 1  ;;  %v3093_v49 = vrot.slane %v2981_v24, 2  ;;  %v6676_v48 = vld [vmem:[#allocation11_spill] sm:$0xff] }
 0x1fb   : > { %v3215_v36 = vadd.f32 %v6089_v60, %v3179_v52  ;;  %v3094_v40 = vrot.slane %v2982_v12, 2  ;;  %v2694_v6 = vmul.f32 %v6056_v56, %v6670_v59  ;;  %v2739_v41 = vmul.f32 %v6075_v37, %v6671_v47 }
 0x1fc   : > { %v3180_v18 = vadd.f32 %v3092_v29, %v2936_v50  ;;  %v2851_v15 = vsel %vm728_vm0, %v2849_v5, %v2850_v32  ;;  %v2983_v19 = vmul.f32 %v6084_v28, %v6671_v47  ;;  %v2695_v55 = vmul.f32 %v6056_v56, %v6672_v54 }
 0x1fd   : > { %3407 = vst.msk [vmem:[%s3716_s23 + $0x370] sm:$0xff] %vm1154_vm2, %v3215_v36  ;;  %v2937_v33 = vadd.f32 %v2851_v15, %v2693_v11  ;;  %v3095_v46 = vsel %vm973_vm1, %v3093_v49, %v3094_v40  ;;  %v2852_v51 = vrot.slane %v2739_v41, 1  ;;  %v2740_v31 = vmul.f32 %v6075_v37, %v6672_v54  ;;  %v6675_v11 = vld [vmem:[#allocation10_spill] sm:$0xff]  ;;  %v6677_v41 = vld [vmem:[#allocation12_spill] sm:$0xff] }
 0x1fe   : > { %v3216_v21 = vadd.f32 %v6089_v60, %v3180_v18  ;;  %v3096_v30 = vrot.slane %v2983_v19, 2  ;;  %v2741_v57 = vmul.f32 %v6075_v37, %v6673_v16  ;;  %v2984_v13 = vmul.f32 %v6084_v28, %v6672_v54 }
 0x1ff   : > { %v3181_v42 = vadd.f32 %v3095_v46, %v2937_v33  ;;  %v2853_v45 = vsel %vm728_vm0, %v2850_v32, %v2852_v51  ;;  %v2854_v14 = vrot.slane %v2740_v31, 1  ;;  %v2985_v8 = vmul.f32 %v6084_v28, %v6673_v16 }
 0x200   : > { %3408 = vst.msk [vmem:[%s3716_s23 + $0x378] sm:$0xff] %vm1154_vm2, %v3216_v21  ;;  %v2938_v22 = vadd.f32 %v2853_v45, %v2694_v6  ;;  %v3097_v7 = vsel %vm973_vm1, %v3094_v40, %v3096_v30  ;;  %v2855_v2 = vrot.slane %v2741_v57, 1  ;;  %v3098_v63 = vrot.slane %v2984_v13, 2  ;;  %v6679_v57 = vld [vmem:[#allocation14_spill] sm:$0xff] }
 0x201   : > { %v3217_v3 = vadd.f32 %v6089_v60, %v3181_v42  ;;  %v3099_v17 = vrot.slane %v2985_v8, 2  ;;  %v2696_v10 = vmul.f32 %v6056_v56, %v6673_v16  ;;  %v2742_v27 = vmul.f32 %v6075_v37, %v6674_v9 }
 0x202   : > { %v3182_v44 = vadd.f32 %v3097_v7, %v2938_v22  ;;  %v2856_v61 = vsel %vm728_vm0, %v2854_v14, %v2855_v2  ;;  %v2986_v1 = vmul.f32 %v6084_v28, %v6674_v9  ;;  %v2697_v34 = vmul.f32 %v6056_v56, %v6675_v11 }
 0x203   : > { %3409 = vst.msk [vmem:[%s3716_s23 + $0x380] sm:$0xff] %vm1154_vm2, %v3217_v3  ;;  %v2939_v53 = vadd.f32 %v2856_v61, %v2695_v55  ;;  %v3100_v23 = vsel %vm973_vm1, %v3098_v63, %v3099_v17  ;;  %v2857_v20 = vrot.slane %v2742_v27, 1  ;;  %v2743_v39 = vmul.f32 %v6075_v37, %v6675_v11  ;;  %v6678_v55 = vld [vmem:[#allocation13_spill] sm:$0xff]  ;;  %v6680_v27 = vld [vmem:[#allocation15_spill] sm:$0xff] }
 0x204   : > { %v3218_v43 = vadd.f32 %v6089_v60, %v3182_v44  ;;  %v3101_v59 = vrot.slane %v2986_v1, 2  ;;  %v2744_v24 = vmul.f32 %v6075_v37, %v6676_v48  ;;  %v2987_v52 = vmul.f32 %v6084_v28, %v6675_v11 }
 0x205   : > { %v3183_v26 = vadd.f32 %v3100_v23, %v2939_v53  ;;  %v2858_v5 = vsel %vm728_vm0, %v2855_v2, %v2857_v20  ;;  %v2859_v12 = vrot.slane %v2743_v39, 1  ;;  %v2988_v50 = vmul.f32 %v6084_v28, %v6676_v48 }
 0x206   : > { %3410 = vst.msk [vmem:[%s3716_s23 + $0x388] sm:$0xff] %vm1154_vm2, %v3218_v43  ;;  %v2940_v29 = vadd.f32 %v2858_v5, %v2696_v10  ;;  %v3102_v32 = vsel %vm973_vm1, %v3099_v17, %v3101_v59  ;;  %v2860_v49 = vrot.slane %v2744_v24, 1  ;;  %v3103_v36 = vrot.slane %v2987_v52, 2  ;;  %v6682_v24 = vld [vmem:[#allocation17_spill] sm:$0xff] }
 0x207   : > { %v3219_v40 = vadd.f32 %v6089_v60, %v3183_v26  ;;  %v3104_v6 = vrot.slane %v2988_v50, 2  ;;  %v2698_v47 = vmul.f32 %v6056_v56, %v6676_v48  ;;  %v2745_v18 = vmul.f32 %v6075_v37, %v6677_v41 }
 0x208   : > { %v3184_v15 = vadd.f32 %v3102_v32, %v2940_v29  ;;  %v2861_v19 = vsel %vm728_vm0, %v2859_v12, %v2860_v49  ;;  %v2989_v54 = vmul.f32 %v6084_v28, %v6677_v41  ;;  %v2699_v33 = vmul.f32 %v6056_v56, %v6678_v55 }
 0x209   : > { %3411 = vst.msk [vmem:[%s3716_s23 + $0x390] sm:$0xff] %vm1154_vm2, %v3219_v40  ;;  %v2941_v46 = vadd.f32 %v2861_v19, %v2697_v34  ;;  %v3105_v51 = vsel %vm973_vm1, %v3103_v36, %v3104_v6  ;;  %v2862_v31 = vrot.slane %v2745_v18, 1  ;;  %v2746_v21 = vmul.f32 %v6075_v37, %v6678_v55  ;;  %v6681_v34 = vld [vmem:[#allocation16_spill] sm:$0xff] }
 0x20a   : > { %v3220_v30 = vadd.f32 %v6089_v60, %v3184_v15  ;;  %v3106_v16 = vrot.slane %v2989_v54, 2  ;;  %v2747_v13 = vmul.f32 %v6075_v37, %v6679_v57  ;;  %v2990_v42 = vmul.f32 %v6084_v28, %v6678_v55  ;;  %v6683_v55 = vld [vmem:[#allocation18_spill] sm:$0xff] }
 0x20b   : > { %v3185_v45 = vadd.f32 %v3105_v51, %v2941_v46  ;;  %v2863_v14 = vsel %vm728_vm0, %v2860_v49, %v2862_v31  ;;  %v2864_v8 = vrot.slane %v2746_v21, 1  ;;  %v2991_v22 = vmul.f32 %v6084_v28, %v6679_v57 }
 0x20c   : > { %3412 = vst.msk [vmem:[%s3716_s23 + $0x398] sm:$0xff] %vm1154_vm2, %v3220_v30  ;;  %v2942_v7 = vadd.f32 %v2863_v14, %v2698_v47  ;;  %v3107_v2 = vsel %vm973_vm1, %v3104_v6, %v3106_v16  ;;  %v2865_v63 = vrot.slane %v2747_v13, 1  ;;  %v3108_v3 = vrot.slane %v2990_v42, 2 }
 0x20d   : > { %v3221_v17 = vadd.f32 %v6089_v60, %v3185_v45  ;;  %v3109_v10 = vrot.slane %v2991_v22, 2  ;;  %v2700_v9 = vmul.f32 %v6056_v56, %v6679_v57  ;;  %v2748_v44 = vmul.f32 %v6075_v37, %v6680_v27  ;;  %v6684_v57 = vld [vmem:[#allocation19_spill] sm:$0xff] }
 0x20e   : > { %v3186_v61 = vadd.f32 %v3107_v2, %v2942_v7  ;;  %v2866_v1 = vsel %vm728_vm0, %v2864_v8, %v2865_v63  ;;  %v2992_v11 = vmul.f32 %v6084_v28, %v6680_v27  ;;  %v2701_v53 = vmul.f32 %v6056_v56, %v6681_v34 }
 0x20f   : > { %3413 = vst.msk [vmem:[%s3716_s23 + $0x3a0] sm:$0xff] %vm1154_vm2, %v3221_v17  ;;  %v2943_v23 = vadd.f32 %v2866_v1, %v2699_v33  ;;  %v3110_v20 = vsel %vm973_vm1, %v3108_v3, %v3109_v10  ;;  %v2867_v39 = vrot.slane %v2748_v44, 1  ;;  %v2749_v43 = vmul.f32 %v6075_v37, %v6681_v34 }
 0x210   : > { %v3222_v59 = vadd.f32 %v6089_v60, %v3186_v61  ;;  %v3111_v48 = vrot.slane %v2992_v11, 2  ;;  %v2750_v52 = vmul.f32 %v6075_v37, %v6682_v24  ;;  %v2993_v26 = vmul.f32 %v6084_v28, %v6681_v34 }
 0x211   : > { %v3187_v5 = vadd.f32 %v3110_v20, %v2943_v23  ;;  %v2868_v12 = vsel %vm728_vm0, %v2865_v63, %v2867_v39  ;;  %v2869_v50 = vrot.slane %v2749_v43, 1  ;;  %v2994_v29 = vmul.f32 %v6084_v28, %v6682_v24 }
 0x212   : > { %3414 = vst.msk [vmem:[%s3716_s23 + $0x3a8] sm:$0xff] %vm1154_vm2, %v3222_v59  ;;  %v2944_v32 = vadd.f32 %v2868_v12, %v2700_v9  ;;  %v3112_v49 = vsel %vm973_vm1, %v3109_v10, %v3111_v48  ;;  %v2870_v36 = vrot.slane %v2750_v52, 1  ;;  %v3113_v40 = vrot.slane %v2993_v26, 2  ;;  %v6685_v9 = vld [vmem:[#allocation20_spill] sm:$0xff] }
 0x213   : > { %v3223_v6 = vadd.f32 %v6089_v60, %v3187_v5  ;;  %v3114_v47 = vrot.slane %v2994_v29, 2  ;;  %v2702_v41 = vmul.f32 %v6056_v56, %v6682_v24  ;;  %v2751_v18 = vmul.f32 %v6075_v37, %v5903_v4 }
 0x214   : > { %v3188_v15 = vadd.f32 %v3112_v49, %v2944_v32  ;;  %v2871_v19 = vsel %vm728_vm0, %v2869_v50, %v2870_v36  ;;  %v2995_v54 = vmul.f32 %v6084_v28, %v5903_v4  ;;  %v2703_v33 = vmul.f32 %v6056_v56, %v6683_v55 }
 0x215   : > { %3415 = vst.msk [vmem:[%s3716_s23 + $0x3b0] sm:$0xff] %vm1154_vm2, %v3223_v6  ;;  %v2945_v46 = vadd.f32 %v2871_v19, %v2701_v53  ;;  %v3115_v51 = vsel %vm973_vm1, %v3113_v40, %v3114_v47  ;;  %v2872_v31 = vrot.slane %v2751_v18, 1  ;;  %v2752_v21 = vmul.f32 %v6075_v37, %v6683_v55 }
 0x216   : > { %v3224_v30 = vadd.f32 %v6089_v60, %v3188_v15  ;;  %v3116_v16 = vrot.slane %v2995_v54, 2  ;;  %v2753_v13 = vmul.f32 %v6075_v37, %v6684_v57  ;;  %v2996_v4 = vmul.f32 %v6084_v28, %v6683_v55 }
 0x217   : > { %v3189_v42 = vadd.f32 %v3115_v51, %v2945_v46  ;;  %v2873_v45 = vsel %vm728_vm0, %v2870_v36, %v2872_v31  ;;  %v2874_v14 = vrot.slane %v2752_v21, 1  ;;  %v2997_v8 = vmul.f32 %v6084_v28, %v6684_v57 }
 0x218   : > { %3416 = vst.msk [vmem:[%s3716_s23 + $0x3b8] sm:$0xff] %vm1154_vm2, %v3224_v30  ;;  %v2946_v22 = vadd.f32 %v2873_v45, %v2702_v41  ;;  %v3117_v7 = vsel %vm973_vm1, %v3114_v47, %v3116_v16  ;;  %v2875_v2 = vrot.slane %v2753_v13, 1  ;;  %v3118_v63 = vrot.slane %v2996_v4, 2 }
 0x219   : > { %v3225_v3 = vadd.f32 %v6089_v60, %v3189_v42  ;;  %v3119_v17 = vrot.slane %v2997_v8, 2  ;;  %v2704_v10 = vmul.f32 %v6056_v56, %v6684_v57  ;;  %v2754_v27 = vmul.f32 %v6075_v37, %v6685_v9 }
 0x21a   : > { %v3190_v44 = vadd.f32 %v3117_v7, %v2946_v22  ;;  %v2876_v61 = vsel %vm728_vm0, %v2874_v14, %v2875_v2  ;;  %v2998_v1 = vmul.f32 %v6084_v28, %v6685_v9  ;;  %v2705_v11 = vmul.f32 %v6056_v56, %v5992_v62 }
 0x21b   : > { %3417 = vst.msk [vmem:[%s3716_s23 + $0x3c0] sm:$0xff] %vm1154_vm2, %v3225_v3  ;;  %v2947_v34 = vadd.f32 %v2876_v61, %v2703_v33  ;;  %v3120_v53 = vsel %vm973_vm1, %v3118_v63, %v3119_v17  ;;  %v2877_v23 = vrot.slane %v2754_v27, 1  ;;  %v2755_v20 = vmul.f32 %v6075_v37, %v5992_v62 }
 0x21c   : > { %v3226_v39 = vadd.f32 %v6089_v60, %v3190_v44  ;;  %v3121_v43 = vrot.slane %v2998_v1, 2  ;;  %v2756_v59 = vmul.f32 %v6075_v37, %v5995_v25  ;;  %v2999_v48 = vmul.f32 %v6084_v28, %v5992_v62 }
 0x21d   : > { %v3191_v24 = vadd.f32 %v3120_v53, %v2947_v34  ;;  %v2878_v52 = vsel %vm728_vm0, %v2875_v2, %v2877_v23  ;;  %v2879_v26 = vrot.slane %v2755_v20, 1  ;;  %v3000_v5 = vmul.f32 %v6084_v28, %v5995_v25 }
 0x21e   : > { %3418 = vst.msk [vmem:[%s3716_s23 + $0x3c8] sm:$0xff] %vm1154_vm2, %v3226_v39  ;;  %v2948_v12 = vadd.f32 %v2878_v52, %v2704_v10  ;;  %v3122_v50 = vsel %vm973_vm1, %v3119_v17, %v3121_v43  ;;  %v2880_v29 = vrot.slane %v2756_v59, 1  ;;  %v3123_v32 = vrot.slane %v2999_v48, 2 }
 0x21f   : > { %v3227_v49 = vadd.f32 %v6089_v60, %v3191_v24  ;;  %v3124_v36 = vrot.slane %v3000_v5, 2  ;;  %v2706_v62 = vmul.f32 %v6056_v56, %v5995_v25  ;;  %v2757_v40 = vmul.f32 %v6075_v37, %v6017_v38 }
 0x220   : > { %v3192_v6 = vadd.f32 %v3122_v50, %v2948_v12  ;;  %v2881_v47 = vsel %vm728_vm0, %v2879_v26, %v2880_v29  ;;  %v3001_v41 = vmul.f32 %v6084_v28, %v6017_v38  ;;  %v2707_v18 = vmul.f32 %v6056_v56, %v6038_v0 }
 0x221   : > { %3419 = vst.msk [vmem:[%s3716_s23 + $0x3d0] sm:$0xff] %vm1154_vm2, %v3227_v49  ;;  %v2949_v15 = vadd.f32 %v2881_v47, %v2705_v11  ;;  %v3125_v19 = vsel %vm973_vm1, %v3123_v32, %v3124_v36  ;;  %v2882_v54 = vrot.slane %v2757_v40, 1  ;;  %v2758_v25 = vmul.f32 %v6075_v37, %v6038_v0 }
 0x222   : > { %v3228_v55 = vadd.f32 %v6089_v60, %v3192_v6  ;;  %v3126_v33 = vrot.slane %v3001_v41, 2  ;;  %v2759_v46 = vmul.f32 %v6075_v37, %v6045_v35  ;;  %v3002_v38 = vmul.f32 %v6084_v28, %v6038_v0 }
 0x223   : > { %v3193_v51 = vadd.f32 %v3125_v19, %v2949_v15  ;;  %v2883_v31 = vsel %vm728_vm0, %v2880_v29, %v2882_v54  ;;  %v2884_v21 = vrot.slane %v2758_v25, 1  ;;  %v3003_v30 = vmul.f32 %v6084_v28, %v6045_v35 }
 0x224   : > { %3420 = vst.msk [vmem:[%s3716_s23 + $0x3d8] sm:$0xff] %vm1154_vm2, %v3228_v55  ;;  %v2950_v16 = vadd.f32 %v2883_v31, %v2706_v62  ;;  %v3127_v57 = vsel %vm973_vm1, %v3124_v36, %v3126_v33  ;;  %v2885_v13 = vrot.slane %v2759_v46, 1  ;;  %v3128_v4 = vrot.slane %v3002_v38, 2 }
 0x225   : > { %v3229_v42 = vadd.f32 %v6089_v60, %v3193_v51  ;;  %v3129_v45 = vrot.slane %v3003_v30, 2  ;;  %v2760_v0 = vmul.f32 %v6075_v37, %v6067_v58  ;;  %v2708_v22 = vmul.f32 %v6056_v56, %v6045_v35 }
 0x226   : > { %v3194_v14 = vadd.f32 %v3127_v57, %v2950_v16  ;;  %v2886_v8 = vsel %vm728_vm0, %v2884_v21, %v2885_v13  ;;  %v3004_v7 = vmul.f32 %v6084_v28, %v6067_v58 }
 0x227   : > { %3421 = vst.msk [vmem:[%s3716_s23 + $0x3e0] sm:$0xff] %vm1154_vm2, %v3229_v42  ;;  %v2951_v2 = vadd.f32 %v2886_v8, %v2707_v18  ;;  %v3130_v63 = vsel %vm973_vm1, %v3128_v4, %v3129_v45  ;;  %v2887_v3 = vrot.slane %v2760_v0, 1 }
 0x228   : > { %v3230_v17 = vadd.f32 %v6089_v60, %v3194_v14  ;;  %v3131_v37 = vrot.slane %v3004_v7, 2 }
 0x229   : > { %v3195_v10 = vadd.f32 %v3130_v63, %v2951_v2  ;;  %v2888_v9 = vsel %vm728_vm0, %v2885_v13, %v2887_v3 }
 0x22a   : > { %3422 = vst.msk [vmem:[%s3716_s23 + $0x3e8] sm:$0xff] %vm1154_vm2, %v3230_v17  ;;  %v2952_v27 = vadd.f32 %v2888_v9, %v2708_v22  ;;  %v3132_v35 = vsel %vm973_vm1, %v3129_v45, %v3131_v37 }
 0x22b   : > { %v3231_v56 = vadd.f32 %v6089_v60, %v3195_v10 }
 0x22c   : > { %v3196_v58 = vadd.f32 %v3132_v35, %v2952_v27 }
 0x22d   : > { %3423 = vst.msk [vmem:[%s3716_s23 + $0x3f0] sm:$0xff] %vm1154_vm2, %v3231_v56 }
 0x22e   : > { %v3232_v28 = vadd.f32 %v6089_v60, %v3196_v58 }
 0x230   : > { %3424 = vst.msk [vmem:[%s3716_s23 + $0x3f8] sm:$0xff] %vm1154_vm2, %v3232_v28 }
 0x231 PF: > { %s15_s18 = sadd.s32 1, %s3514_s18  }
 0x232   : > { %p12_p4 = scmp.ge.s32.totalorder %s15_s18, 4  }
 0x234   :  { %14 = sbr.rel (!%p12_p4) target bundleno = 1 (0x1), region = 73 }

</bundles_post_ra>
